<compile_context>
chip_gen: v7x
topology: tpu7x:2x2x1
jax: 0.10.0
libtpu: 0.0.40
codegen_flags: <defaults>
</compile_context>

<pallas_src>
import jax
import jax.numpy as jnp
from jax import lax
from jax.experimental import pallas as pl
from jax.experimental.pallas import tpu as pltpu

SOS_TOKEN = 0
EOS_TOKEN = 1
NEG_BIG = -1e30   # padded-lane logit bias (cannot win argmax, exp() underflows to 0)


# ----------------------------------------------------------------------------
# the kernel
# ----------------------------------------------------------------------------
def vae_forward_kernel(
    tokens_ref,                        # SMEM (L,) int32
    enc_h0_ref, enc_c0_ref,            # (1, H) f32
    cond_ref,                          # (1, C) f32  conditional embedding
    eps_ref,                           # (1, Z) f32  reparameterization noise
    enc_table_ref,                     # (V, 4H)  = enc_emb @ enc_W_ih
    enc_whh_ref, enc_b_ref,            # (H, 4H), (1, 4H)
    dec_table_ref,                     # (V, 4H)  = relu(dec_emb) @ dec_W_ih
    dec_whh_ref, dec_b_ref,            # (H, 4H), (1, 4H)
    dec_outw_ref, dec_outb_ref,        # (H, Vp), (1, Vp)   Vp = vocab padded to 128
    h2m_w_ref, h2m_b_ref,              # (H, Z), (1, Z)
    h2lv_w_ref, h2lv_b_ref,            # (H, Z), (1, Z)
    lc2h_wz_ref, lc2h_wc_ref, lc2h_b_ref,   # (Z,H), (C,H), (1,H)
    pred_out_ref,                      # out: (L, 1) int32
    pred_dist_ref,                     # out: (L, Vp) f32 (log-probabilities, padded lanes ~ -inf)
    mean_ref, logvar_ref,              # out: (1, Z) f32 each
):
    L, Vp = pred_dist_ref.shape
    H = enc_h0_ref.shape[1]

    def lstm_step(x_gates, h, c, whh, b):
        """x_gates: (1,4H) precomputed input-to-gates contribution. h, c: (1,H)."""
        gates = x_gates + jnp.dot(h, whh, preferred_element_type=jnp.float32) + b
        i_g = jax.nn.sigmoid(gates[:, 0 * H:1 * H])
        f_g = jax.nn.sigmoid(gates[:, 1 * H:2 * H])
        g_g = jnp.tanh(gates[:, 2 * H:3 * H])
        o_g = jax.nn.sigmoid(gates[:, 3 * H:4 * H])
        c_new = f_g * c + i_g * g_g
        h_new = o_g * jnp.tanh(c_new)
        return h_new, c_new

    # -------- encoder: unroll over the input word --------
    # (L is small/static; for L > ~16 switch to lax.fori_loop(unroll=True).)
    enc_whh = enc_whh_ref[...]
    enc_b = enc_b_ref[...]
    h = enc_h0_ref[...]
    c = enc_c0_ref[...]
    for ei in range(L):
        tok = tokens_ref[ei]
        x_gates = enc_table_ref[pl.ds(tok, 1), :]          # embedding @ W_ih, row gather
        h, c = lstm_step(x_gates, h, c, enc_whh, enc_b)

    # -------- middle: mean / logvar / reparameterize / latent+cond -> hidden --------
    mean = jnp.dot(h, h2m_w_ref[...], preferred_element_type=jnp.float32) + h2m_b_ref[...]
    logvar = jnp.dot(h, h2lv_w_ref[...], preferred_element_type=jnp.float32) + h2lv_b_ref[...]
    mean_ref[...] = mean
    logvar_ref[...] = logvar

    std = jnp.exp(0.5 * logvar)
    latent = mean + eps_ref[...] * std

    # cat((latent, c), -1) @ W  ==  latent @ W_z + c @ W_c   (avoids lane concat)
    dec_h = (jnp.dot(latent, lc2h_wz_ref[...], preferred_element_type=jnp.float32)
             + jnp.dot(cond_ref[...], lc2h_wc_ref[...], preferred_element_type=jnp.float32)
             + lc2h_b_ref[...])
    dec_c = jnp.zeros((1, H), jnp.float32)                  # decoder.init_c0()

    # -------- decoder: unroll with teacher forcing --------
    dec_whh = dec_whh_ref[...]
    dec_b = dec_b_ref[...]
    outw = dec_outw_ref[...]
    outb = dec_outb_ref[...]
    lane_iota = lax.broadcasted_iota(jnp.int32, (1, Vp), 1)  # hoisted (no per-step iota)

    dec_input = SOS_TOKEN
    logprob_rows = []
    argmax_rows = []
    for di in range(L):
        # relu(embedding(dec_input)) @ W_ih  (precomputed table; ReLU folded exactly)
        x_gates = dec_table_ref[pl.ds(dec_input, 1), :]
        dec_h, dec_c = lstm_step(x_gates, dec_h, dec_c, dec_whh, dec_b)

        logits = jnp.dot(dec_h, outw, preferred_element_type=jnp.float32) + outb
        # LogSoftmax(dim=1); padded lanes carry ~-inf bias so they contribute ~0.
        m = jnp.max(logits, axis=-1, keepdims=True)
        logprobs = logits - m - jnp.log(jnp.sum(jnp.exp(logits - m), axis=-1, keepdims=True))
        logprob_rows.append(logprobs)

        # argmax (topk(1)): first index of the max, like torch
        maxv = jnp.max(logprobs, axis=-1, keepdims=True)
        idx = jnp.min(jnp.where(logprobs == maxv, lane_iota, Vp), axis=-1, keepdims=True)
        argmax_rows.append(idx)

        # teacher forcing: next decoder input is the ground-truth token.
        # TODO(synk): non-teacher-forcing / inference path breaks early on EOS ->
        # dynamic output length, which has no fixed-shape kernel equivalent.
        dec_input = tokens_ref[di]

    # single lane-dense store of the stacked results (no per-step masked stores)
    pred_dist_ref[...] = jnp.concatenate(logprob_rows, axis=0)   # (L, Vp)
    pred_out_ref[...] = jnp.concatenate(argmax_rows, axis=0)     # (L, 1)


# ----------------------------------------------------------------------------
# wrapper
# ----------------------------------------------------------------------------
def vae_forward(params, input_tensor, encoder_hidden_state, encoder_cell_state, c, eps,
                use_teacher_forcing=True):
    """Mirrors VAE.forward (teacher-forcing branch).

    input_tensor: (L, 1) int32; states: (1, 1, H); c: (1, 1, C); eps: (1, Z) noise.
    Returns (predict_output (L,1) i32, predict_distribution (L,V) f32 log-probs,
             mean (1,1,Z) f32, logvar (1,1,Z) f32).
    """
    assert use_teacher_forcing, "only the teacher-forcing path is implemented"
    tokens = input_tensor.reshape(-1).astype(jnp.int32)          # (L,)
    L = tokens.shape[0]
    V, H = params["enc_emb"].shape
    Z = params["h2m_w"].shape[1]
    Vp = ((V + 127) // 128) * 128                                # lane-dense padded vocab

    enc_h0 = encoder_hidden_state.reshape(1, H).astype(jnp.float32)
    enc_c0 = encoder_cell_state.reshape(1, H).astype(jnp.float32)
    cond = c.reshape(1, -1).astype(jnp.float32)

    # ---- one-time (per-weight) precompute: fold embeddings into input-to-gates ----
    enc_table = jnp.dot(params["enc_emb"], params["enc_wih"])                   # (V, 4H)
    dec_table = jnp.dot(jnp.maximum(params["dec_emb"], 0.0), params["dec_wih"])  # (V, 4H)
    outw_p = jnp.zeros((H, Vp), jnp.float32).at[:, :V].set(params["dec_outw"])
    outb_p = jnp.full((1, Vp), NEG_BIG, jnp.float32).at[:, :V].set(params["dec_outb"])

    out_shape = (
        jax.ShapeDtypeStruct((L, 1), jnp.int32),     # predict_output
        jax.ShapeDtypeStruct((L, Vp), jnp.float32),  # predict_distribution (padded lanes)
        jax.ShapeDtypeStruct((1, Z), jnp.float32),   # mean
        jax.ShapeDtypeStruct((1, Z), jnp.float32),   # logvar
    )
    vmem = pl.BlockSpec(memory_space=pltpu.MemorySpace.VMEM)
    smem = pl.BlockSpec(memory_space=pltpu.MemorySpace.SMEM)

    fn = pl.pallas_call(
        vae_forward_kernel,
        out_shape=out_shape,
        in_specs=[smem] + [vmem] * 19,
        out_specs=(vmem, vmem, vmem, vmem),
    )
    pred_out, pred_dist_p, mean, logvar = fn(
        tokens, enc_h0, enc_c0, cond, eps,
        enc_table, params["enc_whh"], params["enc_b"],
        dec_table, params["dec_whh"], params["dec_b"],
        outw_p, outb_p,
        params["h2m_w"], params["h2m_b"],
        params["h2lv_w"], params["h2lv_b"],
        params["lc2h_wz"], params["lc2h_wc"], params["lc2h_b"],
    )
    return (pred_out, pred_dist_p[:, :V],
            mean.reshape(1, 1, Z), logvar.reshape(1, 1, Z))


# ----------------------------------------------------------------------------
# deterministic parameter init (synthetic weights; shapes from VAE.__init__,
# LSTM gates already stacked along the lane dim in (i, f, g, o) order, b_ih+b_hh folded)
# ----------------------------------------------------------------------------
def init_params(key, input_size, hidden_size, latent_size, conditional_size):
    V, H, Z, C = input_size, hidden_size, latent_size, conditional_size
    ks = jax.random.split(key, 18)

    def u(k, shape, fan_in):
        s = 1.0 / float(fan_in) ** 0.5
        return jax.random.uniform(k, shape, jnp.float32, -s, s)

    return dict(
        enc_emb=0.1 * jax.random.normal(ks[0], (V, H), jnp.float32),
        enc_wih=u(ks[1], (H, 4 * H), H),     # gate-stacked: [i | f | g | o] along lanes
        enc_whh=u(ks[2], (H, 4 * H), H),
        enc_b=u(ks[3], (1, 4 * H), H),
        dec_emb=0.1 * jax.random.normal(ks[4], (V, H), jnp.float32),
        dec_wih=u(ks[5], (H, 4 * H), H),
        dec_whh=u(ks[6], (H, 4 * H), H),
        dec_b=u(ks[7], (1, 4 * H), H),
        dec_outw=u(ks[8], (H, V), H),
        dec_outb=u(ks[9], (1, V), H),
        h2m_w=u(ks[10], (H, Z), H),
        h2m_b=u(ks[11], (1, Z), H),
        h2lv_w=u(ks[12], (H, Z), H),
        h2lv_b=u(ks[13], (1, Z), H),
        lc2h_wz=u(ks[14], (Z, H), Z + C),
        lc2h_wc=u(ks[15], (C, H), Z + C),
        lc2h_b=u(ks[16], (1, H), Z + C),
        tense_emb=0.1 * jax.random.normal(ks[17], (4, C), jnp.float32),
    )


if __name__ == "__main__":
    INPUT_SIZE = 28       # SOS, EOS, a-z
    HIDDEN = 32           # 4*H = 128 -> gate stack fills exactly one lane-width
    LATENT = 16
    COND = 8
    SEQ_LEN = 8

    key = jax.random.PRNGKey(0)
    k_param, k_tok, k_eps = jax.random.split(key, 3)

    params = init_params(k_param, INPUT_SIZE, HIDDEN, LATENT, COND)

    # example inputs (deterministic)
    input_tensor = jax.random.randint(k_tok, (SEQ_LEN, 1), 2, INPUT_SIZE, dtype=jnp.int32)
    encoder_hidden_state = jnp.zeros((1, 1, HIDDEN), jnp.float32)   # encoder.init_h0
    encoder_cell_state = jnp.zeros((1, 1, HIDDEN), jnp.float32)     # encoder.init_c0
    tense = 1
    c = params["tense_emb"][tense].reshape(1, 1, COND)              # tense_embedding (glue)
    eps = jax.random.normal(k_eps, (1, LATENT), jnp.float32)        # randn_like(std)

    pred_out, pred_dist, mean, logvar = vae_forward(
        params, input_tensor, encoder_hidden_state, encoder_cell_state, c, eps,
        use_teacher_forcing=True)
    jax.block_until_ready((pred_out, pred_dist, mean, logvar))

    # light sanity checks: log-softmax rows sum to 1 in prob space, shapes match
    row_sums = jnp.exp(pred_dist).sum(axis=-1)
    assert pred_out.shape == (SEQ_LEN, 1)
    assert pred_dist.shape == (SEQ_LEN, INPUT_SIZE)
    assert mean.shape == (1, 1, LATENT) and logvar.shape == (1, 1, LATENT)
    assert bool(jnp.all(jnp.isfinite(pred_dist)))
    assert bool(jnp.all(jnp.abs(row_sums - 1.0) < 1e-4))
    assert bool(jnp.all((pred_out >= 0) & (pred_out < INPUT_SIZE)))

    print("KERNEL_OK")
</pallas_src>

<mosaic_0001>
module attributes {stable_mosaic.version = 11 : i64} {
  func.func @vae_forward_kernel(%arg0: memref<8xi32, #tpu.memory_space<smem>>, %arg1: memref<1x32xf32, #tpu.memory_space<vmem>>, %arg2: memref<1x32xf32, #tpu.memory_space<vmem>>, %arg3: memref<1x8xf32, #tpu.memory_space<vmem>>, %arg4: memref<1x16xf32, #tpu.memory_space<vmem>>, %arg5: memref<28x128xf32, #tpu.memory_space<vmem>>, %arg6: memref<32x128xf32, #tpu.memory_space<vmem>>, %arg7: memref<1x128xf32, #tpu.memory_space<vmem>>, %arg8: memref<28x128xf32, #tpu.memory_space<vmem>>, %arg9: memref<32x128xf32, #tpu.memory_space<vmem>>, %arg10: memref<1x128xf32, #tpu.memory_space<vmem>>, %arg11: memref<32x128xf32, #tpu.memory_space<vmem>>, %arg12: memref<1x128xf32, #tpu.memory_space<vmem>>, %arg13: memref<32x16xf32, #tpu.memory_space<vmem>>, %arg14: memref<1x16xf32, #tpu.memory_space<vmem>>, %arg15: memref<32x16xf32, #tpu.memory_space<vmem>>, %arg16: memref<1x16xf32, #tpu.memory_space<vmem>>, %arg17: memref<16x32xf32, #tpu.memory_space<vmem>>, %arg18: memref<8x32xf32, #tpu.memory_space<vmem>>, %arg19: memref<1x32xf32, #tpu.memory_space<vmem>>, %arg20: memref<8x1xi32, #tpu.memory_space<vmem>>, %arg21: memref<8x128xf32, #tpu.memory_space<vmem>>, %arg22: memref<1x16xf32, #tpu.memory_space<vmem>>, %arg23: memref<1x16xf32, #tpu.memory_space<vmem>>) attributes {dimension_semantics = [], scalar_prefetch = 0 : i64, scratch_operands = 0 : i64, tpu.core_type = #tpu.core_type<tc>} {
    %c0 = arith.constant 0 : index
    %c0_0 = arith.constant 0 : index
    %0 = vector.load %arg6[%c0, %c0_0] : memref<32x128xf32, #tpu.memory_space<vmem>>, vector<32x128xf32>
    %c0_1 = arith.constant 0 : index
    %c0_2 = arith.constant 0 : index
    %1 = vector.load %arg7[%c0_1, %c0_2] : memref<1x128xf32, #tpu.memory_space<vmem>>, vector<1x128xf32>
    %c0_3 = arith.constant 0 : index
    %c0_4 = arith.constant 0 : index
    %2 = vector.load %arg1[%c0_3, %c0_4] : memref<1x32xf32, #tpu.memory_space<vmem>>, vector<1x32xf32>
    %c0_5 = arith.constant 0 : index
    %c0_6 = arith.constant 0 : index
    %3 = vector.load %arg2[%c0_5, %c0_6] : memref<1x32xf32, #tpu.memory_space<vmem>>, vector<1x32xf32>
    %c0_7 = arith.constant 0 : index
    %4 = memref.load %arg0[%c0_7] : memref<8xi32, #tpu.memory_space<smem>>
    %5 = arith.index_cast %4 : i32 to index
    %c0_8 = arith.constant 0 : index
    %6 = vector.load %arg5[%5, %c0_8] : memref<28x128xf32, #tpu.memory_space<vmem>>, vector<1x128xf32>
    %cst = arith.constant dense<0.000000e+00> : vector<1x128xf32>
    %7 = tpu.matmul %2, %0, %cst {dimension_numbers = #tpu.dot_dimension_numbers<[1], [0], [0], [1], [0, 0, 1, 1], [], []>} : vector<1x32xf32>, vector<32x128xf32>, vector<1x128xf32> -> vector<1x128xf32>
    %8 = arith.addf %6, %7 : vector<1x128xf32>
    %9 = arith.addf %8, %1 : vector<1x128xf32>
    %10 = vector.extract_strided_slice %9 {offsets = [0, 0], sizes = [1, 32], strides = [1, 1]} : vector<1x128xf32> to vector<1x32xf32>
    %11 = arith.negf %10 : vector<1x32xf32>
    %12 = math.exp %11 : vector<1x32xf32>
    %cst_9 = arith.constant 1.000000e+00 : f32
    %13 = vector.broadcast %cst_9 : f32 to vector<1x32xf32>
    %14 = arith.addf %13, %12 : vector<1x32xf32>
    %15 = arith.divf %13, %14 : vector<1x32xf32>
    %16 = vector.extract_strided_slice %9 {offsets = [0, 32], sizes = [1, 32], strides = [1, 1]} : vector<1x128xf32> to vector<1x32xf32>
    %17 = arith.negf %16 : vector<1x32xf32>
    %18 = math.exp %17 : vector<1x32xf32>
    %cst_10 = arith.constant 1.000000e+00 : f32
    %19 = vector.broadcast %cst_10 : f32 to vector<1x32xf32>
    %20 = arith.addf %19, %18 : vector<1x32xf32>
    %21 = arith.divf %19, %20 : vector<1x32xf32>
    %22 = vector.extract_strided_slice %9 {offsets = [0, 64], sizes = [1, 32], strides = [1, 1]} : vector<1x128xf32> to vector<1x32xf32>
    %23 = math.tanh %22 : vector<1x32xf32>
    %24 = vector.extract_strided_slice %9 {offsets = [0, 96], sizes = [1, 32], strides = [1, 1]} : vector<1x128xf32> to vector<1x32xf32>
    %25 = arith.negf %24 : vector<1x32xf32>
    %26 = math.exp %25 : vector<1x32xf32>
    %cst_11 = arith.constant 1.000000e+00 : f32
    %27 = vector.broadcast %cst_11 : f32 to vector<1x32xf32>
    %28 = arith.addf %27, %26 : vector<1x32xf32>
    %29 = arith.divf %27, %28 : vector<1x32xf32>
    %30 = arith.mulf %21, %3 : vector<1x32xf32>
    %31 = arith.mulf %15, %23 : vector<1x32xf32>
    %32 = arith.addf %30, %31 : vector<1x32xf32>
    %33 = math.tanh %32 : vector<1x32xf32>
    %34 = arith.mulf %29, %33 : vector<1x32xf32>
    %c1 = arith.constant 1 : index
    %35 = memref.load %arg0[%c1] : memref<8xi32, #tpu.memory_space<smem>>
    %36 = arith.index_cast %35 : i32 to index
    %c0_12 = arith.constant 0 : index
    %37 = vector.load %arg5[%36, %c0_12] : memref<28x128xf32, #tpu.memory_space<vmem>>, vector<1x128xf32>
    %cst_13 = arith.constant dense<0.000000e+00> : vector<1x128xf32>
    %38 = tpu.matmul %34, %0, %cst_13 {dimension_numbers = #tpu.dot_dimension_numbers<[1], [0], [0], [1], [0, 0, 1, 1], [], []>} : vector<1x32xf32>, vector<32x128xf32>, vector<1x128xf32> -> vector<1x128xf32>
    %39 = arith.addf %37, %38 : vector<1x128xf32>
    %40 = arith.addf %39, %1 : vector<1x128xf32>
    %41 = vector.extract_strided_slice %40 {offsets = [0, 0], sizes = [1, 32], strides = [1, 1]} : vector<1x128xf32> to vector<1x32xf32>
    %42 = arith.negf %41 : vector<1x32xf32>
    %43 = math.exp %42 : vector<1x32xf32>
    %cst_14 = arith.constant 1.000000e+00 : f32
    %44 = vector.broadcast %cst_14 : f32 to vector<1x32xf32>
    %45 = arith.addf %44, %43 : vector<1x32xf32>
    %46 = arith.divf %44, %45 : vector<1x32xf32>
    %47 = vector.extract_strided_slice %40 {offsets = [0, 32], sizes = [1, 32], strides = [1, 1]} : vector<1x128xf32> to vector<1x32xf32>
    %48 = arith.negf %47 : vector<1x32xf32>
    %49 = math.exp %48 : vector<1x32xf32>
    %cst_15 = arith.constant 1.000000e+00 : f32
    %50 = vector.broadcast %cst_15 : f32 to vector<1x32xf32>
    %51 = arith.addf %50, %49 : vector<1x32xf32>
    %52 = arith.divf %50, %51 : vector<1x32xf32>
    %53 = vector.extract_strided_slice %40 {offsets = [0, 64], sizes = [1, 32], strides = [1, 1]} : vector<1x128xf32> to vector<1x32xf32>
    %54 = math.tanh %53 : vector<1x32xf32>
    %55 = vector.extract_strided_slice %40 {offsets = [0, 96], sizes = [1, 32], strides = [1, 1]} : vector<1x128xf32> to vector<1x32xf32>
    %56 = arith.negf %55 : vector<1x32xf32>
    %57 = math.exp %56 : vector<1x32xf32>
    %cst_16 = arith.constant 1.000000e+00 : f32
    %58 = vector.broadcast %cst_16 : f32 to vector<1x32xf32>
    %59 = arith.addf %58, %57 : vector<1x32xf32>
    %60 = arith.divf %58, %59 : vector<1x32xf32>
    %61 = arith.mulf %52, %32 : vector<1x32xf32>
    %62 = arith.mulf %46, %54 : vector<1x32xf32>
    %63 = arith.addf %61, %62 : vector<1x32xf32>
    %64 = math.tanh %63 : vector<1x32xf32>
    %65 = arith.mulf %60, %64 : vector<1x32xf32>
    %c2 = arith.constant 2 : index
    %66 = memref.load %arg0[%c2] : memref<8xi32, #tpu.memory_space<smem>>
    %67 = arith.index_cast %66 : i32 to index
    %c0_17 = arith.constant 0 : index
    %68 = vector.load %arg5[%67, %c0_17] : memref<28x128xf32, #tpu.memory_space<vmem>>, vector<1x128xf32>
    %cst_18 = arith.constant dense<0.000000e+00> : vector<1x128xf32>
    %69 = tpu.matmul %65, %0, %cst_18 {dimension_numbers = #tpu.dot_dimension_numbers<[1], [0], [0], [1], [0, 0, 1, 1], [], []>} : vector<1x32xf32>, vector<32x128xf32>, vector<1x128xf32> -> vector<1x128xf32>
    %70 = arith.addf %68, %69 : vector<1x128xf32>
    %71 = arith.addf %70, %1 : vector<1x128xf32>
    %72 = vector.extract_strided_slice %71 {offsets = [0, 0], sizes = [1, 32], strides = [1, 1]} : vector<1x128xf32> to vector<1x32xf32>
    %73 = arith.negf %72 : vector<1x32xf32>
    %74 = math.exp %73 : vector<1x32xf32>
    %cst_19 = arith.constant 1.000000e+00 : f32
    %75 = vector.broadcast %cst_19 : f32 to vector<1x32xf32>
    %76 = arith.addf %75, %74 : vector<1x32xf32>
    %77 = arith.divf %75, %76 : vector<1x32xf32>
    %78 = vector.extract_strided_slice %71 {offsets = [0, 32], sizes = [1, 32], strides = [1, 1]} : vector<1x128xf32> to vector<1x32xf32>
    %79 = arith.negf %78 : vector<1x32xf32>
    %80 = math.exp %79 : vector<1x32xf32>
    %cst_20 = arith.constant 1.000000e+00 : f32
    %81 = vector.broadcast %cst_20 : f32 to vector<1x32xf32>
    %82 = arith.addf %81, %80 : vector<1x32xf32>
    %83 = arith.divf %81, %82 : vector<1x32xf32>
    %84 = vector.extract_strided_slice %71 {offsets = [0, 64], sizes = [1, 32], strides = [1, 1]} : vector<1x128xf32> to vector<1x32xf32>
    %85 = math.tanh %84 : vector<1x32xf32>
    %86 = vector.extract_strided_slice %71 {offsets = [0, 96], sizes = [1, 32], strides = [1, 1]} : vector<1x128xf32> to vector<1x32xf32>
    %87 = arith.negf %86 : vector<1x32xf32>
    %88 = math.exp %87 : vector<1x32xf32>
    %cst_21 = arith.constant 1.000000e+00 : f32
    %89 = vector.broadcast %cst_21 : f32 to vector<1x32xf32>
    %90 = arith.addf %89, %88 : vector<1x32xf32>
    %91 = arith.divf %89, %90 : vector<1x32xf32>
    %92 = arith.mulf %83, %63 : vector<1x32xf32>
    %93 = arith.mulf %77, %85 : vector<1x32xf32>
    %94 = arith.addf %92, %93 : vector<1x32xf32>
    %95 = math.tanh %94 : vector<1x32xf32>
    %96 = arith.mulf %91, %95 : vector<1x32xf32>
    %c3 = arith.constant 3 : index
    %97 = memref.load %arg0[%c3] : memref<8xi32, #tpu.memory_space<smem>>
    %98 = arith.index_cast %97 : i32 to index
    %c0_22 = arith.constant 0 : index
    %99 = vector.load %arg5[%98, %c0_22] : memref<28x128xf32, #tpu.memory_space<vmem>>, vector<1x128xf32>
    %cst_23 = arith.constant dense<0.000000e+00> : vector<1x128xf32>
    %100 = tpu.matmul %96, %0, %cst_23 {dimension_numbers = #tpu.dot_dimension_numbers<[1], [0], [0], [1], [0, 0, 1, 1], [], []>} : vector<1x32xf32>, vector<32x128xf32>, vector<1x128xf32> -> vector<1x128xf32>
    %101 = arith.addf %99, %100 : vector<1x128xf32>
    %102 = arith.addf %101, %1 : vector<1x128xf32>
    %103 = vector.extract_strided_slice %102 {offsets = [0, 0], sizes = [1, 32], strides = [1, 1]} : vector<1x128xf32> to vector<1x32xf32>
    %104 = arith.negf %103 : vector<1x32xf32>
    %105 = math.exp %104 : vector<1x32xf32>
    %cst_24 = arith.constant 1.000000e+00 : f32
    %106 = vector.broadcast %cst_24 : f32 to vector<1x32xf32>
    %107 = arith.addf %106, %105 : vector<1x32xf32>
    %108 = arith.divf %106, %107 : vector<1x32xf32>
    %109 = vector.extract_strided_slice %102 {offsets = [0, 32], sizes = [1, 32], strides = [1, 1]} : vector<1x128xf32> to vector<1x32xf32>
    %110 = arith.negf %109 : vector<1x32xf32>
    %111 = math.exp %110 : vector<1x32xf32>
    %cst_25 = arith.constant 1.000000e+00 : f32
    %112 = vector.broadcast %cst_25 : f32 to vector<1x32xf32>
    %113 = arith.addf %112, %111 : vector<1x32xf32>
    %114 = arith.divf %112, %113 : vector<1x32xf32>
    %115 = vector.extract_strided_slice %102 {offsets = [0, 64], sizes = [1, 32], strides = [1, 1]} : vector<1x128xf32> to vector<1x32xf32>
    %116 = math.tanh %115 : vector<1x32xf32>
    %117 = vector.extract_strided_slice %102 {offsets = [0, 96], sizes = [1, 32], strides = [1, 1]} : vector<1x128xf32> to vector<1x32xf32>
    %118 = arith.negf %117 : vector<1x32xf32>
    %119 = math.exp %118 : vector<1x32xf32>
    %cst_26 = arith.constant 1.000000e+00 : f32
    %120 = vector.broadcast %cst_26 : f32 to vector<1x32xf32>
    %121 = arith.addf %120, %119 : vector<1x32xf32>
    %122 = arith.divf %120, %121 : vector<1x32xf32>
    %123 = arith.mulf %114, %94 : vector<1x32xf32>
    %124 = arith.mulf %108, %116 : vector<1x32xf32>
    %125 = arith.addf %123, %124 : vector<1x32xf32>
    %126 = math.tanh %125 : vector<1x32xf32>
    %127 = arith.mulf %122, %126 : vector<1x32xf32>
    %c4 = arith.constant 4 : index
    %128 = memref.load %arg0[%c4] : memref<8xi32, #tpu.memory_space<smem>>
    %129 = arith.index_cast %128 : i32 to index
    %c0_27 = arith.constant 0 : index
    %130 = vector.load %arg5[%129, %c0_27] : memref<28x128xf32, #tpu.memory_space<vmem>>, vector<1x128xf32>
    %cst_28 = arith.constant dense<0.000000e+00> : vector<1x128xf32>
    %131 = tpu.matmul %127, %0, %cst_28 {dimension_numbers = #tpu.dot_dimension_numbers<[1], [0], [0], [1], [0, 0, 1, 1], [], []>} : vector<1x32xf32>, vector<32x128xf32>, vector<1x128xf32> -> vector<1x128xf32>
    %132 = arith.addf %130, %131 : vector<1x128xf32>
    %133 = arith.addf %132, %1 : vector<1x128xf32>
    %134 = vector.extract_strided_slice %133 {offsets = [0, 0], sizes = [1, 32], strides = [1, 1]} : vector<1x128xf32> to vector<1x32xf32>
    %135 = arith.negf %134 : vector<1x32xf32>
    %136 = math.exp %135 : vector<1x32xf32>
    %cst_29 = arith.constant 1.000000e+00 : f32
    %137 = vector.broadcast %cst_29 : f32 to vector<1x32xf32>
    %138 = arith.addf %137, %136 : vector<1x32xf32>
    %139 = arith.divf %137, %138 : vector<1x32xf32>
    %140 = vector.extract_strided_slice %133 {offsets = [0, 32], sizes = [1, 32], strides = [1, 1]} : vector<1x128xf32> to vector<1x32xf32>
    %141 = arith.negf %140 : vector<1x32xf32>
    %142 = math.exp %141 : vector<1x32xf32>
    %cst_30 = arith.constant 1.000000e+00 : f32
    %143 = vector.broadcast %cst_30 : f32 to vector<1x32xf32>
    %144 = arith.addf %143, %142 : vector<1x32xf32>
    %145 = arith.divf %143, %144 : vector<1x32xf32>
    %146 = vector.extract_strided_slice %133 {offsets = [0, 64], sizes = [1, 32], strides = [1, 1]} : vector<1x128xf32> to vector<1x32xf32>
    %147 = math.tanh %146 : vector<1x32xf32>
    %148 = vector.extract_strided_slice %133 {offsets = [0, 96], sizes = [1, 32], strides = [1, 1]} : vector<1x128xf32> to vector<1x32xf32>
    %149 = arith.negf %148 : vector<1x32xf32>
    %150 = math.exp %149 : vector<1x32xf32>
    %cst_31 = arith.constant 1.000000e+00 : f32
    %151 = vector.broadcast %cst_31 : f32 to vector<1x32xf32>
    %152 = arith.addf %151, %150 : vector<1x32xf32>
    %153 = arith.divf %151, %152 : vector<1x32xf32>
    %154 = arith.mulf %145, %125 : vector<1x32xf32>
    %155 = arith.mulf %139, %147 : vector<1x32xf32>
    %156 = arith.addf %154, %155 : vector<1x32xf32>
    %157 = math.tanh %156 : vector<1x32xf32>
    %158 = arith.mulf %153, %157 : vector<1x32xf32>
    %c5 = arith.constant 5 : index
    %159 = memref.load %arg0[%c5] : memref<8xi32, #tpu.memory_space<smem>>
    %160 = arith.index_cast %159 : i32 to index
    %c0_32 = arith.constant 0 : index
    %161 = vector.load %arg5[%160, %c0_32] : memref<28x128xf32, #tpu.memory_space<vmem>>, vector<1x128xf32>
    %cst_33 = arith.constant dense<0.000000e+00> : vector<1x128xf32>
    %162 = tpu.matmul %158, %0, %cst_33 {dimension_numbers = #tpu.dot_dimension_numbers<[1], [0], [0], [1], [0, 0, 1, 1], [], []>} : vector<1x32xf32>, vector<32x128xf32>, vector<1x128xf32> -> vector<1x128xf32>
    %163 = arith.addf %161, %162 : vector<1x128xf32>
    %164 = arith.addf %163, %1 : vector<1x128xf32>
    %165 = vector.extract_strided_slice %164 {offsets = [0, 0], sizes = [1, 32], strides = [1, 1]} : vector<1x128xf32> to vector<1x32xf32>
    %166 = arith.negf %165 : vector<1x32xf32>
    %167 = math.exp %166 : vector<1x32xf32>
    %cst_34 = arith.constant 1.000000e+00 : f32
    %168 = vector.broadcast %cst_34 : f32 to vector<1x32xf32>
    %169 = arith.addf %168, %167 : vector<1x32xf32>
    %170 = arith.divf %168, %169 : vector<1x32xf32>
    %171 = vector.extract_strided_slice %164 {offsets = [0, 32], sizes = [1, 32], strides = [1, 1]} : vector<1x128xf32> to vector<1x32xf32>
    %172 = arith.negf %171 : vector<1x32xf32>
    %173 = math.exp %172 : vector<1x32xf32>
    %cst_35 = arith.constant 1.000000e+00 : f32
    %174 = vector.broadcast %cst_35 : f32 to vector<1x32xf32>
    %175 = arith.addf %174, %173 : vector<1x32xf32>
    %176 = arith.divf %174, %175 : vector<1x32xf32>
    %177 = vector.extract_strided_slice %164 {offsets = [0, 64], sizes = [1, 32], strides = [1, 1]} : vector<1x128xf32> to vector<1x32xf32>
    %178 = math.tanh %177 : vector<1x32xf32>
    %179 = vector.extract_strided_slice %164 {offsets = [0, 96], sizes = [1, 32], strides = [1, 1]} : vector<1x128xf32> to vector<1x32xf32>
    %180 = arith.negf %179 : vector<1x32xf32>
    %181 = math.exp %180 : vector<1x32xf32>
    %cst_36 = arith.constant 1.000000e+00 : f32
    %182 = vector.broadcast %cst_36 : f32 to vector<1x32xf32>
    %183 = arith.addf %182, %181 : vector<1x32xf32>
    %184 = arith.divf %182, %183 : vector<1x32xf32>
    %185 = arith.mulf %176, %156 : vector<1x32xf32>
    %186 = arith.mulf %170, %178 : vector<1x32xf32>
    %187 = arith.addf %185, %186 : vector<1x32xf32>
    %188 = math.tanh %187 : vector<1x32xf32>
    %189 = arith.mulf %184, %188 : vector<1x32xf32>
    %c6 = arith.constant 6 : index
    %190 = memref.load %arg0[%c6] : memref<8xi32, #tpu.memory_space<smem>>
    %191 = arith.index_cast %190 : i32 to index
    %c0_37 = arith.constant 0 : index
    %192 = vector.load %arg5[%191, %c0_37] : memref<28x128xf32, #tpu.memory_space<vmem>>, vector<1x128xf32>
    %cst_38 = arith.constant dense<0.000000e+00> : vector<1x128xf32>
    %193 = tpu.matmul %189, %0, %cst_38 {dimension_numbers = #tpu.dot_dimension_numbers<[1], [0], [0], [1], [0, 0, 1, 1], [], []>} : vector<1x32xf32>, vector<32x128xf32>, vector<1x128xf32> -> vector<1x128xf32>
    %194 = arith.addf %192, %193 : vector<1x128xf32>
    %195 = arith.addf %194, %1 : vector<1x128xf32>
    %196 = vector.extract_strided_slice %195 {offsets = [0, 0], sizes = [1, 32], strides = [1, 1]} : vector<1x128xf32> to vector<1x32xf32>
    %197 = arith.negf %196 : vector<1x32xf32>
    %198 = math.exp %197 : vector<1x32xf32>
    %cst_39 = arith.constant 1.000000e+00 : f32
    %199 = vector.broadcast %cst_39 : f32 to vector<1x32xf32>
    %200 = arith.addf %199, %198 : vector<1x32xf32>
    %201 = arith.divf %199, %200 : vector<1x32xf32>
    %202 = vector.extract_strided_slice %195 {offsets = [0, 32], sizes = [1, 32], strides = [1, 1]} : vector<1x128xf32> to vector<1x32xf32>
    %203 = arith.negf %202 : vector<1x32xf32>
    %204 = math.exp %203 : vector<1x32xf32>
    %cst_40 = arith.constant 1.000000e+00 : f32
    %205 = vector.broadcast %cst_40 : f32 to vector<1x32xf32>
    %206 = arith.addf %205, %204 : vector<1x32xf32>
    %207 = arith.divf %205, %206 : vector<1x32xf32>
    %208 = vector.extract_strided_slice %195 {offsets = [0, 64], sizes = [1, 32], strides = [1, 1]} : vector<1x128xf32> to vector<1x32xf32>
    %209 = math.tanh %208 : vector<1x32xf32>
    %210 = vector.extract_strided_slice %195 {offsets = [0, 96], sizes = [1, 32], strides = [1, 1]} : vector<1x128xf32> to vector<1x32xf32>
    %211 = arith.negf %210 : vector<1x32xf32>
    %212 = math.exp %211 : vector<1x32xf32>
    %cst_41 = arith.constant 1.000000e+00 : f32
    %213 = vector.broadcast %cst_41 : f32 to vector<1x32xf32>
    %214 = arith.addf %213, %212 : vector<1x32xf32>
    %215 = arith.divf %213, %214 : vector<1x32xf32>
    %216 = arith.mulf %207, %187 : vector<1x32xf32>
    %217 = arith.mulf %201, %209 : vector<1x32xf32>
    %218 = arith.addf %216, %217 : vector<1x32xf32>
    %219 = math.tanh %218 : vector<1x32xf32>
    %220 = arith.mulf %215, %219 : vector<1x32xf32>
    %c7 = arith.constant 7 : index
    %221 = memref.load %arg0[%c7] : memref<8xi32, #tpu.memory_space<smem>>
    %222 = arith.index_cast %221 : i32 to index
    %c0_42 = arith.constant 0 : index
    %223 = vector.load %arg5[%222, %c0_42] : memref<28x128xf32, #tpu.memory_space<vmem>>, vector<1x128xf32>
    %cst_43 = arith.constant dense<0.000000e+00> : vector<1x128xf32>
    %224 = tpu.matmul %220, %0, %cst_43 {dimension_numbers = #tpu.dot_dimension_numbers<[1], [0], [0], [1], [0, 0, 1, 1], [], []>} : vector<1x32xf32>, vector<32x128xf32>, vector<1x128xf32> -> vector<1x128xf32>
    %225 = arith.addf %223, %224 : vector<1x128xf32>
    %226 = arith.addf %225, %1 : vector<1x128xf32>
    %227 = vector.extract_strided_slice %226 {offsets = [0, 0], sizes = [1, 32], strides = [1, 1]} : vector<1x128xf32> to vector<1x32xf32>
    %228 = arith.negf %227 : vector<1x32xf32>
    %229 = math.exp %228 : vector<1x32xf32>
    %cst_44 = arith.constant 1.000000e+00 : f32
    %230 = vector.broadcast %cst_44 : f32 to vector<1x32xf32>
    %231 = arith.addf %230, %229 : vector<1x32xf32>
    %232 = arith.divf %230, %231 : vector<1x32xf32>
    %233 = vector.extract_strided_slice %226 {offsets = [0, 32], sizes = [1, 32], strides = [1, 1]} : vector<1x128xf32> to vector<1x32xf32>
    %234 = arith.negf %233 : vector<1x32xf32>
    %235 = math.exp %234 : vector<1x32xf32>
    %cst_45 = arith.constant 1.000000e+00 : f32
    %236 = vector.broadcast %cst_45 : f32 to vector<1x32xf32>
    %237 = arith.addf %236, %235 : vector<1x32xf32>
    %238 = arith.divf %236, %237 : vector<1x32xf32>
    %239 = vector.extract_strided_slice %226 {offsets = [0, 64], sizes = [1, 32], strides = [1, 1]} : vector<1x128xf32> to vector<1x32xf32>
    %240 = math.tanh %239 : vector<1x32xf32>
    %241 = vector.extract_strided_slice %226 {offsets = [0, 96], sizes = [1, 32], strides = [1, 1]} : vector<1x128xf32> to vector<1x32xf32>
    %242 = arith.negf %241 : vector<1x32xf32>
    %243 = math.exp %242 : vector<1x32xf32>
    %cst_46 = arith.constant 1.000000e+00 : f32
    %244 = vector.broadcast %cst_46 : f32 to vector<1x32xf32>
    %245 = arith.addf %244, %243 : vector<1x32xf32>
    %246 = arith.divf %244, %245 : vector<1x32xf32>
    %247 = arith.mulf %238, %218 : vector<1x32xf32>
    %248 = arith.mulf %232, %240 : vector<1x32xf32>
    %249 = arith.addf %247, %248 : vector<1x32xf32>
    %250 = math.tanh %249 : vector<1x32xf32>
    %251 = arith.mulf %246, %250 : vector<1x32xf32>
    %c0_47 = arith.constant 0 : index
    %c0_48 = arith.constant 0 : index
    %252 = vector.load %arg13[%c0_47, %c0_48] : memref<32x16xf32, #tpu.memory_space<vmem>>, vector<32x16xf32>
    %cst_49 = arith.constant dense<0.000000e+00> : vector<1x16xf32>
    %253 = tpu.matmul %251, %252, %cst_49 {dimension_numbers = #tpu.dot_dimension_numbers<[1], [0], [0], [1], [0, 0, 1, 1], [], []>} : vector<1x32xf32>, vector<32x16xf32>, vector<1x16xf32> -> vector<1x16xf32>
    %c0_50 = arith.constant 0 : index
    %c0_51 = arith.constant 0 : index
    %254 = vector.load %arg14[%c0_50, %c0_51] : memref<1x16xf32, #tpu.memory_space<vmem>>, vector<1x16xf32>
    %255 = arith.addf %253, %254 : vector<1x16xf32>
    %c0_52 = arith.constant 0 : index
    %c0_53 = arith.constant 0 : index
    %256 = vector.load %arg15[%c0_52, %c0_53] : memref<32x16xf32, #tpu.memory_space<vmem>>, vector<32x16xf32>
    %cst_54 = arith.constant dense<0.000000e+00> : vector<1x16xf32>
    %257 = tpu.matmul %251, %256, %cst_54 {dimension_numbers = #tpu.dot_dimension_numbers<[1], [0], [0], [1], [0, 0, 1, 1], [], []>} : vector<1x32xf32>, vector<32x16xf32>, vector<1x16xf32> -> vector<1x16xf32>
    %c0_55 = arith.constant 0 : index
    %c0_56 = arith.constant 0 : index
    %258 = vector.load %arg16[%c0_55, %c0_56] : memref<1x16xf32, #tpu.memory_space<vmem>>, vector<1x16xf32>
    %259 = arith.addf %257, %258 : vector<1x16xf32>
    %c0_57 = arith.constant 0 : index
    %c0_58 = arith.constant 0 : index
    %260 = vector.load %arg22[%c0_57, %c0_58] : memref<1x16xf32, #tpu.memory_space<vmem>>, vector<1x16xf32>
    tpu.vector_store %arg22[%c0_57, %c0_58], %255 {strides = array<i32>} : memref<1x16xf32, #tpu.memory_space<vmem>>, vector<1x16xf32>,
    %c0_59 = arith.constant 0 : index
    %c0_60 = arith.constant 0 : index
    %261 = vector.load %arg23[%c0_59, %c0_60] : memref<1x16xf32, #tpu.memory_space<vmem>>, vector<1x16xf32>
    tpu.vector_store %arg23[%c0_59, %c0_60], %259 {strides = array<i32>} : memref<1x16xf32, #tpu.memory_space<vmem>>, vector<1x16xf32>,
    %cst_61 = arith.constant 5.000000e-01 : f32
    %262 = vector.broadcast %cst_61 : f32 to vector<1x16xf32>
    %263 = arith.mulf %262, %259 : vector<1x16xf32>
    %264 = math.exp %263 : vector<1x16xf32>
    %c0_62 = arith.constant 0 : index
    %c0_63 = arith.constant 0 : index
    %265 = vector.load %arg4[%c0_62, %c0_63] : memref<1x16xf32, #tpu.memory_space<vmem>>, vector<1x16xf32>
    %266 = arith.mulf %265, %264 : vector<1x16xf32>
    %267 = arith.addf %255, %266 : vector<1x16xf32>
    %c0_64 = arith.constant 0 : index
    %c0_65 = arith.constant 0 : index
    %268 = vector.load %arg17[%c0_64, %c0_65] : memref<16x32xf32, #tpu.memory_space<vmem>>, vector<16x32xf32>
    %cst_66 = arith.constant dense<0.000000e+00> : vector<1x32xf32>
    %269 = tpu.matmul %267, %268, %cst_66 {dimension_numbers = #tpu.dot_dimension_numbers<[1], [0], [0], [1], [0, 0, 1, 1], [], []>} : vector<1x16xf32>, vector<16x32xf32>, vector<1x32xf32> -> vector<1x32xf32>
    %c0_67 = arith.constant 0 : index
    %c0_68 = arith.constant 0 : index
    %270 = vector.load %arg3[%c0_67, %c0_68] : memref<1x8xf32, #tpu.memory_space<vmem>>, vector<1x8xf32>
    %c0_69 = arith.constant 0 : index
    %c0_70 = arith.constant 0 : index
    %271 = vector.load %arg18[%c0_69, %c0_70] : memref<8x32xf32, #tpu.memory_space<vmem>>, vector<8x32xf32>
    %cst_71 = arith.constant dense<0.000000e+00> : vector<1x32xf32>
    %272 = tpu.matmul %270, %271, %cst_71 {dimension_numbers = #tpu.dot_dimension_numbers<[1], [0], [0], [1], [0, 0, 1, 1], [], []>} : vector<1x8xf32>, vector<8x32xf32>, vector<1x32xf32> -> vector<1x32xf32>
    %273 = arith.addf %269, %272 : vector<1x32xf32>
    %c0_72 = arith.constant 0 : index
    %c0_73 = arith.constant 0 : index
    %274 = vector.load %arg19[%c0_72, %c0_73] : memref<1x32xf32, #tpu.memory_space<vmem>>, vector<1x32xf32>
    %275 = arith.addf %273, %274 : vector<1x32xf32>
    %cst_74 = arith.constant 0.000000e+00 : f32
    %276 = vector.broadcast %cst_74 : f32 to vector<1x32xf32>
    %c0_75 = arith.constant 0 : index
    %c0_76 = arith.constant 0 : index
    %277 = vector.load %arg9[%c0_75, %c0_76] : memref<32x128xf32, #tpu.memory_space<vmem>>, vector<32x128xf32>
    %c0_77 = arith.constant 0 : index
    %c0_78 = arith.constant 0 : index
    %278 = vector.load %arg10[%c0_77, %c0_78] : memref<1x128xf32, #tpu.memory_space<vmem>>, vector<1x128xf32>
    %c0_79 = arith.constant 0 : index
    %c0_80 = arith.constant 0 : index
    %279 = vector.load %arg11[%c0_79, %c0_80] : memref<32x128xf32, #tpu.memory_space<vmem>>, vector<32x128xf32>
    %c0_81 = arith.constant 0 : index
    %c0_82 = arith.constant 0 : index
    %280 = vector.load %arg12[%c0_81, %c0_82] : memref<1x128xf32, #tpu.memory_space<vmem>>, vector<1x128xf32>
    %281 = tpu.iota {dimensions = array<i32: 1>} : vector<1x128xi32>
    %c0_83 = arith.constant 0 : index
    %c0_84 = arith.constant 0 : index
    %282 = vector.load %arg8[%c0_83, %c0_84] : memref<28x128xf32, #tpu.memory_space<vmem>>, vector<1x128xf32>
    %cst_85 = arith.constant dense<0.000000e+00> : vector<1x128xf32>
    %283 = tpu.matmul %275, %277, %cst_85 {dimension_numbers = #tpu.dot_dimension_numbers<[1], [0], [0], [1], [0, 0, 1, 1], [], []>} : vector<1x32xf32>, vector<32x128xf32>, vector<1x128xf32> -> vector<1x128xf32>
    %284 = arith.addf %282, %283 : vector<1x128xf32>
    %285 = arith.addf %284, %278 : vector<1x128xf32>
    %286 = vector.extract_strided_slice %285 {offsets = [0, 0], sizes = [1, 32], strides = [1, 1]} : vector<1x128xf32> to vector<1x32xf32>
    %287 = arith.negf %286 : vector<1x32xf32>
    %288 = math.exp %287 : vector<1x32xf32>
    %cst_86 = arith.constant 1.000000e+00 : f32
    %289 = vector.broadcast %cst_86 : f32 to vector<1x32xf32>
    %290 = arith.addf %289, %288 : vector<1x32xf32>
    %291 = arith.divf %289, %290 : vector<1x32xf32>
    %292 = vector.extract_strided_slice %285 {offsets = [0, 32], sizes = [1, 32], strides = [1, 1]} : vector<1x128xf32> to vector<1x32xf32>
    %293 = arith.negf %292 : vector<1x32xf32>
    %294 = math.exp %293 : vector<1x32xf32>
    %cst_87 = arith.constant 1.000000e+00 : f32
    %295 = vector.broadcast %cst_87 : f32 to vector<1x32xf32>
    %296 = arith.addf %295, %294 : vector<1x32xf32>
    %297 = arith.divf %295, %296 : vector<1x32xf32>
    %298 = vector.extract_strided_slice %285 {offsets = [0, 64], sizes = [1, 32], strides = [1, 1]} : vector<1x128xf32> to vector<1x32xf32>
    %299 = math.tanh %298 : vector<1x32xf32>
    %300 = vector.extract_strided_slice %285 {offsets = [0, 96], sizes = [1, 32], strides = [1, 1]} : vector<1x128xf32> to vector<1x32xf32>
    %301 = arith.negf %300 : vector<1x32xf32>
    %302 = math.exp %301 : vector<1x32xf32>
    %cst_88 = arith.constant 1.000000e+00 : f32
    %303 = vector.broadcast %cst_88 : f32 to vector<1x32xf32>
    %304 = arith.addf %303, %302 : vector<1x32xf32>
    %305 = arith.divf %303, %304 : vector<1x32xf32>
    %306 = arith.mulf %297, %276 : vector<1x32xf32>
    %307 = arith.mulf %291, %299 : vector<1x32xf32>
    %308 = arith.addf %306, %307 : vector<1x32xf32>
    %309 = math.tanh %308 : vector<1x32xf32>
    %310 = arith.mulf %305, %309 : vector<1x32xf32>
    %cst_89 = arith.constant dense<0.000000e+00> : vector<1x128xf32>
    %311 = tpu.matmul %310, %279, %cst_89 {dimension_numbers = #tpu.dot_dimension_numbers<[1], [0], [0], [1], [0, 0, 1, 1], [], []>} : vector<1x32xf32>, vector<32x128xf32>, vector<1x128xf32> -> vector<1x128xf32>
    %312 = arith.addf %311, %280 : vector<1x128xf32>
    %cst_90 = arith.constant dense<0xFF800000> : vector<1xf32>
    %313 = vector.multi_reduction <maximumf>, %312, %cst_90 [1] : vector<1x128xf32> to vector<1xf32>
    %314 = vector.shape_cast %313 : vector<1xf32> to vector<1x1xf32>
    %315 = vector.broadcast %314 : vector<1x1xf32> to vector<1x128xf32>
    %316 = arith.subf %312, %315 : vector<1x128xf32>
    %317 = vector.broadcast %314 : vector<1x1xf32> to vector<1x128xf32>
    %318 = arith.subf %312, %317 : vector<1x128xf32>
    %319 = math.exp %318 : vector<1x128xf32>
    %cst_91 = arith.constant dense<0.000000e+00> : vector<1xf32>
    %320 = vector.multi_reduction <add>, %319, %cst_91 [1] : vector<1x128xf32> to vector<1xf32>
    %321 = vector.shape_cast %320 : vector<1xf32> to vector<1x1xf32>
    %322 = math.log %321 : vector<1x1xf32>
    %323 = vector.broadcast %322 : vector<1x1xf32> to vector<1x128xf32>
    %324 = arith.subf %316, %323 : vector<1x128xf32>
    %cst_92 = arith.constant dense<0xFF800000> : vector<1xf32>
    %325 = vector.multi_reduction <maximumf>, %324, %cst_92 [1] : vector<1x128xf32> to vector<1xf32>
    %326 = vector.shape_cast %325 : vector<1xf32> to vector<1x1xf32>
    %327 = vector.broadcast %326 : vector<1x1xf32> to vector<1x128xf32>
    %328 = arith.cmpf oeq, %324, %327 : vector<1x128xf32>
    %c128_i32 = arith.constant 128 : i32
    %329 = vector.broadcast %c128_i32 : i32 to vector<1x128xi32>
    %330 = arith.select %328, %281, %329 : vector<1x128xi1>, vector<1x128xi32>
    %cst_93 = arith.constant dense<2147483647> : vector<1xi32>
    %331 = vector.multi_reduction <minsi>, %330, %cst_93 [1] : vector<1x128xi32> to vector<1xi32>
    %332 = vector.shape_cast %331 : vector<1xi32> to vector<1x1xi32>
    %c0_94 = arith.constant 0 : index
    %333 = memref.load %arg0[%c0_94] : memref<8xi32, #tpu.memory_space<smem>>
    %334 = arith.index_cast %333 : i32 to index
    %c0_95 = arith.constant 0 : index
    %335 = vector.load %arg8[%334, %c0_95] : memref<28x128xf32, #tpu.memory_space<vmem>>, vector<1x128xf32>
    %cst_96 = arith.constant dense<0.000000e+00> : vector<1x128xf32>
    %336 = tpu.matmul %310, %277, %cst_96 {dimension_numbers = #tpu.dot_dimension_numbers<[1], [0], [0], [1], [0, 0, 1, 1], [], []>} : vector<1x32xf32>, vector<32x128xf32>, vector<1x128xf32> -> vector<1x128xf32>
    %337 = arith.addf %335, %336 : vector<1x128xf32>
    %338 = arith.addf %337, %278 : vector<1x128xf32>
    %339 = vector.extract_strided_slice %338 {offsets = [0, 0], sizes = [1, 32], strides = [1, 1]} : vector<1x128xf32> to vector<1x32xf32>
    %340 = arith.negf %339 : vector<1x32xf32>
    %341 = math.exp %340 : vector<1x32xf32>
    %cst_97 = arith.constant 1.000000e+00 : f32
    %342 = vector.broadcast %cst_97 : f32 to vector<1x32xf32>
    %343 = arith.addf %342, %341 : vector<1x32xf32>
    %344 = arith.divf %342, %343 : vector<1x32xf32>
    %345 = vector.extract_strided_slice %338 {offsets = [0, 32], sizes = [1, 32], strides = [1, 1]} : vector<1x128xf32> to vector<1x32xf32>
    %346 = arith.negf %345 : vector<1x32xf32>
    %347 = math.exp %346 : vector<1x32xf32>
    %cst_98 = arith.constant 1.000000e+00 : f32
    %348 = vector.broadcast %cst_98 : f32 to vector<1x32xf32>
    %349 = arith.addf %348, %347 : vector<1x32xf32>
    %350 = arith.divf %348, %349 : vector<1x32xf32>
    %351 = vector.extract_strided_slice %338 {offsets = [0, 64], sizes = [1, 32], strides = [1, 1]} : vector<1x128xf32> to vector<1x32xf32>
    %352 = math.tanh %351 : vector<1x32xf32>
    %353 = vector.extract_strided_slice %338 {offsets = [0, 96], sizes = [1, 32], strides = [1, 1]} : vector<1x128xf32> to vector<1x32xf32>
    %354 = arith.negf %353 : vector<1x32xf32>
    %355 = math.exp %354 : vector<1x32xf32>
    %cst_99 = arith.constant 1.000000e+00 : f32
    %356 = vector.broadcast %cst_99 : f32 to vector<1x32xf32>
    %357 = arith.addf %356, %355 : vector<1x32xf32>
    %358 = arith.divf %356, %357 : vector<1x32xf32>
    %359 = arith.mulf %350, %308 : vector<1x32xf32>
    %360 = arith.mulf %344, %352 : vector<1x32xf32>
    %361 = arith.addf %359, %360 : vector<1x32xf32>
    %362 = math.tanh %361 : vector<1x32xf32>
    %363 = arith.mulf %358, %362 : vector<1x32xf32>
    %cst_100 = arith.constant dense<0.000000e+00> : vector<1x128xf32>
    %364 = tpu.matmul %363, %279, %cst_100 {dimension_numbers = #tpu.dot_dimension_numbers<[1], [0], [0], [1], [0, 0, 1, 1], [], []>} : vector<1x32xf32>, vector<32x128xf32>, vector<1x128xf32> -> vector<1x128xf32>
    %365 = arith.addf %364, %280 : vector<1x128xf32>
    %cst_101 = arith.constant dense<0xFF800000> : vector<1xf32>
    %366 = vector.multi_reduction <maximumf>, %365, %cst_101 [1] : vector<1x128xf32> to vector<1xf32>
    %367 = vector.shape_cast %366 : vector<1xf32> to vector<1x1xf32>
    %368 = vector.broadcast %367 : vector<1x1xf32> to vector<1x128xf32>
    %369 = arith.subf %365, %368 : vector<1x128xf32>
    %370 = vector.broadcast %367 : vector<1x1xf32> to vector<1x128xf32>
    %371 = arith.subf %365, %370 : vector<1x128xf32>
    %372 = math.exp %371 : vector<1x128xf32>
    %cst_102 = arith.constant dense<0.000000e+00> : vector<1xf32>
    %373 = vector.multi_reduction <add>, %372, %cst_102 [1] : vector<1x128xf32> to vector<1xf32>
    %374 = vector.shape_cast %373 : vector<1xf32> to vector<1x1xf32>
    %375 = math.log %374 : vector<1x1xf32>
    %376 = vector.broadcast %375 : vector<1x1xf32> to vector<1x128xf32>
    %377 = arith.subf %369, %376 : vector<1x128xf32>
    %cst_103 = arith.constant dense<0xFF800000> : vector<1xf32>
    %378 = vector.multi_reduction <maximumf>, %377, %cst_103 [1] : vector<1x128xf32> to vector<1xf32>
    %379 = vector.shape_cast %378 : vector<1xf32> to vector<1x1xf32>
    %380 = vector.broadcast %379 : vector<1x1xf32> to vector<1x128xf32>
    %381 = arith.cmpf oeq, %377, %380 : vector<1x128xf32>
    %c128_i32_104 = arith.constant 128 : i32
    %382 = vector.broadcast %c128_i32_104 : i32 to vector<1x128xi32>
    %383 = arith.select %381, %281, %382 : vector<1x128xi1>, vector<1x128xi32>
    %cst_105 = arith.constant dense<2147483647> : vector<1xi32>
    %384 = vector.multi_reduction <minsi>, %383, %cst_105 [1] : vector<1x128xi32> to vector<1xi32>
    %385 = vector.shape_cast %384 : vector<1xi32> to vector<1x1xi32>
    %c1_106 = arith.constant 1 : index
    %386 = memref.load %arg0[%c1_106] : memref<8xi32, #tpu.memory_space<smem>>
    %387 = arith.index_cast %386 : i32 to index
    %c0_107 = arith.constant 0 : index
    %388 = vector.load %arg8[%387, %c0_107] : memref<28x128xf32, #tpu.memory_space<vmem>>, vector<1x128xf32>
    %cst_108 = arith.constant dense<0.000000e+00> : vector<1x128xf32>
    %389 = tpu.matmul %363, %277, %cst_108 {dimension_numbers = #tpu.dot_dimension_numbers<[1], [0], [0], [1], [0, 0, 1, 1], [], []>} : vector<1x32xf32>, vector<32x128xf32>, vector<1x128xf32> -> vector<1x128xf32>
    %390 = arith.addf %388, %389 : vector<1x128xf32>
    %391 = arith.addf %390, %278 : vector<1x128xf32>
    %392 = vector.extract_strided_slice %391 {offsets = [0, 0], sizes = [1, 32], strides = [1, 1]} : vector<1x128xf32> to vector<1x32xf32>
    %393 = arith.negf %392 : vector<1x32xf32>
    %394 = math.exp %393 : vector<1x32xf32>
    %cst_109 = arith.constant 1.000000e+00 : f32
    %395 = vector.broadcast %cst_109 : f32 to vector<1x32xf32>
    %396 = arith.addf %395, %394 : vector<1x32xf32>
    %397 = arith.divf %395, %396 : vector<1x32xf32>
    %398 = vector.extract_strided_slice %391 {offsets = [0, 32], sizes = [1, 32], strides = [1, 1]} : vector<1x128xf32> to vector<1x32xf32>
    %399 = arith.negf %398 : vector<1x32xf32>
    %400 = math.exp %399 : vector<1x32xf32>
    %cst_110 = arith.constant 1.000000e+00 : f32
    %401 = vector.broadcast %cst_110 : f32 to vector<1x32xf32>
    %402 = arith.addf %401, %400 : vector<1x32xf32>
    %403 = arith.divf %401, %402 : vector<1x32xf32>
    %404 = vector.extract_strided_slice %391 {offsets = [0, 64], sizes = [1, 32], strides = [1, 1]} : vector<1x128xf32> to vector<1x32xf32>
    %405 = math.tanh %404 : vector<1x32xf32>
    %406 = vector.extract_strided_slice %391 {offsets = [0, 96], sizes = [1, 32], strides = [1, 1]} : vector<1x128xf32> to vector<1x32xf32>
    %407 = arith.negf %406 : vector<1x32xf32>
    %408 = math.exp %407 : vector<1x32xf32>
    %cst_111 = arith.constant 1.000000e+00 : f32
    %409 = vector.broadcast %cst_111 : f32 to vector<1x32xf32>
    %410 = arith.addf %409, %408 : vector<1x32xf32>
    %411 = arith.divf %409, %410 : vector<1x32xf32>
    %412 = arith.mulf %403, %361 : vector<1x32xf32>
    %413 = arith.mulf %397, %405 : vector<1x32xf32>
    %414 = arith.addf %412, %413 : vector<1x32xf32>
    %415 = math.tanh %414 : vector<1x32xf32>
    %416 = arith.mulf %411, %415 : vector<1x32xf32>
    %cst_112 = arith.constant dense<0.000000e+00> : vector<1x128xf32>
    %417 = tpu.matmul %416, %279, %cst_112 {dimension_numbers = #tpu.dot_dimension_numbers<[1], [0], [0], [1], [0, 0, 1, 1], [], []>} : vector<1x32xf32>, vector<32x128xf32>, vector<1x128xf32> -> vector<1x128xf32>
    %418 = arith.addf %417, %280 : vector<1x128xf32>
    %cst_113 = arith.constant dense<0xFF800000> : vector<1xf32>
    %419 = vector.multi_reduction <maximumf>, %418, %cst_113 [1] : vector<1x128xf32> to vector<1xf32>
    %420 = vector.shape_cast %419 : vector<1xf32> to vector<1x1xf32>
    %421 = vector.broadcast %420 : vector<1x1xf32> to vector<1x128xf32>
    %422 = arith.subf %418, %421 : vector<1x128xf32>
    %423 = vector.broadcast %420 : vector<1x1xf32> to vector<1x128xf32>
    %424 = arith.subf %418, %423 : vector<1x128xf32>
    %425 = math.exp %424 : vector<1x128xf32>
    %cst_114 = arith.constant dense<0.000000e+00> : vector<1xf32>
    %426 = vector.multi_reduction <add>, %425, %cst_114 [1] : vector<1x128xf32> to vector<1xf32>
    %427 = vector.shape_cast %426 : vector<1xf32> to vector<1x1xf32>
    %428 = math.log %427 : vector<1x1xf32>
    %429 = vector.broadcast %428 : vector<1x1xf32> to vector<1x128xf32>
    %430 = arith.subf %422, %429 : vector<1x128xf32>
    %cst_115 = arith.constant dense<0xFF800000> : vector<1xf32>
    %431 = vector.multi_reduction <maximumf>, %430, %cst_115 [1] : vector<1x128xf32> to vector<1xf32>
    %432 = vector.shape_cast %431 : vector<1xf32> to vector<1x1xf32>
    %433 = vector.broadcast %432 : vector<1x1xf32> to vector<1x128xf32>
    %434 = arith.cmpf oeq, %430, %433 : vector<1x128xf32>
    %c128_i32_116 = arith.constant 128 : i32
    %435 = vector.broadcast %c128_i32_116 : i32 to vector<1x128xi32>
    %436 = arith.select %434, %281, %435 : vector<1x128xi1>, vector<1x128xi32>
    %cst_117 = arith.constant dense<2147483647> : vector<1xi32>
    %437 = vector.multi_reduction <minsi>, %436, %cst_117 [1] : vector<1x128xi32> to vector<1xi32>
    %438 = vector.shape_cast %437 : vector<1xi32> to vector<1x1xi32>
    %c2_118 = arith.constant 2 : index
    %439 = memref.load %arg0[%c2_118] : memref<8xi32, #tpu.memory_space<smem>>
    %440 = arith.index_cast %439 : i32 to index
    %c0_119 = arith.constant 0 : index
    %441 = vector.load %arg8[%440, %c0_119] : memref<28x128xf32, #tpu.memory_space<vmem>>, vector<1x128xf32>
    %cst_120 = arith.constant dense<0.000000e+00> : vector<1x128xf32>
    %442 = tpu.matmul %416, %277, %cst_120 {dimension_numbers = #tpu.dot_dimension_numbers<[1], [0], [0], [1], [0, 0, 1, 1], [], []>} : vector<1x32xf32>, vector<32x128xf32>, vector<1x128xf32> -> vector<1x128xf32>
    %443 = arith.addf %441, %442 : vector<1x128xf32>
    %444 = arith.addf %443, %278 : vector<1x128xf32>
    %445 = vector.extract_strided_slice %444 {offsets = [0, 0], sizes = [1, 32], strides = [1, 1]} : vector<1x128xf32> to vector<1x32xf32>
    %446 = arith.negf %445 : vector<1x32xf32>
    %447 = math.exp %446 : vector<1x32xf32>
    %cst_121 = arith.constant 1.000000e+00 : f32
    %448 = vector.broadcast %cst_121 : f32 to vector<1x32xf32>
    %449 = arith.addf %448, %447 : vector<1x32xf32>
    %450 = arith.divf %448, %449 : vector<1x32xf32>
    %451 = vector.extract_strided_slice %444 {offsets = [0, 32], sizes = [1, 32], strides = [1, 1]} : vector<1x128xf32> to vector<1x32xf32>
    %452 = arith.negf %451 : vector<1x32xf32>
    %453 = math.exp %452 : vector<1x32xf32>
    %cst_122 = arith.constant 1.000000e+00 : f32
    %454 = vector.broadcast %cst_122 : f32 to vector<1x32xf32>
    %455 = arith.addf %454, %453 : vector<1x32xf32>
    %456 = arith.divf %454, %455 : vector<1x32xf32>
    %457 = vector.extract_strided_slice %444 {offsets = [0, 64], sizes = [1, 32], strides = [1, 1]} : vector<1x128xf32> to vector<1x32xf32>
    %458 = math.tanh %457 : vector<1x32xf32>
    %459 = vector.extract_strided_slice %444 {offsets = [0, 96], sizes = [1, 32], strides = [1, 1]} : vector<1x128xf32> to vector<1x32xf32>
    %460 = arith.negf %459 : vector<1x32xf32>
    %461 = math.exp %460 : vector<1x32xf32>
    %cst_123 = arith.constant 1.000000e+00 : f32
    %462 = vector.broadcast %cst_123 : f32 to vector<1x32xf32>
    %463 = arith.addf %462, %461 : vector<1x32xf32>
    %464 = arith.divf %462, %463 : vector<1x32xf32>
    %465 = arith.mulf %456, %414 : vector<1x32xf32>
    %466 = arith.mulf %450, %458 : vector<1x32xf32>
    %467 = arith.addf %465, %466 : vector<1x32xf32>
    %468 = math.tanh %467 : vector<1x32xf32>
    %469 = arith.mulf %464, %468 : vector<1x32xf32>
    %cst_124 = arith.constant dense<0.000000e+00> : vector<1x128xf32>
    %470 = tpu.matmul %469, %279, %cst_124 {dimension_numbers = #tpu.dot_dimension_numbers<[1], [0], [0], [1], [0, 0, 1, 1], [], []>} : vector<1x32xf32>, vector<32x128xf32>, vector<1x128xf32> -> vector<1x128xf32>
    %471 = arith.addf %470, %280 : vector<1x128xf32>
    %cst_125 = arith.constant dense<0xFF800000> : vector<1xf32>
    %472 = vector.multi_reduction <maximumf>, %471, %cst_125 [1] : vector<1x128xf32> to vector<1xf32>
    %473 = vector.shape_cast %472 : vector<1xf32> to vector<1x1xf32>
    %474 = vector.broadcast %473 : vector<1x1xf32> to vector<1x128xf32>
    %475 = arith.subf %471, %474 : vector<1x128xf32>
    %476 = vector.broadcast %473 : vector<1x1xf32> to vector<1x128xf32>
    %477 = arith.subf %471, %476 : vector<1x128xf32>
    %478 = math.exp %477 : vector<1x128xf32>
    %cst_126 = arith.constant dense<0.000000e+00> : vector<1xf32>
    %479 = vector.multi_reduction <add>, %478, %cst_126 [1] : vector<1x128xf32> to vector<1xf32>
    %480 = vector.shape_cast %479 : vector<1xf32> to vector<1x1xf32>
    %481 = math.log %480 : vector<1x1xf32>
    %482 = vector.broadcast %481 : vector<1x1xf32> to vector<1x128xf32>
    %483 = arith.subf %475, %482 : vector<1x128xf32>
    %cst_127 = arith.constant dense<0xFF800000> : vector<1xf32>
    %484 = vector.multi_reduction <maximumf>, %483, %cst_127 [1] : vector<1x128xf32> to vector<1xf32>
    %485 = vector.shape_cast %484 : vector<1xf32> to vector<1x1xf32>
    %486 = vector.broadcast %485 : vector<1x1xf32> to vector<1x128xf32>
    %487 = arith.cmpf oeq, %483, %486 : vector<1x128xf32>
    %c128_i32_128 = arith.constant 128 : i32
    %488 = vector.broadcast %c128_i32_128 : i32 to vector<1x128xi32>
    %489 = arith.select %487, %281, %488 : vector<1x128xi1>, vector<1x128xi32>
    %cst_129 = arith.constant dense<2147483647> : vector<1xi32>
    %490 = vector.multi_reduction <minsi>, %489, %cst_129 [1] : vector<1x128xi32> to vector<1xi32>
    %491 = vector.shape_cast %490 : vector<1xi32> to vector<1x1xi32>
    %c3_130 = arith.constant 3 : index
    %492 = memref.load %arg0[%c3_130] : memref<8xi32, #tpu.memory_space<smem>>
    %493 = arith.index_cast %492 : i32 to index
    %c0_131 = arith.constant 0 : index
    %494 = vector.load %arg8[%493, %c0_131] : memref<28x128xf32, #tpu.memory_space<vmem>>, vector<1x128xf32>
    %cst_132 = arith.constant dense<0.000000e+00> : vector<1x128xf32>
    %495 = tpu.matmul %469, %277, %cst_132 {dimension_numbers = #tpu.dot_dimension_numbers<[1], [0], [0], [1], [0, 0, 1, 1], [], []>} : vector<1x32xf32>, vector<32x128xf32>, vector<1x128xf32> -> vector<1x128xf32>
    %496 = arith.addf %494, %495 : vector<1x128xf32>
    %497 = arith.addf %496, %278 : vector<1x128xf32>
    %498 = vector.extract_strided_slice %497 {offsets = [0, 0], sizes = [1, 32], strides = [1, 1]} : vector<1x128xf32> to vector<1x32xf32>
    %499 = arith.negf %498 : vector<1x32xf32>
    %500 = math.exp %499 : vector<1x32xf32>
    %cst_133 = arith.constant 1.000000e+00 : f32
    %501 = vector.broadcast %cst_133 : f32 to vector<1x32xf32>
    %502 = arith.addf %501, %500 : vector<1x32xf32>
    %503 = arith.divf %501, %502 : vector<1x32xf32>
    %504 = vector.extract_strided_slice %497 {offsets = [0, 32], sizes = [1, 32], strides = [1, 1]} : vector<1x128xf32> to vector<1x32xf32>
    %505 = arith.negf %504 : vector<1x32xf32>
    %506 = math.exp %505 : vector<1x32xf32>
    %cst_134 = arith.constant 1.000000e+00 : f32
    %507 = vector.broadcast %cst_134 : f32 to vector<1x32xf32>
    %508 = arith.addf %507, %506 : vector<1x32xf32>
    %509 = arith.divf %507, %508 : vector<1x32xf32>
    %510 = vector.extract_strided_slice %497 {offsets = [0, 64], sizes = [1, 32], strides = [1, 1]} : vector<1x128xf32> to vector<1x32xf32>
    %511 = math.tanh %510 : vector<1x32xf32>
    %512 = vector.extract_strided_slice %497 {offsets = [0, 96], sizes = [1, 32], strides = [1, 1]} : vector<1x128xf32> to vector<1x32xf32>
    %513 = arith.negf %512 : vector<1x32xf32>
    %514 = math.exp %513 : vector<1x32xf32>
    %cst_135 = arith.constant 1.000000e+00 : f32
    %515 = vector.broadcast %cst_135 : f32 to vector<1x32xf32>
    %516 = arith.addf %515, %514 : vector<1x32xf32>
    %517 = arith.divf %515, %516 : vector<1x32xf32>
    %518 = arith.mulf %509, %467 : vector<1x32xf32>
    %519 = arith.mulf %503, %511 : vector<1x32xf32>
    %520 = arith.addf %518, %519 : vector<1x32xf32>
    %521 = math.tanh %520 : vector<1x32xf32>
    %522 = arith.mulf %517, %521 : vector<1x32xf32>
    %cst_136 = arith.constant dense<0.000000e+00> : vector<1x128xf32>
    %523 = tpu.matmul %522, %279, %cst_136 {dimension_numbers = #tpu.dot_dimension_numbers<[1], [0], [0], [1], [0, 0, 1, 1], [], []>} : vector<1x32xf32>, vector<32x128xf32>, vector<1x128xf32> -> vector<1x128xf32>
    %524 = arith.addf %523, %280 : vector<1x128xf32>
    %cst_137 = arith.constant dense<0xFF800000> : vector<1xf32>
    %525 = vector.multi_reduction <maximumf>, %524, %cst_137 [1] : vector<1x128xf32> to vector<1xf32>
    %526 = vector.shape_cast %525 : vector<1xf32> to vector<1x1xf32>
    %527 = vector.broadcast %526 : vector<1x1xf32> to vector<1x128xf32>
    %528 = arith.subf %524, %527 : vector<1x128xf32>
    %529 = vector.broadcast %526 : vector<1x1xf32> to vector<1x128xf32>
    %530 = arith.subf %524, %529 : vector<1x128xf32>
    %531 = math.exp %530 : vector<1x128xf32>
    %cst_138 = arith.constant dense<0.000000e+00> : vector<1xf32>
    %532 = vector.multi_reduction <add>, %531, %cst_138 [1] : vector<1x128xf32> to vector<1xf32>
    %533 = vector.shape_cast %532 : vector<1xf32> to vector<1x1xf32>
    %534 = math.log %533 : vector<1x1xf32>
    %535 = vector.broadcast %534 : vector<1x1xf32> to vector<1x128xf32>
    %536 = arith.subf %528, %535 : vector<1x128xf32>
    %cst_139 = arith.constant dense<0xFF800000> : vector<1xf32>
    %537 = vector.multi_reduction <maximumf>, %536, %cst_139 [1] : vector<1x128xf32> to vector<1xf32>
    %538 = vector.shape_cast %537 : vector<1xf32> to vector<1x1xf32>
    %539 = vector.broadcast %538 : vector<1x1xf32> to vector<1x128xf32>
    %540 = arith.cmpf oeq, %536, %539 : vector<1x128xf32>
    %c128_i32_140 = arith.constant 128 : i32
    %541 = vector.broadcast %c128_i32_140 : i32 to vector<1x128xi32>
    %542 = arith.select %540, %281, %541 : vector<1x128xi1>, vector<1x128xi32>
    %cst_141 = arith.constant dense<2147483647> : vector<1xi32>
    %543 = vector.multi_reduction <minsi>, %542, %cst_141 [1] : vector<1x128xi32> to vector<1xi32>
    %544 = vector.shape_cast %543 : vector<1xi32> to vector<1x1xi32>
    %c4_142 = arith.constant 4 : index
    %545 = memref.load %arg0[%c4_142] : memref<8xi32, #tpu.memory_space<smem>>
    %546 = arith.index_cast %545 : i32 to index
    %c0_143 = arith.constant 0 : index
    %547 = vector.load %arg8[%546, %c0_143] : memref<28x128xf32, #tpu.memory_space<vmem>>, vector<1x128xf32>
    %cst_144 = arith.constant dense<0.000000e+00> : vector<1x128xf32>
    %548 = tpu.matmul %522, %277, %cst_144 {dimension_numbers = #tpu.dot_dimension_numbers<[1], [0], [0], [1], [0, 0, 1, 1], [], []>} : vector<1x32xf32>, vector<32x128xf32>, vector<1x128xf32> -> vector<1x128xf32>
    %549 = arith.addf %547, %548 : vector<1x128xf32>
    %550 = arith.addf %549, %278 : vector<1x128xf32>
    %551 = vector.extract_strided_slice %550 {offsets = [0, 0], sizes = [1, 32], strides = [1, 1]} : vector<1x128xf32> to vector<1x32xf32>
    %552 = arith.negf %551 : vector<1x32xf32>
    %553 = math.exp %552 : vector<1x32xf32>
    %cst_145 = arith.constant 1.000000e+00 : f32
    %554 = vector.broadcast %cst_145 : f32 to vector<1x32xf32>
    %555 = arith.addf %554, %553 : vector<1x32xf32>
    %556 = arith.divf %554, %555 : vector<1x32xf32>
    %557 = vector.extract_strided_slice %550 {offsets = [0, 32], sizes = [1, 32], strides = [1, 1]} : vector<1x128xf32> to vector<1x32xf32>
    %558 = arith.negf %557 : vector<1x32xf32>
    %559 = math.exp %558 : vector<1x32xf32>
    %cst_146 = arith.constant 1.000000e+00 : f32
    %560 = vector.broadcast %cst_146 : f32 to vector<1x32xf32>
    %561 = arith.addf %560, %559 : vector<1x32xf32>
    %562 = arith.divf %560, %561 : vector<1x32xf32>
    %563 = vector.extract_strided_slice %550 {offsets = [0, 64], sizes = [1, 32], strides = [1, 1]} : vector<1x128xf32> to vector<1x32xf32>
    %564 = math.tanh %563 : vector<1x32xf32>
    %565 = vector.extract_strided_slice %550 {offsets = [0, 96], sizes = [1, 32], strides = [1, 1]} : vector<1x128xf32> to vector<1x32xf32>
    %566 = arith.negf %565 : vector<1x32xf32>
    %567 = math.exp %566 : vector<1x32xf32>
    %cst_147 = arith.constant 1.000000e+00 : f32
    %568 = vector.broadcast %cst_147 : f32 to vector<1x32xf32>
    %569 = arith.addf %568, %567 : vector<1x32xf32>
    %570 = arith.divf %568, %569 : vector<1x32xf32>
    %571 = arith.mulf %562, %520 : vector<1x32xf32>
    %572 = arith.mulf %556, %564 : vector<1x32xf32>
    %573 = arith.addf %571, %572 : vector<1x32xf32>
    %574 = math.tanh %573 : vector<1x32xf32>
    %575 = arith.mulf %570, %574 : vector<1x32xf32>
    %cst_148 = arith.constant dense<0.000000e+00> : vector<1x128xf32>
    %576 = tpu.matmul %575, %279, %cst_148 {dimension_numbers = #tpu.dot_dimension_numbers<[1], [0], [0], [1], [0, 0, 1, 1], [], []>} : vector<1x32xf32>, vector<32x128xf32>, vector<1x128xf32> -> vector<1x128xf32>
    %577 = arith.addf %576, %280 : vector<1x128xf32>
    %cst_149 = arith.constant dense<0xFF800000> : vector<1xf32>
    %578 = vector.multi_reduction <maximumf>, %577, %cst_149 [1] : vector<1x128xf32> to vector<1xf32>
    %579 = vector.shape_cast %578 : vector<1xf32> to vector<1x1xf32>
    %580 = vector.broadcast %579 : vector<1x1xf32> to vector<1x128xf32>
    %581 = arith.subf %577, %580 : vector<1x128xf32>
    %582 = vector.broadcast %579 : vector<1x1xf32> to vector<1x128xf32>
    %583 = arith.subf %577, %582 : vector<1x128xf32>
    %584 = math.exp %583 : vector<1x128xf32>
    %cst_150 = arith.constant dense<0.000000e+00> : vector<1xf32>
    %585 = vector.multi_reduction <add>, %584, %cst_150 [1] : vector<1x128xf32> to vector<1xf32>
    %586 = vector.shape_cast %585 : vector<1xf32> to vector<1x1xf32>
    %587 = math.log %586 : vector<1x1xf32>
    %588 = vector.broadcast %587 : vector<1x1xf32> to vector<1x128xf32>
    %589 = arith.subf %581, %588 : vector<1x128xf32>
    %cst_151 = arith.constant dense<0xFF800000> : vector<1xf32>
    %590 = vector.multi_reduction <maximumf>, %589, %cst_151 [1] : vector<1x128xf32> to vector<1xf32>
    %591 = vector.shape_cast %590 : vector<1xf32> to vector<1x1xf32>
    %592 = vector.broadcast %591 : vector<1x1xf32> to vector<1x128xf32>
    %593 = arith.cmpf oeq, %589, %592 : vector<1x128xf32>
    %c128_i32_152 = arith.constant 128 : i32
    %594 = vector.broadcast %c128_i32_152 : i32 to vector<1x128xi32>
    %595 = arith.select %593, %281, %594 : vector<1x128xi1>, vector<1x128xi32>
    %cst_153 = arith.constant dense<2147483647> : vector<1xi32>
    %596 = vector.multi_reduction <minsi>, %595, %cst_153 [1] : vector<1x128xi32> to vector<1xi32>
    %597 = vector.shape_cast %596 : vector<1xi32> to vector<1x1xi32>
    %c5_154 = arith.constant 5 : index
    %598 = memref.load %arg0[%c5_154] : memref<8xi32, #tpu.memory_space<smem>>
    %599 = arith.index_cast %598 : i32 to index
    %c0_155 = arith.constant 0 : index
    %600 = vector.load %arg8[%599, %c0_155] : memref<28x128xf32, #tpu.memory_space<vmem>>, vector<1x128xf32>
    %cst_156 = arith.constant dense<0.000000e+00> : vector<1x128xf32>
    %601 = tpu.matmul %575, %277, %cst_156 {dimension_numbers = #tpu.dot_dimension_numbers<[1], [0], [0], [1], [0, 0, 1, 1], [], []>} : vector<1x32xf32>, vector<32x128xf32>, vector<1x128xf32> -> vector<1x128xf32>
    %602 = arith.addf %600, %601 : vector<1x128xf32>
    %603 = arith.addf %602, %278 : vector<1x128xf32>
    %604 = vector.extract_strided_slice %603 {offsets = [0, 0], sizes = [1, 32], strides = [1, 1]} : vector<1x128xf32> to vector<1x32xf32>
    %605 = arith.negf %604 : vector<1x32xf32>
    %606 = math.exp %605 : vector<1x32xf32>
    %cst_157 = arith.constant 1.000000e+00 : f32
    %607 = vector.broadcast %cst_157 : f32 to vector<1x32xf32>
    %608 = arith.addf %607, %606 : vector<1x32xf32>
    %609 = arith.divf %607, %608 : vector<1x32xf32>
    %610 = vector.extract_strided_slice %603 {offsets = [0, 32], sizes = [1, 32], strides = [1, 1]} : vector<1x128xf32> to vector<1x32xf32>
    %611 = arith.negf %610 : vector<1x32xf32>
    %612 = math.exp %611 : vector<1x32xf32>
    %cst_158 = arith.constant 1.000000e+00 : f32
    %613 = vector.broadcast %cst_158 : f32 to vector<1x32xf32>
    %614 = arith.addf %613, %612 : vector<1x32xf32>
    %615 = arith.divf %613, %614 : vector<1x32xf32>
    %616 = vector.extract_strided_slice %603 {offsets = [0, 64], sizes = [1, 32], strides = [1, 1]} : vector<1x128xf32> to vector<1x32xf32>
    %617 = math.tanh %616 : vector<1x32xf32>
    %618 = vector.extract_strided_slice %603 {offsets = [0, 96], sizes = [1, 32], strides = [1, 1]} : vector<1x128xf32> to vector<1x32xf32>
    %619 = arith.negf %618 : vector<1x32xf32>
    %620 = math.exp %619 : vector<1x32xf32>
    %cst_159 = arith.constant 1.000000e+00 : f32
    %621 = vector.broadcast %cst_159 : f32 to vector<1x32xf32>
    %622 = arith.addf %621, %620 : vector<1x32xf32>
    %623 = arith.divf %621, %622 : vector<1x32xf32>
    %624 = arith.mulf %615, %573 : vector<1x32xf32>
    %625 = arith.mulf %609, %617 : vector<1x32xf32>
    %626 = arith.addf %624, %625 : vector<1x32xf32>
    %627 = math.tanh %626 : vector<1x32xf32>
    %628 = arith.mulf %623, %627 : vector<1x32xf32>
    %cst_160 = arith.constant dense<0.000000e+00> : vector<1x128xf32>
    %629 = tpu.matmul %628, %279, %cst_160 {dimension_numbers = #tpu.dot_dimension_numbers<[1], [0], [0], [1], [0, 0, 1, 1], [], []>} : vector<1x32xf32>, vector<32x128xf32>, vector<1x128xf32> -> vector<1x128xf32>
    %630 = arith.addf %629, %280 : vector<1x128xf32>
    %cst_161 = arith.constant dense<0xFF800000> : vector<1xf32>
    %631 = vector.multi_reduction <maximumf>, %630, %cst_161 [1] : vector<1x128xf32> to vector<1xf32>
    %632 = vector.shape_cast %631 : vector<1xf32> to vector<1x1xf32>
    %633 = vector.broadcast %632 : vector<1x1xf32> to vector<1x128xf32>
    %634 = arith.subf %630, %633 : vector<1x128xf32>
    %635 = vector.broadcast %632 : vector<1x1xf32> to vector<1x128xf32>
    %636 = arith.subf %630, %635 : vector<1x128xf32>
    %637 = math.exp %636 : vector<1x128xf32>
    %cst_162 = arith.constant dense<0.000000e+00> : vector<1xf32>
    %638 = vector.multi_reduction <add>, %637, %cst_162 [1] : vector<1x128xf32> to vector<1xf32>
    %639 = vector.shape_cast %638 : vector<1xf32> to vector<1x1xf32>
    %640 = math.log %639 : vector<1x1xf32>
    %641 = vector.broadcast %640 : vector<1x1xf32> to vector<1x128xf32>
    %642 = arith.subf %634, %641 : vector<1x128xf32>
    %cst_163 = arith.constant dense<0xFF800000> : vector<1xf32>
    %643 = vector.multi_reduction <maximumf>, %642, %cst_163 [1] : vector<1x128xf32> to vector<1xf32>
    %644 = vector.shape_cast %643 : vector<1xf32> to vector<1x1xf32>
    %645 = vector.broadcast %644 : vector<1x1xf32> to vector<1x128xf32>
    %646 = arith.cmpf oeq, %642, %645 : vector<1x128xf32>
    %c128_i32_164 = arith.constant 128 : i32
    %647 = vector.broadcast %c128_i32_164 : i32 to vector<1x128xi32>
    %648 = arith.select %646, %281, %647 : vector<1x128xi1>, vector<1x128xi32>
    %cst_165 = arith.constant dense<2147483647> : vector<1xi32>
    %649 = vector.multi_reduction <minsi>, %648, %cst_165 [1] : vector<1x128xi32> to vector<1xi32>
    %650 = vector.shape_cast %649 : vector<1xi32> to vector<1x1xi32>
    %c6_166 = arith.constant 6 : index
    %651 = memref.load %arg0[%c6_166] : memref<8xi32, #tpu.memory_space<smem>>
    %652 = arith.index_cast %651 : i32 to index
    %c0_167 = arith.constant 0 : index
    %653 = vector.load %arg8[%652, %c0_167] : memref<28x128xf32, #tpu.memory_space<vmem>>, vector<1x128xf32>
    %cst_168 = arith.constant dense<0.000000e+00> : vector<1x128xf32>
    %654 = tpu.matmul %628, %277, %cst_168 {dimension_numbers = #tpu.dot_dimension_numbers<[1], [0], [0], [1], [0, 0, 1, 1], [], []>} : vector<1x32xf32>, vector<32x128xf32>, vector<1x128xf32> -> vector<1x128xf32>
    %655 = arith.addf %653, %654 : vector<1x128xf32>
    %656 = arith.addf %655, %278 : vector<1x128xf32>
    %657 = vector.extract_strided_slice %656 {offsets = [0, 0], sizes = [1, 32], strides = [1, 1]} : vector<1x128xf32> to vector<1x32xf32>
    %658 = arith.negf %657 : vector<1x32xf32>
    %659 = math.exp %658 : vector<1x32xf32>
    %cst_169 = arith.constant 1.000000e+00 : f32
    %660 = vector.broadcast %cst_169 : f32 to vector<1x32xf32>
    %661 = arith.addf %660, %659 : vector<1x32xf32>
    %662 = arith.divf %660, %661 : vector<1x32xf32>
    %663 = vector.extract_strided_slice %656 {offsets = [0, 32], sizes = [1, 32], strides = [1, 1]} : vector<1x128xf32> to vector<1x32xf32>
    %664 = arith.negf %663 : vector<1x32xf32>
    %665 = math.exp %664 : vector<1x32xf32>
    %cst_170 = arith.constant 1.000000e+00 : f32
    %666 = vector.broadcast %cst_170 : f32 to vector<1x32xf32>
    %667 = arith.addf %666, %665 : vector<1x32xf32>
    %668 = arith.divf %666, %667 : vector<1x32xf32>
    %669 = vector.extract_strided_slice %656 {offsets = [0, 64], sizes = [1, 32], strides = [1, 1]} : vector<1x128xf32> to vector<1x32xf32>
    %670 = math.tanh %669 : vector<1x32xf32>
    %671 = vector.extract_strided_slice %656 {offsets = [0, 96], sizes = [1, 32], strides = [1, 1]} : vector<1x128xf32> to vector<1x32xf32>
    %672 = arith.negf %671 : vector<1x32xf32>
    %673 = math.exp %672 : vector<1x32xf32>
    %cst_171 = arith.constant 1.000000e+00 : f32
    %674 = vector.broadcast %cst_171 : f32 to vector<1x32xf32>
    %675 = arith.addf %674, %673 : vector<1x32xf32>
    %676 = arith.divf %674, %675 : vector<1x32xf32>
    %677 = arith.mulf %668, %626 : vector<1x32xf32>
    %678 = arith.mulf %662, %670 : vector<1x32xf32>
    %679 = arith.addf %677, %678 : vector<1x32xf32>
    %680 = math.tanh %679 : vector<1x32xf32>
    %681 = arith.mulf %676, %680 : vector<1x32xf32>
    %cst_172 = arith.constant dense<0.000000e+00> : vector<1x128xf32>
    %682 = tpu.matmul %681, %279, %cst_172 {dimension_numbers = #tpu.dot_dimension_numbers<[1], [0], [0], [1], [0, 0, 1, 1], [], []>} : vector<1x32xf32>, vector<32x128xf32>, vector<1x128xf32> -> vector<1x128xf32>
    %683 = arith.addf %682, %280 : vector<1x128xf32>
    %cst_173 = arith.constant dense<0xFF800000> : vector<1xf32>
    %684 = vector.multi_reduction <maximumf>, %683, %cst_173 [1] : vector<1x128xf32> to vector<1xf32>
    %685 = vector.shape_cast %684 : vector<1xf32> to vector<1x1xf32>
    %686 = vector.broadcast %685 : vector<1x1xf32> to vector<1x128xf32>
    %687 = arith.subf %683, %686 : vector<1x128xf32>
    %688 = vector.broadcast %685 : vector<1x1xf32> to vector<1x128xf32>
    %689 = arith.subf %683, %688 : vector<1x128xf32>
    %690 = math.exp %689 : vector<1x128xf32>
    %cst_174 = arith.constant dense<0.000000e+00> : vector<1xf32>
    %691 = vector.multi_reduction <add>, %690, %cst_174 [1] : vector<1x128xf32> to vector<1xf32>
    %692 = vector.shape_cast %691 : vector<1xf32> to vector<1x1xf32>
    %693 = math.log %692 : vector<1x1xf32>
    %694 = vector.broadcast %693 : vector<1x1xf32> to vector<1x128xf32>
    %695 = arith.subf %687, %694 : vector<1x128xf32>
    %cst_175 = arith.constant dense<0xFF800000> : vector<1xf32>
    %696 = vector.multi_reduction <maximumf>, %695, %cst_175 [1] : vector<1x128xf32> to vector<1xf32>
    %697 = vector.shape_cast %696 : vector<1xf32> to vector<1x1xf32>
    %698 = vector.broadcast %697 : vector<1x1xf32> to vector<1x128xf32>
    %699 = arith.cmpf oeq, %695, %698 : vector<1x128xf32>
    %c128_i32_176 = arith.constant 128 : i32
    %700 = vector.broadcast %c128_i32_176 : i32 to vector<1x128xi32>
    %701 = arith.select %699, %281, %700 : vector<1x128xi1>, vector<1x128xi32>
    %cst_177 = arith.constant dense<2147483647> : vector<1xi32>
    %702 = vector.multi_reduction <minsi>, %701, %cst_177 [1] : vector<1x128xi32> to vector<1xi32>
    %703 = vector.shape_cast %702 : vector<1xi32> to vector<1x1xi32>
    %704 = tpu.concatenate %324, %377, %430, %483, %536, %589, %642, %695 in 0 : vector<1x128xf32>, vector<1x128xf32>, vector<1x128xf32>, vector<1x128xf32>, vector<1x128xf32>, vector<1x128xf32>, vector<1x128xf32>, vector<1x128xf32> -> vector<8x128xf32>
    %c0_178 = arith.constant 0 : index
    %c0_179 = arith.constant 0 : index
    %705 = vector.load %arg21[%c0_178, %c0_179] : memref<8x128xf32, #tpu.memory_space<vmem>>, vector<8x128xf32>
    tpu.vector_store %arg21[%c0_178, %c0_179], %704 {strides = array<i32>} : memref<8x128xf32, #tpu.memory_space<vmem>>, vector<8x128xf32>,
    %706 = tpu.concatenate %332, %385, %438, %491, %544, %597, %650, %703 in 0 : vector<1x1xi32>, vector<1x1xi32>, vector<1x1xi32>, vector<1x1xi32>, vector<1x1xi32>, vector<1x1xi32>, vector<1x1xi32>, vector<1x1xi32> -> vector<8x1xi32>
    %c0_180 = arith.constant 0 : index
    %c0_181 = arith.constant 0 : index
    %707 = vector.load %arg20[%c0_180, %c0_181] : memref<8x1xi32, #tpu.memory_space<vmem>>, vector<8x1xi32>
    tpu.vector_store %arg20[%c0_180, %c0_181], %706 {strides = array<i32>} : memref<8x1xi32, #tpu.memory_space<vmem>>, vector<8x1xi32>,
    return
  }
}

</mosaic_0001>

<bundles_post_ra>
// kernel: tpu_custom_call.1
= control target key start
LH: loop header
LB: loop body
LE: loop exit
PB: predicated region body
PF: predicated region fallthrough
CT: control target
= control target key end

     0   :  { %s5231_s0 = inlined_call_operand.hbm [shape: s32[8], index: 0, kind: input, shape index: {}]   ;;  %s5232_s1 = inlined_call_operand.hbm [shape: f32[1,32], index: 1, kind: input, shape index: {}]   ;;  %s5233_s2 = inlined_call_operand.hbm [shape: f32[1,32], index: 2, kind: input, shape index: {}]   ;;  %s5234_s3 = inlined_call_operand.hbm [shape: f32[1,8], index: 3, kind: input, shape index: {}]   ;;  %s5235_s4 = inlined_call_operand.hbm [shape: f32[1,16], index: 4, kind: input, shape index: {}]   ;;  %s5236_s5 = inlined_call_operand.vmem [shape: f32[28,128], index: 5, kind: input, shape index: {}]   ;;  %s5237_s6 = inlined_call_operand.vmem [shape: f32[32,128], index: 6, kind: input, shape index: {}]   ;;  %s5238_s7 = inlined_call_operand.hbm [shape: f32[1,128], index: 7, kind: input, shape index: {}]   ;;  %s5239_s8 = inlined_call_operand.vmem [shape: f32[28,128], index: 8, kind: input, shape index: {}]   ;;  %s5240_s9 = inlined_call_operand.vmem [shape: f32[32,128], index: 9, kind: input, shape index: {}]   ;;  %s5241_s10 = inlined_call_operand.hbm [shape: f32[1,128], index: 10, kind: input, shape index: {}]   ;;  %s5242_s11 = inlined_call_operand.hbm [shape: f32[32,128], index: 11, kind: input, shape index: {}]   ;;  %s5243_s12 = inlined_call_operand.hbm [shape: f32[1,128], index: 12, kind: input, shape index: {}]   ;;  %s5244_s13 = inlined_call_operand.vmem [shape: f32[32,16], index: 13, kind: input, shape index: {}]   ;;  %s5245_s14 = inlined_call_operand.hbm [shape: f32[1,16], index: 14, kind: input, shape index: {}]   ;;  %s5246_s15 = inlined_call_operand.vmem [shape: f32[32,16], index: 15, kind: input, shape index: {}]   ;;  %s5247_s16 = inlined_call_operand.hbm [shape: f32[1,16], index: 16, kind: input, shape index: {}]   ;;  %s5248_s17 = inlined_call_operand.vmem [shape: f32[16,32], index: 17, kind: input, shape index: {}]   ;;  %s5249_s18 = inlined_call_operand.hbm [shape: f32[8,32], index: 18, kind: input, shape index: {}]   ;;  %s5250_s19 = inlined_call_operand.vmem [shape: f32[1,32], index: 19, kind: input, shape index: {}]   ;;  %s5251_s20 = inlined_call_operand.vmem [shape: s32[8,1], index: 20, kind: output, shape index: {0}]   ;;  %s5252_s21 = inlined_call_operand.hbm [shape: f32[8,128], index: 21, kind: output, shape index: {1}]   ;;  %s5253_s22 = inlined_call_operand.hbm [shape: f32[1,16], index: 22, kind: output, shape index: {2}]   ;;  %s5254_s23 = inlined_call_operand.hbm [shape: f32[1,16], index: 23, kind: output, shape index: {3}]  }
   0x1   :  { %5263 = sst [smem:[#allocation35_spill]] %s5231_s0 }
   0x2   :  { %5264 = sst [smem:[#allocation36_spill]] %s5232_s1 }
   0x3   :  { %5265 = sst [smem:[#allocation37_spill]] %s5233_s2 }
   0x4   :  { %5266 = sst [smem:[#allocation38_spill]] %s5234_s3 }
   0x5   :  { %5267 = sst [smem:[#allocation39_spill]] %s5235_s4 }
   0x6   :  { %5268 = sst [smem:[#allocation40_spill]] %s5236_s5 }
   0x7   :  { %5269 = sst [smem:[#allocation41_spill]] %s5237_s6 }
   0x8   :  { %5270 = sst [smem:[#allocation42_spill]] %s5238_s7 }
   0x9   :  { %29 = vsyncpa [#allocation5], 0 }
   0xa   :  { %30 = vsyncpa [#allocation3], 0 }
   0xb   :  { %31 = vsyncpa [#allocation8], 0 }
   0xc   :  { %32 = vsyncpa [#allocation11], 0 }
   0xd   :  { %33 = vsyncpa [#allocation14], 0 }
   0xe   :  { %34 = vsyncpa [#allocation17], 0 }
   0xf   :  { %35 = vsyncpa [#allocation20], 0 }
  0x10   :  { %36 = vsyncpa [#allocation4], 0 }
  0x11   :  { %37 = vsyncpa [#allocation24], 0  ;;  %s4325_s4 = smov [#allocation7]   ;;  %s4326_s24 = smov [#allocation10]  }
  0x12   :  { %s62_s30 = sshll.u32 %s4325_s4, 4  ;;  %s82_s25 = sshll.u32 %s4326_s24, 4  ;;  %s63_s30 = int_to_ptr.vmem [resolvable:$true] %s62_s30  ;;  %s83_s25 = int_to_ptr.vmem [resolvable:$true] %s82_s25 }
  0x13   :  { %s5271_s26 = sld [smem:[#allocation37_spill]] }
  0x19   :  { %s3989_s2 = scalar_lea.hbm %s5271_s26, 16 }
  0x1a   :  { %p3990_p0 = scmp.ne.s32.totalorder %s5271_s26, %s3989_s2  ;;  %p3993_p1 = scmp.lt.u32.totalorder %s3989_s2, %s5271_s26 }
  0x1c   :  { %p3995_p2 = pnand %p3993_p1, %p3990_p0 }
  0x1e   :  { %3998 = shalt.err (!%p3995_p2)
}
  0x1f   :  { %s3999_s29 = scalar_lea.vmem %s63_s30, 16  ;;  %s4003_s3 = scalar_lea.vmem %s63_s30, 32 }
  0x20   :  { %p4000_p3 = scmp.ne.s32.totalorder %s63_s30, %s3999_s29  ;;  %p4004_p4 = scmp.lt.s32.totalorder %s63_s30, %s63_s30 }
  0x21   :  { %p4005_p5 = scmp.lt.s32.totalorder %s4003_s3, %s3999_s29 }
  0x23   :  { %p4006_p6 = por %p4005_p5, %p4004_p4 }
  0x25   :  { %p4007_p7 = pnand %p4006_p6, %p4000_p3 }
  0x27   :  { %4010 = shalt.err (!%p4007_p7)
}
  0x28   :  { %65 = dma.hbm_to_vmem [thread:$0]  %s5271_s26, 16, %s63_s30, [#allocation8]  }
  0x29   :  { %s5272_s1 = sld [smem:[#allocation39_spill]] }
  0x2f   :  { %s4011_s6 = scalar_lea.hbm %s5272_s1, 16 }
  0x30   :  { %p4012_p8 = scmp.ne.s32.totalorder %s5272_s1, %s4011_s6  ;;  %p4015_p9 = scmp.lt.u32.totalorder %s4011_s6, %s5272_s1 }
  0x32   :  { %p4017_p10 = pnand %p4015_p9, %p4012_p8 }
  0x34   :  { %4020 = shalt.err (!%p4017_p10)
}
  0x35   :  { %s4021_s29 = scalar_lea.vmem %s83_s25, 16  ;;  %s4025_s3 = scalar_lea.vmem %s83_s25, 32 }
  0x36   :  { %p4022_p11 = scmp.ne.s32.totalorder %s83_s25, %s4021_s29  ;;  %p4026_p12 = scmp.lt.s32.totalorder %s83_s25, %s83_s25 }
  0x37   :  { %p4027_p13 = scmp.lt.s32.totalorder %s4025_s3, %s4021_s29 }
  0x39   :  { %p4028_p0 = por %p4027_p13, %p4026_p12 }
  0x3b   :  { %p4029_p1 = pnand %p4028_p0, %p4022_p11 }
  0x3d   :  { %4032 = shalt.err (!%p4029_p1)
}
  0x3e   :  { %85 = dma.hbm_to_vmem [thread:$0]  %s5272_s1, 16, %s83_s25, [#allocation11]  }
  0x3f   :  { %s4327_s0 = smov [#allocation13]   ;;  %s4328_s24 = smov [#allocation16]  }
  0x40   :  { %s110_s4 = sshll.u32 %s4327_s0, 4  ;;  %s132_s5 = sshll.u32 %s4328_s24, 4  ;;  %s111_s4 = int_to_ptr.vmem [resolvable:$true] %s110_s4  ;;  %s133_s5 = int_to_ptr.vmem [resolvable:$true] %s132_s5 }
  0x41   :  { %s4033_s2 = scalar_lea.hbm %s5241_s10, 16 }
  0x42   :  { %p4034_p2 = scmp.ne.s32.totalorder %s5241_s10, %s4033_s2  ;;  %p4037_p3 = scmp.lt.u32.totalorder %s4033_s2, %s5241_s10 }
  0x44   :  { %p4039_p4 = pnand %p4037_p3, %p4034_p2 }
  0x46   :  { %4042 = shalt.err (!%p4039_p4)
}
  0x47   :  { %s4043_s25 = scalar_lea.vmem %s111_s4, 16  ;;  %s4047_s1 = scalar_lea.vmem %s111_s4, 32 }
  0x48   :  { %p4044_p5 = scmp.ne.s32.totalorder %s111_s4, %s4043_s25  ;;  %p4048_p6 = scmp.lt.s32.totalorder %s111_s4, %s111_s4 }
  0x49   :  { %p4049_p7 = scmp.lt.s32.totalorder %s4047_s1, %s4043_s25 }
  0x4b   :  { %p4050_p8 = por %p4049_p7, %p4048_p6 }
  0x4d   :  { %p4051_p9 = pnand %p4050_p8, %p4044_p5 }
  0x4f   :  { %4054 = shalt.err (!%p4051_p9)
}
  0x50   :  { %113 = dma.hbm_to_vmem [thread:$0]  %s5241_s10, 16, %s111_s4, [#allocation14]  }
  0x51   :  { %s4055_s6 = scalar_lea.hbm %s5243_s12, 16 }
  0x52   :  { %p4056_p10 = scmp.ne.s32.totalorder %s5243_s12, %s4055_s6  ;;  %p4059_p11 = scmp.lt.u32.totalorder %s4055_s6, %s5243_s12 }
  0x54   :  { %p4061_p12 = pnand %p4059_p11, %p4056_p10 }
  0x56   :  { %4064 = shalt.err (!%p4061_p12)
}
  0x57   :  { %s4065_s29 = scalar_lea.vmem %s133_s5, 16  ;;  %s4069_s3 = scalar_lea.vmem %s133_s5, 32 }
  0x58   :  { %p4066_p13 = scmp.ne.s32.totalorder %s133_s5, %s4065_s29  ;;  %p4070_p0 = scmp.lt.s32.totalorder %s133_s5, %s133_s5 }
  0x59   :  { %p4071_p1 = scmp.lt.s32.totalorder %s4069_s3, %s4065_s29 }
  0x5b   :  { %p4072_p2 = por %p4071_p1, %p4070_p0 }
  0x5d   :  { %p4073_p3 = pnand %p4072_p2, %p4066_p13 }
  0x5f   :  { %4076 = shalt.err (!%p4073_p3)
}
  0x60   :  { %135 = dma.hbm_to_vmem [thread:$0]  %s5243_s12, 16, %s133_s5, [#allocation17]  }
  0x61   :  { %s4329_s25 = smov [#allocation19]   ;;  %s4330_s30 = smov [#allocation6]  }
  0x62   :  { %s156_s1 = sshll.u32 %s4329_s25, 4  ;;  %s52_s26 = sshll.u32 %s4330_s30, 4  ;;  %s157_s1 = int_to_ptr.vmem [resolvable:$true] %s156_s1  ;;  %s53_s26 = int_to_ptr.vmem [resolvable:$true] %s52_s26 }
  0x63   :  { %s4077_s6 = scalar_lea.hbm %s5247_s16, 16 }
  0x64   :  { %p4078_p4 = scmp.ne.s32.totalorder %s5247_s16, %s4077_s6  ;;  %p4081_p5 = scmp.lt.u32.totalorder %s4077_s6, %s5247_s16 }
  0x66   :  { %p4083_p6 = pnand %p4081_p5, %p4078_p4 }
  0x68   :  { %4086 = shalt.err (!%p4083_p6)
}
  0x69   :  { %s4087_s12 = scalar_lea.vmem %s157_s1, 16  ;;  %s4091_s5 = scalar_lea.vmem %s157_s1, 32 }
  0x6a   :  { %p4088_p7 = scmp.ne.s32.totalorder %s157_s1, %s4087_s12  ;;  %p4092_p8 = scmp.lt.s32.totalorder %s157_s1, %s157_s1 }
  0x6b   :  { %p4093_p9 = scmp.lt.s32.totalorder %s4091_s5, %s4087_s12 }
  0x6d   :  { %p4094_p10 = por %p4093_p9, %p4092_p8 }
  0x6f   :  { %p4095_p11 = pnand %p4094_p10, %p4088_p7 }
  0x71   :  { %4098 = shalt.err (!%p4095_p11)
}
  0x72   :  { %159 = dma.hbm_to_vmem [thread:$0]  %s5247_s16, 16, %s157_s1, [#allocation20]  }
  0x73   :  { %s5273_s25 = sld [smem:[#allocation35_spill]] }
  0x79   :  { %s4099_s30 = scalar_lea.hbm %s5273_s25, 16 }
  0x7a   :  { %p4100_p12 = scmp.ne.s32.totalorder %s5273_s25, %s4099_s30  ;;  %p4103_p13 = scmp.lt.u32.totalorder %s4099_s30, %s5273_s25 }
  0x7c   :  { %p4105_p0 = pnand %p4103_p13, %p4100_p12 }
  0x7e   :  { %4108 = shalt.err (!%p4105_p0)
}
  0x7f   :  { %s4331_s2 = smov [#allocation2]   ;;  %s5274_s12 = sld [smem:[#allocation36_spill]] }
  0x80   :  { %45 = dma.hbm_to_smem %s5273_s25, 16, %s4331_s2, [#allocation5]  }
  0x85   :  { %s4109_s5 = scalar_lea.hbm %s5274_s12, 16 }
  0x86   :  { %p4110_p1 = scmp.ne.s32.totalorder %s5274_s12, %s4109_s5  ;;  %p4113_p2 = scmp.lt.u32.totalorder %s4109_s5, %s5274_s12 }
  0x88   :  { %p4115_p3 = pnand %p4113_p2, %p4110_p1 }
  0x8a   :  { %4118 = shalt.err (!%p4115_p3)
}
  0x8b   :  { %s4119_s30 = scalar_lea.vmem %s53_s26, 16  ;;  %s4123_s0 = scalar_lea.vmem %s53_s26, 32 }
  0x8c   :  { %p4120_p4 = scmp.ne.s32.totalorder %s53_s26, %s4119_s30  ;;  %p4124_p5 = scmp.lt.s32.totalorder %s53_s26, %s53_s26 }
  0x8d   :  { %p4125_p6 = scmp.lt.s32.totalorder %s4123_s0, %s4119_s30 }
  0x8f   :  { %p4126_p7 = por %p4125_p6, %p4124_p5 }
  0x91   :  { %p4127_p8 = pnand %p4126_p7, %p4120_p4 }
  0x93   :  { %4130 = shalt.err (!%p4127_p8)
}
  0x94   :  { %55 = dma.hbm_to_vmem [thread:$0]  %s5274_s12, 16, %s53_s26, [#allocation3]  }
  0x95   :  { %s4332_s6 = smov [#allocation9]   ;;  %s4333_s2 = smov [#allocation12]  }
  0x96   :  { %s72_s27 = sshll.u32 %s4332_s6, 4  ;;  %s96_s7 = sshll.u32 %s4333_s2, 4  ;;  %s73_s27 = int_to_ptr.vmem [resolvable:$true] %s72_s27  ;;  %s97_s7 = int_to_ptr.vmem [resolvable:$true] %s96_s7 }
  0x97   :  { %s5275_s1 = sld [smem:[#allocation38_spill]] }
  0x9d   :  { %s4131_s5 = scalar_lea.hbm %s5275_s1, 16 }
  0x9e   :  { %p4132_p9 = scmp.ne.s32.totalorder %s5275_s1, %s4131_s5  ;;  %p4135_p10 = scmp.lt.u32.totalorder %s4131_s5, %s5275_s1 }
  0xa0   :  { %p4137_p11 = pnand %p4135_p10, %p4132_p9 }
  0xa2   :  { %4140 = shalt.err (!%p4137_p11)
}
  0xa3   :  { %s4141_s26 = scalar_lea.vmem %s73_s27, 16  ;;  %s4145_s12 = scalar_lea.vmem %s73_s27, 32 }
  0xa4   :  { %p4142_p12 = scmp.ne.s32.totalorder %s73_s27, %s4141_s26  ;;  %p4146_p13 = scmp.lt.s32.totalorder %s73_s27, %s73_s27 }
  0xa5   :  { %p4147_p0 = scmp.lt.s32.totalorder %s4145_s12, %s4141_s26 }
  0xa7   :  { %p4148_p1 = por %p4147_p0, %p4146_p13 }
  0xa9   :  { %p4149_p2 = pnand %p4148_p1, %p4142_p12 }
  0xab   :  { %4152 = shalt.err (!%p4149_p2)
}
  0xac   :  { %75 = dma.hbm_to_vmem [thread:$0]  %s5275_s1, 16, %s73_s27, [#allocation8]  }
  0xad   :  { %s5276_s6 = sld [smem:[#allocation42_spill]] }
  0xb3   :  { %s4153_s2 = scalar_lea.hbm %s5276_s6, 16 }
  0xb4   :  { %p4154_p3 = scmp.ne.s32.totalorder %s5276_s6, %s4153_s2  ;;  %p4157_p4 = scmp.lt.u32.totalorder %s4153_s2, %s5276_s6 }
  0xb6   :  { %p4159_p5 = pnand %p4157_p4, %p4154_p3 }
  0xb8   :  { %4162 = shalt.err (!%p4159_p5)
}
  0xb9   :  { %s4163_s3 = scalar_lea.vmem %s97_s7, 16  ;;  %s4167_s10 = scalar_lea.vmem %s97_s7, 32 }
  0xba   :  { %p4164_p6 = scmp.ne.s32.totalorder %s97_s7, %s4163_s3  ;;  %p4168_p7 = scmp.lt.s32.totalorder %s97_s7, %s97_s7 }
  0xbb   :  { %p4169_p8 = scmp.lt.s32.totalorder %s4167_s10, %s4163_s3 }
  0xbd   :  { %p4170_p9 = por %p4169_p8, %p4168_p7 }
  0xbf   :  { %p4171_p10 = pnand %p4170_p9, %p4164_p6 }
  0xc1   :  { %4174 = shalt.err (!%p4171_p10)
}
  0xc2   :  { %99 = dma.hbm_to_vmem [thread:$0]  %s5276_s6, 16, %s97_s7, [#allocation11]  }
  0xc3   :  { %s4334_s4 = smov [#allocation15]   ;;  %s4175_s0 = scalar_lea.hbm %s5242_s11, 512 }
  0xc4   :  { %s119_s26 = sshll.u32 %s4334_s4, 4  ;;  %p4176_p11 = scmp.ne.s32.totalorder %s5242_s11, %s4175_s0  ;;  %s120_s26 = int_to_ptr.vmem [resolvable:$true] %s119_s26 }
  0xc5   :  { %p4179_p12 = scmp.lt.u32.totalorder %s4175_s0, %s5242_s11 }
  0xc7   :  { %p4181_p13 = pnand %p4179_p12, %p4176_p11 }
  0xc9   :  { %4184 = shalt.err (!%p4181_p13)
}
  0xca   :  { %s4185_s16 = scalar_lea.vmem %s120_s26, 512  ;;  %p4190_p1 = scmp.lt.s32.totalorder %s120_s26, %s120_s26 }
  0xcb   :  { %p4186_p0 = scmp.ne.s32.totalorder %s120_s26, %s4185_s16  ;;  %p4191_p2 = scmp.lt.s32.totalorder %s4185_s16, %s4185_s16 }
  0xcd   :  { %p4192_p3 = por %p4191_p2, %p4190_p1 }
  0xcf   :  { %p4193_p4 = pnand %p4192_p3, %p4186_p0 }
  0xd1   :  { %4196 = shalt.err (!%p4193_p4)
}
  0xd2   :  { %s4335_s7 = smov 128   ;;  %s4336_s6 = smov 8  }
  0xd3   :  { %125 = dma.hbm_to_vmem [thread:$0]  %s5242_s11, 512, %s120_s26, [#allocation14], %s4335_s7, %s4335_s7, %s4336_s6  }
  0xd4   :  { %s4337_s3 = smov [#allocation18]   ;;  %s4338_s27 = smov [#allocation21]  }
  0xd5   :  { %s144_s10 = sshll.u32 %s4337_s3, 4  ;;  %s168_s1 = sshll.u32 %s4338_s27, 4  ;;  %s145_s10 = int_to_ptr.vmem [resolvable:$true] %s144_s10  ;;  %s169_s1 = int_to_ptr.vmem [resolvable:$true] %s168_s1 }
  0xd6   :  { %s4197_s30 = scalar_lea.hbm %s5245_s14, 16 }
  0xd7   :  { %p4198_p5 = scmp.ne.s32.totalorder %s5245_s14, %s4197_s30  ;;  %p4201_p6 = scmp.lt.u32.totalorder %s4197_s30, %s5245_s14 }
  0xd9   :  { %p4203_p7 = pnand %p4201_p6, %p4198_p5 }
  0xdb   :  { %4206 = shalt.err (!%p4203_p7)
}
  0xdc   :  { %s4207_s11 = scalar_lea.vmem %s145_s10, 16  ;;  %s4211_s26 = scalar_lea.vmem %s145_s10, 32 }
  0xdd   :  { %p4208_p8 = scmp.ne.s32.totalorder %s145_s10, %s4207_s11  ;;  %p4212_p9 = scmp.lt.s32.totalorder %s145_s10, %s145_s10 }
  0xde   :  { %p4213_p10 = scmp.lt.s32.totalorder %s4211_s26, %s4207_s11 }
  0xe0   :  { %p4214_p11 = por %p4213_p10, %p4212_p9 }
  0xe2   :  { %p4215_p12 = pnand %p4214_p11, %p4208_p8 }
  0xe4   :  { %4218 = shalt.err (!%p4215_p12)
}
  0xe5   :  { %147 = dma.hbm_to_vmem [thread:$0]  %s5245_s14, 16, %s145_s10, [#allocation17]  }
  0xe6   :  { %s4219_s5 = scalar_lea.hbm %s5249_s18, 128 }
  0xe7   :  { %p4220_p13 = scmp.ne.s32.totalorder %s5249_s18, %s4219_s5  ;;  %p4223_p0 = scmp.lt.u32.totalorder %s4219_s5, %s5249_s18 }
  0xe9   :  { %p4225_p1 = pnand %p4223_p0, %p4220_p13 }
  0xeb   :  { %4228 = shalt.err (!%p4225_p1)
}
  0xec   :  { %s4229_s12 = scalar_lea.vmem %s169_s1, 128  ;;  %p4234_p3 = scmp.lt.s32.totalorder %s169_s1, %s169_s1 }
  0xed   :  { %p4230_p2 = scmp.ne.s32.totalorder %s169_s1, %s4229_s12  ;;  %p4235_p4 = scmp.lt.s32.totalorder %s4229_s12, %s4229_s12 }
  0xef   :  { %p4236_p5 = por %p4235_p4, %p4234_p3 }
  0xf1   :  { %p4237_p6 = pnand %p4236_p5, %p4230_p2 }
  0xf3   :  { %4240 = shalt.err (!%p4237_p6)
}
  0xf4   :  { %171 = dma.hbm_to_vmem [thread:$0]  %s5249_s18, 128, %s169_s1, [#allocation20]  }
  0xf5   :  { %4307 = dma.done.wait [#allocation5], 16  }
  0xf6   :  { %4308 = vsyncadd [#allocation5], 4294967280 }
  0xf7   :  { %4309 = dma.done.wait [#allocation3], 16  }
  0xf8   :  { %4310 = vsyncadd [#allocation3], 4294967280 }
  0xf9   :  { %4311 = dma.done.wait [#allocation8], 32  }
  0xfa   :  { %4312 = vsyncadd [#allocation8], 4294967264 }
  0xfb   :  { %4313 = dma.done.wait [#allocation11], 32  }
  0xfc   :  { %4314 = vsyncadd [#allocation11], 4294967264 }
  0xfd   :  { %4315 = dma.done.wait [#allocation14], 528  }
  0xfe   :  { %4316 = vsyncadd [#allocation14], 4294966768 }
  0xff   :  { %4317 = dma.done.wait [#allocation17], 32  }
 0x100   :  { %4318 = vsyncadd [#allocation17], 4294967264 }
 0x101   :  { %4319 = dma.done.wait [#allocation20], 144  }
 0x102   :  { %4320 = vsyncadd [#allocation20], 4294967152 }
 0x103   :  { %210 = sfence }
 0x104   :  { %s5277_s25 = sld [smem:[#allocation41_spill]]  ;;  %v4339_v3 = vmov 0.0|0.0   ;;  %vm4340_vm0 = vmmov 0   ;;  %v4341_v6 = vmov 0.0   ;;  %v216_v8 = vld [vmem:[#allocation6] sm:$0x1] }
 0x105   :  { %3646 = vmatprep.subr.bf16.mxu0 %v4339_v3  ;;  %3356 = vmatprep.mubr.msk.f32.mxu0 %vm4340_vm0, %v4341_v6  ;;  %vm221_vm1 = vcmask 261120   ;;  %s4648_s28 = sld [smem:[#allocation2]]  ;;  %s5278_s6 = sld [smem:[#allocation40_spill]]  ;;  %v4654_v10 = vld [vmem:[#allocation12] sm:$0x1]  ;;  %vm1225_vm2 = vcmask 64512  }
 0x106   :  { %3652 = vmatprep.subr.bf16.mxu1 %v4339_v3  ;;  %3367 = vmatprep.mubr.msk.f32.mxu1 %vm4340_vm0, %v4341_v6  ;;  %s4342_s29 = smov 64   ;;  %v3157_v16 = vld [vmem:[#allocation7] ss:$0 sm:$0xff]  ;;  %s4343_s3 = smov 32   ;;  %vm1212_vm3 = vcmask 122880   ;;  %vm1299_vm4 = vcmask 130048  }
 0x107   :  { %s4669_s27 = sld [smem:[#allocation2 + $0x1]]  ;;  %s4687_s10 = sld [smem:[#allocation2 + $0x2]]  ;;  %vm1562_vm5 = vcmask 1040384   ;;  %vm3059_vm10 = vcmask 1041408   ;;  %vm3061_vm11 = vcmask 1042432   ;;  %vm3063_vm13 = vcmask 1043456  }
 0x108   :  { %s4705_s18 = sld [smem:[#allocation2 + $0x3]]  ;;  %s4723_s11 = sld [smem:[#allocation2 + $0x4]]  ;;  %vm3065_vm14 = vcmask 1044480   ;;  %vm3067_vm15 = vcmask 1045504  }
 0x109   :  { %s4755_s30 = sld [smem:[#allocation2 + $0x6]]  ;;  %s3176_s24 = sld [smem:[#allocation2 + $0x7]] }
 0x10a   :  { %v211_v0 = vld [vmem:[%s5277_s25] sm:$0xff]  ;;  %v212_v1 = vld [vmem:[%s5277_s25 + $0x8] sm:$0xff]  ;;  %v213_v2 = vld [vmem:[%s5277_s25 + $0x10] sm:$0xff] }
 0x10b   :  { %v4621_v4 = vpack.c.bf16 %v212_v1, %v211_v0  ;;  %v214_v5 = vld [vmem:[%s5277_s25 + $0x18] sm:$0xff]  ;;  %s219_s5 = scalar_lea.vmem %s5278_s6, %s4648_s28 }
 0x10c   :  { %v4632_v7 = vpack.c.bf16 %v214_v5, %v213_v2  ;;  %v220_v9 = vld [vmem:[%s219_s5] sm:$0x1]  ;;  %s4741_s5 = sld [smem:[#allocation2 + $0x5]] }
 0x10d   :  { %3648 = vmatpush3.bf16.msra.mxu0 %v4621_v4  ;;  %3654 = vmatpush3.bf16.msra.mxu1 %v4621_v4  ;;  %s330_s14 = scalar_lea.vmem %s5278_s6, %s4669_s27  ;;  %s434_s25 = scalar_lea.vmem %s5278_s6, %s4687_s10 }
 0x10e   :  { %3649 = vmatprep.subr.bf16.mxu0 %v4339_v3  ;;  %3655 = vmatprep.subr.bf16.mxu1 %v4339_v3  ;;  %v331_v31 = vld [vmem:[%s330_s14] sm:$0x1]  ;;  %s538_s2 = scalar_lea.vmem %s5278_s6, %s4705_s18  ;;  %s642_s7 = scalar_lea.vmem %s5278_s6, %s4723_s11 }
 0x10f   :  { %v435_v50 = vld [vmem:[%s434_s25] sm:$0x1]  ;;  %s850_s1 = scalar_lea.vmem %s5278_s6, %s4755_s30  ;;  %s954_s16 = scalar_lea.vmem %s5278_s6, %s3176_s24 }
 0x110   :  { %s1802_s0 = scalar_lea.vmem %s5239_s8, %s4669_s27  ;;  %s2420_s26 = scalar_lea.vmem %s5239_s8, %s4723_s11 }
 0x111   :  { %3651 = vmatpush3.bf16.msra.mxu0 %v4632_v7  ;;  %3657 = vmatpush3.bf16.msra.mxu1 %v4632_v7  ;;  %s2832_s4 = scalar_lea.vmem %s5239_s8, %s4755_s30 }
 0x112   :  { %3658 = vmatprep.subr.bf16.mxu0 %v4339_v3  ;;  %3664 = vmatprep.subr.bf16.mxu1 %v4339_v3  ;;  %s746_s14 = scalar_lea.vmem %s5278_s6, %s4741_s5  ;;  %s2626_s6 = scalar_lea.vmem %s5239_s8, %s4741_s5 }
 0x114   :  { %3357 = vmatmul.mubr.msk.f32.vlgmr.msra.gmra.mrb[0].mxu0 %vm221_vm1, %v216_v8 }
 0x115   :  { %3660 = vmatpush3.bf16.msra.mxu0 %v4621_v4  ;;  %3378 = vmatprep.mubr.msk.f32.mxu0 %vm4340_vm0, %v4341_v6 }
 0x116   :  { %3661 = vmatprep.subr.bf16.mxu0 %v4339_v3 }
 0x119   :  { %3663 = vmatpush3.bf16.msra.mxu0 %v4632_v7 }
 0x11a   :  { %3670 = vmatprep.subr.bf16.mxu0 %v4339_v3 }
 0x1e7   :  { %v291_v11 = vpop.f32.mrb[0].mxu0 }
 0x1e8   :  { %v295_v12 = vadd.f32 %v291_v11, %v220_v9  ;;  %v3358_v13 = vpop.f32.mrb[1].mxu0  ;;  %v539_v9 = vld [vmem:[%s538_s2] sm:$0x1]  ;;  %s2214_s2 = scalar_lea.vmem %s5239_s8, %s4705_s18 }
 0x1ea   :  { %v296_v14 = vadd.f32 %v295_v12, %v4654_v10 }
 0x1ec   :  { %3827 = vtanh.f32 %v296_v14  ;;  %v3156_v17 = vmul.f32 -1.442695, %v296_v14 }
 0x1ee   :  { %3829 = vpow2.f32 %v3156_v17 }
 0x1f6   :  { %v3828_v15 = vpop.eup %3827 }
 0x1f7   :  { %314 = vrot.lane.b32.xlu0 %v3828_v15, %s4342_s29 }
 0x1f8   :  { %v3830_v18 = vpop.eup %3829 }
 0x1f9   :  { %v300_v19 = vadd.f32 1.0, %v3830_v18 }
 0x1fb   :  { %309 = vrot.lane.b32.xlu0 %v3157_v16, %s4343_s3  ;;  %3831 = vrcp.f32 %v300_v19 }
 0x205   :  { %v3832_v20 = vpop.eup %3831 }
 0x269   :  { %v315_v21 = vpop.permute.xlu0 %314 }
 0x26a   :  { %v317_v22 = vmul.f32 %v3832_v20, %v315_v21 }
 0x26c   :  { %319 = vrot.lane.b32.xlu1 %v317_v22, %s4343_s3 }
 0x26d   :  { %v310_v23 = vpop.permute.xlu0 %309 }
 0x26e   :  { %v312_v24 = vmul.f32 %v3832_v20, %v310_v23 }
 0x2de   :  { %v320_v25 = vpop.permute.xlu1 %319 }
 0x2df   :  { %v322_v26 = vadd.f32 %v320_v25, %v312_v24 }
 0x2e1   :  { %3833 = vtanh.f32 %v322_v26 }
 0x2eb   :  { %v3834_v27 = vpop.eup %3833 }
 0x2ec   :  { %325 = vrot.lane.b32.xlu1 %v3834_v27, %s4342_s29 }
 0x35e   :  { %v326_v28 = vpop.permute.xlu1 %325 }
 0x35f   :  { %v328_v29 = vmul.f32 %v3832_v20, %v326_v28 }
 0x361   :  { %333 = vrot.lane.b32.xlu0 %v328_v29, %s4343_s3  ;;  %v643_v29 = vld [vmem:[%s642_s7] sm:$0x1] }
 0x3d3   :  { %v334_v30 = vpop.permute.xlu0 %333 }
 0x3d4   :  { %3368 = vmatmul.mubr.msk.f32.vlgmr.msra.gmra.mrb[0].mxu1 %vm221_vm1, %v334_v30 }
 0x3d5   :  { %3666 = vmatpush3.bf16.msra.mxu1 %v4621_v4  ;;  %3389 = vmatprep.mubr.msk.f32.mxu1 %vm4340_vm0, %v4341_v6 }
 0x3d6   :  { %3667 = vmatprep.subr.bf16.mxu1 %v4339_v3 }
 0x3d9   :  { %3669 = vmatpush3.bf16.msra.mxu1 %v4632_v7 }
 0x3da   :  { %3676 = vmatprep.subr.bf16.mxu1 %v4339_v3 }
 0x4a7   :  { %v403_v32 = vpop.f32.mrb[0].mxu1 }
 0x4a8   :  { %v407_v33 = vadd.f32 %v403_v32, %v331_v31  ;;  %v3369_v34 = vpop.f32.mrb[1].mxu1 }
 0x4aa   :  { %v408_v35 = vadd.f32 %v407_v33, %v4654_v10 }
 0x4ac   :  { %3835 = vtanh.f32 %v408_v35  ;;  %v3160_v37 = vmul.f32 -1.442695, %v408_v35 }
 0x4ae   :  { %3837 = vpow2.f32 %v3160_v37 }
 0x4b6   :  { %v3836_v36 = vpop.eup %3835 }
 0x4b7   :  { %418 = vrot.lane.b32.xlu1 %v3836_v36, %s4342_s29 }
 0x4b8   :  { %v3838_v38 = vpop.eup %3837 }
 0x4b9   :  { %v412_v39 = vadd.f32 1.0, %v3838_v38 }
 0x4bb   :  { %3839 = vrcp.f32 %v412_v39 }
 0x4c5   :  { %v3840_v40 = vpop.eup %3839 }
 0x4c6   :  { %v416_v43 = vmul.f32 %v3840_v40, %v322_v26 }
 0x529   :  { %v419_v41 = vpop.permute.xlu1 %418 }
 0x52a   :  { %v421_v42 = vmul.f32 %v3840_v40, %v419_v41 }
 0x52c   :  { %423 = vrot.lane.b32.xlu0 %v421_v42, %s4343_s3 }
 0x59e   :  { %v424_v44 = vpop.permute.xlu0 %423 }
 0x59f   :  { %v426_v45 = vadd.f32 %v424_v44, %v416_v43 }
 0x5a1   :  { %3841 = vtanh.f32 %v426_v45 }
 0x5ab   :  { %v3842_v46 = vpop.eup %3841 }
 0x5ac   :  { %429 = vrot.lane.b32.xlu1 %v3842_v46, %s4342_s29 }
 0x61e   :  { %v430_v47 = vpop.permute.xlu1 %429 }
 0x61f   :  { %v432_v48 = vmul.f32 %v3840_v40, %v430_v47 }
 0x621   :  { %437 = vrot.lane.b32.xlu0 %v432_v48, %s4343_s3  ;;  %v747_v48 = vld [vmem:[%s746_s14] sm:$0x1] }
 0x693   :  { %v438_v49 = vpop.permute.xlu0 %437 }
 0x694   :  { %3379 = vmatmul.mubr.msk.f32.vlgmr.msra.gmra.mrb[2].mxu0 %vm221_vm1, %v438_v49 }
 0x695   :  { %3672 = vmatpush3.bf16.msra.mxu0 %v4621_v4  ;;  %3400 = vmatprep.mubr.msk.f32.mxu0 %vm4340_vm0, %v4341_v6 }
 0x696   :  { %3673 = vmatprep.subr.bf16.mxu0 %v4339_v3 }
 0x699   :  { %3675 = vmatpush3.bf16.msra.mxu0 %v4632_v7 }
 0x69a   :  { %3682 = vmatprep.subr.bf16.mxu0 %v4339_v3 }
 0x767   :  { %v507_v51 = vpop.f32.mrb[2].mxu0 }
 0x768   :  { %v511_v52 = vadd.f32 %v507_v51, %v435_v50  ;;  %v3380_v53 = vpop.f32.mrb[3].mxu0 }
 0x76a   :  { %v512_v54 = vadd.f32 %v511_v52, %v4654_v10 }
 0x76c   :  { %3843 = vtanh.f32 %v512_v54  ;;  %v3163_v56 = vmul.f32 -1.442695, %v512_v54 }
 0x76e   :  { %3845 = vpow2.f32 %v3163_v56 }
 0x776   :  { %v3844_v55 = vpop.eup %3843 }
 0x777   :  { %522 = vrot.lane.b32.xlu1 %v3844_v55, %s4342_s29 }
 0x778   :  { %v3846_v57 = vpop.eup %3845 }
 0x779   :  { %v516_v58 = vadd.f32 1.0, %v3846_v57 }
 0x77b   :  { %3847 = vrcp.f32 %v516_v58 }
 0x785   :  { %v3848_v59 = vpop.eup %3847 }
 0x786   :  { %v520_v62 = vmul.f32 %v3848_v59, %v426_v45 }
 0x7e9   :  { %v523_v60 = vpop.permute.xlu1 %522 }
 0x7ea   :  { %v525_v61 = vmul.f32 %v3848_v59, %v523_v60 }
 0x7ec   :  { %527 = vrot.lane.b32.xlu0 %v525_v61, %s4343_s3 }
 0x85e   :  { %v528_v63 = vpop.permute.xlu0 %527 }
 0x85f   :  { %v530_v0 = vadd.f32 %v528_v63, %v520_v62 }
 0x861   :  { %3849 = vtanh.f32 %v530_v0 }
 0x86b   :  { %v3850_v1 = vpop.eup %3849 }
 0x86c   :  { %533 = vrot.lane.b32.xlu1 %v3850_v1, %s4342_s29  ;;  %v851_v1 = vld [vmem:[%s850_s1] sm:$0x1]  ;;  %s2008_s1 = scalar_lea.vmem %s5239_s8, %s4687_s10 }
 0x8de   :  { %v534_v2 = vpop.permute.xlu1 %533 }
 0x8df   :  { %v536_v5 = vmul.f32 %v3848_v59, %v534_v2 }
 0x8e1   :  { %541 = vrot.lane.b32.xlu0 %v536_v5, %s4343_s3 }
 0x953   :  { %v542_v8 = vpop.permute.xlu0 %541 }
 0x954   :  { %3390 = vmatmul.mubr.msk.f32.vlgmr.msra.gmra.mrb[2].mxu1 %vm221_vm1, %v542_v8 }
 0x955   :  { %3678 = vmatpush3.bf16.msra.mxu1 %v4621_v4  ;;  %3411 = vmatprep.mubr.msk.f32.mxu1 %vm4340_vm0, %v4341_v6 }
 0x956   :  { %3679 = vmatprep.subr.bf16.mxu1 %v4339_v3 }
 0x959   :  { %3681 = vmatpush3.bf16.msra.mxu1 %v4632_v7 }
 0x95a   :  { %3688 = vmatprep.subr.bf16.mxu1 %v4339_v3 }
 0xa27   :  { %v611_v11 = vpop.f32.mrb[2].mxu1 }
 0xa28   :  { %v615_v12 = vadd.f32 %v611_v11, %v539_v9  ;;  %v3391_v13 = vpop.f32.mrb[3].mxu1 }
 0xa2a   :  { %v616_v14 = vadd.f32 %v615_v12, %v4654_v10 }
 0xa2c   :  { %3851 = vtanh.f32 %v616_v14  ;;  %v3166_v16 = vmul.f32 -1.442695, %v616_v14 }
 0xa2e   :  { %3853 = vpow2.f32 %v3166_v16 }
 0xa36   :  { %v3852_v15 = vpop.eup %3851 }
 0xa37   :  { %626 = vrot.lane.b32.xlu1 %v3852_v15, %s4342_s29 }
 0xa38   :  { %v3854_v17 = vpop.eup %3853 }
 0xa39   :  { %v620_v18 = vadd.f32 1.0, %v3854_v17 }
 0xa3b   :  { %3855 = vrcp.f32 %v620_v18 }
 0xa45   :  { %v3856_v19 = vpop.eup %3855 }
 0xa46   :  { %v624_v22 = vmul.f32 %v3856_v19, %v530_v0 }
 0xaa9   :  { %v627_v20 = vpop.permute.xlu1 %626 }
 0xaaa   :  { %v629_v21 = vmul.f32 %v3856_v19, %v627_v20 }
 0xaac   :  { %631 = vrot.lane.b32.xlu0 %v629_v21, %s4343_s3 }
 0xb1e   :  { %v632_v23 = vpop.permute.xlu0 %631 }
 0xb1f   :  { %v634_v24 = vadd.f32 %v632_v23, %v624_v22 }
 0xb21   :  { %3857 = vtanh.f32 %v634_v24 }
 0xb2b   :  { %v3858_v25 = vpop.eup %3857 }
 0xb2c   :  { %637 = vrot.lane.b32.xlu1 %v3858_v25, %s4342_s29  ;;  %v955_v25 = vld [vmem:[%s954_s16] sm:$0x1] }
 0xb9e   :  { %v638_v26 = vpop.permute.xlu1 %637 }
 0xb9f   :  { %v640_v27 = vmul.f32 %v3856_v19, %v638_v26 }
 0xba1   :  { %645 = vrot.lane.b32.xlu0 %v640_v27, %s4343_s3 }
 0xc13   :  { %v646_v28 = vpop.permute.xlu0 %645 }
 0xc14   :  { %3401 = vmatmul.mubr.msk.f32.vlgmr.msra.gmra.mrb[4].mxu0 %vm221_vm1, %v646_v28 }
 0xc15   :  { %3684 = vmatpush3.bf16.msra.mxu0 %v4621_v4  ;;  %3422 = vmatprep.mubr.msk.f32.mxu0 %vm4340_vm0, %v4341_v6 }
 0xc16   :  { %3685 = vmatprep.subr.bf16.mxu0 %v4339_v3 }
 0xc19   :  { %3687 = vmatpush3.bf16.msra.mxu0 %v4632_v7 }
 0xc1a   :  { %3694 = vmatprep.subr.bf16.mxu0 %v4339_v3 }
 0xce7   :  { %v715_v30 = vpop.f32.mrb[4].mxu0 }
 0xce8   :  { %v719_v31 = vadd.f32 %v715_v30, %v643_v29  ;;  %v3402_v32 = vpop.f32.mrb[5].mxu0 }
 0xcea   :  { %v720_v33 = vadd.f32 %v719_v31, %v4654_v10 }
 0xcec   :  { %3859 = vtanh.f32 %v720_v33  ;;  %v3169_v35 = vmul.f32 -1.442695, %v720_v33 }
 0xcee   :  { %3861 = vpow2.f32 %v3169_v35 }
 0xcf6   :  { %v3860_v34 = vpop.eup %3859 }
 0xcf7   :  { %730 = vrot.lane.b32.xlu1 %v3860_v34, %s4342_s29 }
 0xcf8   :  { %v3862_v36 = vpop.eup %3861 }
 0xcf9   :  { %v724_v37 = vadd.f32 1.0, %v3862_v36 }
 0xcfb   :  { %3863 = vrcp.f32 %v724_v37 }
 0xd05   :  { %v3864_v38 = vpop.eup %3863 }
 0xd06   :  { %v728_v41 = vmul.f32 %v3864_v38, %v634_v24 }
 0xd69   :  { %v731_v39 = vpop.permute.xlu1 %730 }
 0xd6a   :  { %v733_v40 = vmul.f32 %v3864_v38, %v731_v39 }
 0xd6c   :  { %735 = vrot.lane.b32.xlu0 %v733_v40, %s4343_s3  ;;  %v1058_v40 = vld [vmem:[%s5244_s13 + $0x8] sm:$0xff] }
 0xdde   :  { %v736_v42 = vpop.permute.xlu0 %735 }
 0xddf   :  { %v738_v43 = vadd.f32 %v736_v42, %v728_v41  ;;  %v1137_v41 = vld [vmem:[%s5246_s15] sm:$0xff] }
 0xde1   :  { %3865 = vtanh.f32 %v738_v43 }
 0xdeb   :  { %v3866_v44 = vpop.eup %3865 }
 0xdec   :  { %741 = vrot.lane.b32.xlu1 %v3866_v44, %s4342_s29  ;;  %v1059_v44 = vld [vmem:[%s5244_s13 + $0x10] sm:$0xff] }
 0xe5e   :  { %v742_v45 = vpop.permute.xlu1 %741 }
 0xe5f   :  { %v744_v46 = vmul.f32 %v3864_v38, %v742_v45  ;;  %v1060_v45 = vld [vmem:[%s5244_s13 + $0x18] sm:$0xff] }
 0xe61   :  { %749 = vrot.lane.b32.xlu0 %v744_v46, %s4343_s3 }
 0xed3   :  { %v750_v47 = vpop.permute.xlu0 %749 }
 0xed4   :  { %3412 = vmatmul.mubr.msk.f32.vlgmr.msra.gmra.mrb[4].mxu1 %vm221_vm1, %v750_v47  ;;  %v1139_v47 = vld [vmem:[%s5246_s15 + $0x10] sm:$0xff] }
 0xed5   :  { %3690 = vmatpush3.bf16.msra.mxu1 %v4621_v4  ;;  %3433 = vmatprep.mubr.msk.f32.mxu1 %vm4340_vm0, %v4341_v6 }
 0xed6   :  { %3691 = vmatprep.subr.bf16.mxu1 %v4339_v3 }
 0xed9   :  { %3693 = vmatpush3.bf16.msra.mxu1 %v4632_v7 }
 0xeda   :  { %3700 = vmatprep.subr.bf16.mxu1 %v4339_v3 }
 0xfa7   :  { %v819_v49 = vpop.f32.mrb[4].mxu1 }
 0xfa8   :  { %v823_v50 = vadd.f32 %v819_v49, %v747_v48  ;;  %v3413_v4 = vpop.f32.mrb[5].mxu1  ;;  %v1140_v48 = vld [vmem:[%s5246_s15 + $0x18] sm:$0xff]  ;;  %v3698_v49 = vpack.c.bf16 %v1060_v45, %v1059_v44  ;;  %v1383_v45 = vld [vmem:[#allocation15 + $0x18] sm:$0xff] }
 0xfaa   :  { %v824_v51 = vadd.f32 %v823_v50, %v4654_v10  ;;  %v3704_v50 = vpack.c.bf16 %v1140_v48, %v1139_v47 }
 0xfac   :  { %3867 = vtanh.f32 %v824_v51  ;;  %v3172_v7 = vmul.f32 -1.442695, %v824_v51 }
 0xfae   :  { %3869 = vpow2.f32 %v3172_v7 }
 0xfb6   :  { %v3868_v52 = vpop.eup %3867 }
 0xfb7   :  { %834 = vrot.lane.b32.xlu1 %v3868_v52, %s4342_s29 }
 0xfb8   :  { %v3870_v53 = vpop.eup %3869 }
 0xfb9   :  { %v828_v54 = vadd.f32 1.0, %v3870_v53  ;;  %v1224_v53 = vld [vmem:[#allocation21] sm:$0xff] }
 0xfbb   :  { %3871 = vrcp.f32 %v828_v54  ;;  %v1221_v54 = vld [vmem:[%s5248_s17] sm:$0xff] }
 0xfc5   :  { %v3872_v55 = vpop.eup %3871 }
 0xfc6   :  { %v832_v58 = vmul.f32 %v3872_v55, %v738_v43  ;;  %v1138_v43 = vld [vmem:[%s5246_s15 + $0x8] sm:$0xff]  ;;  %s1596_s15 = scalar_lea.vmem %s5239_s8, %s4648_s28 }
 0xfc7   :  { %v3701_v46 = vpack.c.bf16 %v1138_v43, %v1137_v41  ;;  %v1380_v41 = vld [vmem:[#allocation15] sm:$0xff]  ;;  %v1382_v43 = vld [vmem:[#allocation15 + $0x10] sm:$0xff] }
0x1029   :  { %v835_v56 = vpop.permute.xlu1 %834 }
0x102a   :  { %v837_v57 = vmul.f32 %v3872_v55, %v835_v56 }
0x102c   :  { %839 = vrot.lane.b32.xlu0 %v837_v57, %s4343_s3  ;;  %v1223_v57 = vld [vmem:[#allocation9] sm:$0x1] }
0x109e   :  { %v840_v59 = vpop.permute.xlu0 %839 }
0x109f   :  { %v842_v60 = vadd.f32 %v840_v59, %v832_v58  ;;  %v1375_v58 = vld [vmem:[%s5240_s9] sm:$0xff]  ;;  %v1376_v59 = vld [vmem:[%s5240_s9 + $0x8] sm:$0xff] }
0x10a1   :  { %3873 = vtanh.f32 %v842_v60 }
0x10ab   :  { %v3874_v61 = vpop.eup %3873 }
0x10ac   :  { %845 = vrot.lane.b32.xlu1 %v3874_v61, %s4342_s29  ;;  %v1061_v61 = vld [vmem:[#allocation18] sm:$0x1] }
0x111e   :  { %v846_v62 = vpop.permute.xlu1 %845 }
0x111f   :  { %v848_v63 = vmul.f32 %v3872_v55, %v846_v62  ;;  %v1222_v55 = vld [vmem:[%s5248_s17 + $0x8] sm:$0xff]  ;;  %v1141_v62 = vld [vmem:[#allocation19] sm:$0x1] }
0x1120   :  { %v3707_v56 = vpack.c.bf16 %v1222_v55, %v1221_v54 }
0x1121   :  { %853 = vrot.lane.b32.xlu0 %v848_v63, %s4343_s3 }
0x1193   :  { %v854_v0 = vpop.permute.xlu0 %853 }
0x1194   :  { %3423 = vmatmul.mubr.msk.f32.vlgmr.msra.gmra.mrb[6].mxu0 %vm221_vm1, %v854_v0 }
0x1195   :  { %3444 = vmatprep.mubr.msk.f32.mxu0 %vm4340_vm0, %v4341_v6 }
0x1267   :  { %v923_v2 = vpop.f32.mrb[6].mxu0 }
0x1268   :  { %v927_v5 = vadd.f32 %v923_v2, %v851_v1  ;;  %v3424_v8 = vpop.f32.mrb[7].mxu0 }
0x126a   :  { %v928_v9 = vadd.f32 %v927_v5, %v4654_v10 }
0x126c   :  { %3875 = vtanh.f32 %v928_v9  ;;  %v3175_v12 = vmul.f32 -1.442695, %v928_v9 }
0x126e   :  { %3877 = vpow2.f32 %v3175_v12  ;;  %v1218_v12 = vld [vmem:[#allocation10] sm:$0x1] }
0x1276   :  { %v3876_v11 = vpop.eup %3875 }
0x1277   :  { %938 = vrot.lane.b32.xlu1 %v3876_v11, %s4342_s29 }
0x1278   :  { %v3878_v13 = vpop.eup %3877 }
0x1279   :  { %v932_v14 = vadd.f32 1.0, %v3878_v13 }
0x127b   :  { %3879 = vrcp.f32 %v932_v14 }
0x1285   :  { %v3880_v15 = vpop.eup %3879 }
0x1286   :  { %v936_v18 = vmul.f32 %v3880_v15, %v842_v60  ;;  %v4827_v60 = vpack.c.bf16 %v1376_v59, %v1375_v58 }
0x12e9   :  { %v939_v16 = vpop.permute.xlu1 %938 }
0x12ea   :  { %v941_v17 = vmul.f32 %v3880_v15, %v939_v16 }
0x12ec   :  { %943 = vrot.lane.b32.xlu0 %v941_v17, %s4343_s3 }
0x135e   :  { %v944_v19 = vpop.permute.xlu0 %943 }
0x135f   :  { %v946_v20 = vadd.f32 %v944_v19, %v936_v18  ;;  %v1377_v18 = vld [vmem:[%s5240_s9 + $0x10] sm:$0xff]  ;;  %v1378_v19 = vld [vmem:[%s5240_s9 + $0x18] sm:$0xff] }
0x1361   :  { %3881 = vtanh.f32 %v946_v20 }
0x136b   :  { %v3882_v21 = vpop.eup %3881 }
0x136c   :  { %949 = vrot.lane.b32.xlu1 %v3882_v21, %s4342_s29 }
0x13de   :  { %v950_v22 = vpop.permute.xlu1 %949 }
0x13df   :  { %v952_v23 = vmul.f32 %v3880_v15, %v950_v22  ;;  %v1373_v22 = vld [vmem:[%s5250_s19] sm:$0x1] }
0x13e1   :  { %957 = vrot.lane.b32.xlu0 %v952_v23, %s4343_s3 }
0x1453   :  { %v958_v24 = vpop.permute.xlu0 %957 }
0x1454   :  { %3434 = vmatmul.mubr.msk.f32.vlgmr.msra.gmra.mrb[6].mxu1 %vm221_vm1, %v958_v24 }
0x1455   :  { %3455 = vmatprep.mubr.msk.f32.mxu1 %vm4340_vm0, %v4341_v6  ;;  %3702 = vmatpush3.bf16.msra.mxu1 %v3701_v46  ;;  %v4864_v46 = vpack.c.bf16 %v1383_v45, %v1382_v43 }
0x1456   :  { %3703 = vmatprep.subr.bf16.mxu1 %v4339_v3 }
0x1459   :  { %3705 = vmatpush3.bf16.msra.mxu1 %v3704_v50 }
0x145a   :  { %3706 = vmatprep.subr.bf16.mxu1 %v4339_v3 }
0x1527   :  { %v1027_v26 = vpop.f32.mrb[6].mxu1 }
0x1528   :  { %v1031_v27 = vadd.f32 %v1027_v26, %v955_v25  ;;  %v3435_v28 = vpop.f32.mrb[7].mxu1  ;;  %v1387_v26 = vld [vmem:[%s5239_s8] sm:$0x1]  ;;  %s4344_s8 = smov [#allocation23]  }
0x152a   :  { %v1032_v29 = vadd.f32 %v1031_v27, %v4654_v10  ;;  %v1057_v10 = vld [vmem:[%s5244_s13] sm:$0xff]  ;;  %v4856_v27 = vld [vmem:[#allocation13] sm:$0x1] }
0x152b   :  { %v3695_v42 = vpack.c.bf16 %v1058_v40, %v1057_v10 }
0x152c   :  { %3883 = vtanh.f32 %v1032_v29  ;;  %v3178_v31 = vmul.f32 -1.442695, %v1032_v29 }
0x152d   :  { %3696 = vmatpush3.bf16.msra.mxu0 %v3695_v42  ;;  %v1381_v42 = vld [vmem:[#allocation15 + $0x8] sm:$0xff] }
0x152e   :  { %3885 = vpow2.f32 %v3178_v31  ;;  %3697 = vmatprep.subr.bf16.mxu0 %v4339_v3  ;;  %v4861_v44 = vpack.c.bf16 %v1381_v42, %v1380_v41 }
0x1531   :  { %3699 = vmatpush3.bf16.msra.mxu0 %v3698_v49 }
0x1532   :  { %3458 = vmatprep.subr.mxu0 %v4341_v6 }
0x1536   :  { %v3884_v30 = vpop.eup %3883 }
0x1537   :  { %1042 = vrot.lane.b32.xlu1 %v3884_v30, %s4342_s29 }
0x1538   :  { %v3886_v32 = vpop.eup %3885 }
0x1539   :  { %v1036_v33 = vadd.f32 1.0, %v3886_v32 }
0x153b   :  { %3887 = vrcp.f32 %v1036_v33 }
0x1545   :  { %v3888_v34 = vpop.eup %3887 }
0x1546   :  { %v1040_v37 = vmul.f32 %v3888_v34, %v946_v20  ;;  %v4839_v20 = vpack.c.bf16 %v1378_v19, %v1377_v18 }
0x15a9   :  { %v1043_v35 = vpop.permute.xlu1 %1042 }
0x15aa   :  { %v1045_v36 = vmul.f32 %v3888_v34, %v1043_v35 }
0x15ac   :  { %1047 = vrot.lane.b32.xlu0 %v1045_v36, %s4343_s3 }
0x161e   :  { %v1048_v38 = vpop.permute.xlu0 %1047 }
0x161f   :  { %v1050_v39 = vadd.f32 %v1048_v38, %v1040_v37 }
0x1621   :  { %3889 = vtanh.f32 %v1050_v39 }
0x162b   :  { %v3890_v4 = vpop.eup %3889 }
0x162c   :  { %1053 = vrot.lane.b32.xlu1 %v3890_v4, %s4342_s29  ;;  %v1597_v4 = vld [vmem:[%s1596_s15] sm:$0x1] }
0x169e   :  { %v1054_v51 = vpop.permute.xlu1 %1053 }
0x169f   :  { %v1056_v52 = vmul.f32 %v3888_v34, %v1054_v51 }
0x16a1   :  { %1063 = vrot.lane.b32.xlu0 %v1056_v52, %s4343_s3 }
0x1713   :  { %v1064_v7 = vpop.permute.xlu0 %1063 }
0x1714   :  { %3445 = vmatmul.mubr.msk.f32.vlgmr.msra.gmra.mrb[8].mxu0 %vm221_vm1, %v1064_v7  ;;  %3456 = vmatmul.mubr.msk.f32.vlgmr.msra.gmra.mrb[8].mxu1 %vm221_vm1, %v1064_v7 }
0x1715   :  { %3460 = vmatprep.mubr.msk.f32.mxu0 %vm4340_vm0, %v4341_v6  ;;  %3467 = vmatprep.mubr.msk.f32.mxu1 %vm4340_vm0, %v4341_v6 }
0x1716   :  { %3459 = vmatpush3.msra.mxu0 %v1224_v53  ;;  %3708 = vmatpush3.bf16.msra.mxu1 %v3707_v56 }
0x1717   :  { %3709 = vmatprep.subr.bf16.mxu0 %v4339_v3  ;;  %3715 = vmatprep.subr.bf16.mxu1 %v4339_v3 }
0x1718   :  { %3461 = vmatmul.mubr.msk.f32.vlgmr.msra.gmra.mrb[10].mxu0 %vm1225_vm2, %v1223_v57  ;;  %vm3069_vm2 = vcmask 1046528  }
0x1719   :  { %3478 = vmatprep.mubr.msk.f32.mxu0 %vm4340_vm0, %v4341_v6  ;;  %3711 = vmatpush3.bf16.msra.mxu0 %v4827_v60 }
0x171a   :  { %3712 = vmatprep.subr.bf16.mxu0 %v4339_v3 }
0x171d   :  { %3714 = vmatpush3.bf16.msra.mxu0 %v4839_v20 }
0x171e   :  { %3721 = vmatprep.subr.bf16.mxu0 %v4339_v3 }
0x17e7   :  { %v1133_v63 = vpop.f32.mrb[8].mxu0  ;;  %v1208_v0 = vpop.f32.mrb[8].mxu1 }
0x17e8   :  { %v1134_v1 = vadd.f32 %v1133_v63, %v1061_v61  ;;  %v1209_v2 = vadd.f32 %v1208_v0, %v1141_v62  ;;  %v3446_v5 = vpop.f32.mrb[9].mxu0  ;;  %v3457_v8 = vpop.f32.mrb[9].mxu1 }
0x17ea   :  { %v1215_v9 = vmul.f32 0.5, %v1209_v2  ;;  %1213 = vst.msk [vmem:[#allocation23] sm:$0x1] %vm1212_vm3, %v1134_v1  ;;  %1214 = vst.msk [vmem:[#allocation25] sm:$0x1] %vm1212_vm3, %v1209_v2 }
0x17eb   :  { %v1295_v16 = vpop.f32.mrb[10].mxu0 }
0x17ec   :  { %v1216_v11 = vmul.f32 1.442695, %v1215_v9  ;;  %v3462_v17 = vpop.f32.mrb[11].mxu0 }
0x17ee   :  { %3891 = vpow2.f32 %v1216_v11 }
0x17f8   :  { %v3892_v13 = vpop.eup %3891 }
0x17f9   :  { %v1219_v14 = vmul.f32 %v3892_v13, %v1218_v12  ;;  %v1803_v12 = vld [vmem:[%s1802_s0] sm:$0x1] }
0x17fb   :  { %v1220_v15 = vadd.f32 %v1219_v14, %v1134_v1 }
0x17fd   :  { %3468 = vmatmul.mubr.msk.f32.vlgmr.msra.gmra.mrb[10].mxu1 %vm1299_vm4, %v1220_v15 }
0x17fe   :  { %3489 = vmatprep.mubr.msk.f32.mxu1 %vm4340_vm0, %v4341_v6  ;;  %3717 = vmatpush3.bf16.msra.mxu1 %v4861_v44 }
0x17ff   :  { %3718 = vmatprep.subr.bf16.mxu1 %v4339_v3 }
0x1802   :  { %3720 = vmatpush3.bf16.msra.mxu1 %v4864_v46 }
0x1803   :  { %3727 = vmatprep.subr.bf16.mxu1 %v4339_v3 }
0x18d0   :  { %v1369_v21 = vpop.f32.mrb[10].mxu1 }
0x18d1   :  { %v1370_v23 = vadd.f32 %v1369_v21, %v1295_v16  ;;  %v3469_v24 = vpop.f32.mrb[11].mxu1 }
0x18d3   :  { %v1374_v25 = vadd.f32 %v1373_v22, %v1370_v23 }
0x18d5   :  { %3479 = vmatmul.mubr.msk.f32.vlgmr.msra.gmra.mrb[12].mxu0 %vm221_vm1, %v1374_v25 }
0x18d6   :  { %3723 = vmatpush3.bf16.msra.mxu0 %v4827_v60  ;;  %3500 = vmatprep.mubr.msk.f32.mxu0 %vm4340_vm0, %v4341_v6 }
0x18d7   :  { %3724 = vmatprep.subr.bf16.mxu0 %v4339_v3 }
0x18da   :  { %3726 = vmatpush3.bf16.msra.mxu0 %v4839_v20 }
0x18db   :  { %3733 = vmatprep.subr.bf16.mxu0 %v4339_v3 }
0x19a8   :  { %v1457_v28 = vpop.f32.mrb[12].mxu0 }
0x19a9   :  { %v1461_v29 = vadd.f32 %v1457_v28, %v1387_v26  ;;  %v3480_v30 = vpop.f32.mrb[13].mxu0 }
0x19ab   :  { %v1462_v31 = vadd.f32 %v1461_v29, %v4856_v27 }
0x19ad   :  { %3893 = vtanh.f32 %v1462_v31  ;;  %v3184_v33 = vmul.f32 -1.442695, %v1462_v31 }
0x19af   :  { %3895 = vpow2.f32 %v3184_v33 }
0x19b7   :  { %v3894_v32 = vpop.eup %3893 }
0x19b8   :  { %1472 = vrot.lane.b32.xlu1 %v3894_v32, %s4342_s29 }
0x19b9   :  { %v3896_v34 = vpop.eup %3895 }
0x19ba   :  { %v1466_v35 = vadd.f32 1.0, %v3896_v34 }
0x19bc   :  { %3897 = vrcp.f32 %v1466_v35  ;;  %v2009_v35 = vld [vmem:[%s2008_s1] sm:$0x1] }
0x19c6   :  { %v3898_v36 = vpop.eup %3897 }
0x19c7   :  { %v1470_v39 = vmul.f32 0.0, %v3898_v36 }
0x1a2a   :  { %v1473_v37 = vpop.permute.xlu1 %1472 }
0x1a2b   :  { %v1475_v38 = vmul.f32 %v3898_v36, %v1473_v37 }
0x1a2d   :  { %1477 = vrot.lane.b32.xlu0 %v1475_v38, %s4343_s3 }
0x1a9f   :  { %v1478_v10 = vpop.permute.xlu0 %1477 }
0x1aa0   :  { %v1480_v40 = vadd.f32 %v1478_v10, %v1470_v39 }
0x1aa2   :  { %3899 = vtanh.f32 %v1480_v40 }
0x1aac   :  { %v3900_v47 = vpop.eup %3899 }
0x1aad   :  { %1483 = vrot.lane.b32.xlu1 %v3900_v47, %s4342_s29 }
0x1b1f   :  { %v1484_v48 = vpop.permute.xlu1 %1483 }
0x1b20   :  { %v1486_v49 = vmul.f32 %v3898_v36, %v1484_v48 }
0x1b22   :  { %1488 = vrot.lane.b32.xlu0 %v1486_v49, %s4343_s3 }
0x1b94   :  { %v1489_v50 = vpop.permute.xlu0 %1488 }
0x1b95   :  { %3490 = vmatmul.mubr.msk.f32.vlgmr.msra.gmra.mrb[12].mxu1 %vm221_vm1, %v1489_v50  ;;  %3501 = vmatmul.mubr.msk.f32.vlgmr.msra.gmra.mrb[14].mxu0 %vm221_vm1, %v1489_v50 }
0x1b96   :  { %3729 = vmatpush3.bf16.msra.mxu1 %v4861_v44  ;;  %3735 = vmatpush3.bf16.msra.mxu0 %v4827_v60 }
0x1b97   :  { %3730 = vmatprep.subr.bf16.mxu1 %v4339_v3  ;;  %3736 = vmatprep.subr.bf16.mxu0 %v4339_v3 }
0x1b98   :  { %3511 = vmatprep.mubr.msk.f32.mxu1 %vm4340_vm0, %v4341_v6  ;;  %3522 = vmatprep.mubr.msk.f32.mxu0 %vm4340_vm0, %v4341_v6 }
0x1b9a   :  { %3732 = vmatpush3.bf16.msra.mxu1 %v4864_v46  ;;  %3738 = vmatpush3.bf16.msra.mxu0 %v4839_v20 }
0x1b9b   :  { %3739 = vmatprep.subr.bf16.mxu1 %v4339_v3  ;;  %3745 = vmatprep.subr.bf16.mxu0 %v4339_v3 }
0x1c68   :  { %v4889_v51 = vpop.f32.mrb[12].mxu1  ;;  %v1664_v52 = vpop.f32.mrb[14].mxu0 }
0x1c69   :  { %v1668_v7 = vadd.f32 %v1664_v52, %v1597_v4  ;;  %v3491_v53 = vpop.f32.mrb[13].mxu1  ;;  %v3502_v54 = vpop.f32.mrb[15].mxu0 }
0x1c6b   :  { %v1669_v55 = vadd.f32 %v1668_v7, %v4856_v27 }
0x1c6d   :  { %3901 = vtanh.f32 %v1669_v55  ;;  %v3187_v57 = vmul.f32 -1.442695, %v1669_v55 }
0x1c6f   :  { %3903 = vpow2.f32 %v3187_v57 }
0x1c77   :  { %v3902_v56 = vpop.eup %3901 }
0x1c78   :  { %1679 = vrot.lane.b32.xlu1 %v3902_v56, %s4342_s29  ;;  %v2215_v56 = vld [vmem:[%s2214_s2] sm:$0x1] }
0x1c79   :  { %v3904_v58 = vpop.eup %3903 }
0x1c7a   :  { %v1673_v59 = vadd.f32 1.0, %v3904_v58 }
0x1c7c   :  { %3905 = vrcp.f32 %v1673_v59 }
0x1c86   :  { %v3906_v61 = vpop.eup %3905 }
0x1c87   :  { %v1677_v0 = vmul.f32 %v3906_v61, %v1480_v40 }
0x1cea   :  { %v1680_v62 = vpop.permute.xlu1 %1679 }
0x1ceb   :  { %v1682_v63 = vmul.f32 %v3906_v61, %v1680_v62 }
0x1ced   :  { %1684 = vrot.lane.b32.xlu0 %v1682_v63, %s4343_s3 }
0x1d5f   :  { %v1685_v1 = vpop.permute.xlu0 %1684 }
0x1d60   :  { %v1687_v2 = vadd.f32 %v1685_v1, %v1677_v0 }
0x1d62   :  { %3907 = vtanh.f32 %v1687_v2 }
0x1d6c   :  { %v3908_v5 = vpop.eup %3907 }
0x1d6d   :  { %1690 = vrot.lane.b32.xlu1 %v3908_v5, %s4342_s29 }
0x1ddf   :  { %v1691_v8 = vpop.permute.xlu1 %1690 }
0x1de0   :  { %v1693_v9 = vmul.f32 %v3906_v61, %v1691_v8 }
0x1de2   :  { %1695 = vrot.lane.b32.xlu0 %v1693_v9, %s4343_s3 }
0x1e54   :  { %v1696_v11 = vpop.permute.xlu0 %1695 }
0x1e55   :  { %3512 = vmatmul.mubr.msk.f32.vlgmr.msra.gmra.mrb[14].mxu1 %vm221_vm1, %v1696_v11  ;;  %3523 = vmatmul.mubr.msk.f32.vlgmr.msra.gmra.mrb[16].mxu0 %vm221_vm1, %v1696_v11 }
0x1e56   :  { %3741 = vmatpush3.bf16.msra.mxu1 %v4861_v44  ;;  %3747 = vmatpush3.bf16.msra.mxu0 %v4827_v60 }
0x1e57   :  { %3742 = vmatprep.subr.bf16.mxu1 %v4339_v3  ;;  %3748 = vmatprep.subr.bf16.mxu0 %v4339_v3 }
0x1e58   :  { %3533 = vmatprep.mubr.msk.f32.mxu1 %vm4340_vm0, %v4341_v6  ;;  %3544 = vmatprep.mubr.msk.f32.mxu0 %vm4340_vm0, %v4341_v6 }
0x1e5a   :  { %3744 = vmatpush3.bf16.msra.mxu1 %v4864_v46  ;;  %3750 = vmatpush3.bf16.msra.mxu0 %v4839_v20 }
0x1e5b   :  { %3751 = vmatprep.subr.bf16.mxu1 %v4339_v3  ;;  %3757 = vmatprep.subr.bf16.mxu0 %v4339_v3 }
0x1f28   :  { %v4914_v13 = vpop.f32.mrb[14].mxu1  ;;  %v1870_v14 = vpop.f32.mrb[16].mxu0 }
0x1f29   :  { %v1874_v15 = vadd.f32 %v1870_v14, %v1803_v12  ;;  %v3513_v16 = vpop.f32.mrb[15].mxu1  ;;  %v3524_v17 = vpop.f32.mrb[17].mxu0 }
0x1f2b   :  { %v1875_v18 = vadd.f32 %v1874_v15, %v4856_v27 }
0x1f2d   :  { %3909 = vtanh.f32 %v1875_v18  ;;  %v3191_v21 = vmul.f32 -1.442695, %v1875_v18 }
0x1f2f   :  { %3911 = vpow2.f32 %v3191_v21  ;;  %v2421_v21 = vld [vmem:[%s2420_s26] sm:$0x1] }
0x1f37   :  { %v3910_v19 = vpop.eup %3909 }
0x1f38   :  { %1885 = vrot.lane.b32.xlu1 %v3910_v19, %s4342_s29 }
0x1f39   :  { %v3912_v22 = vpop.eup %3911 }
0x1f3a   :  { %v1879_v23 = vadd.f32 1.0, %v3912_v22 }
0x1f3c   :  { %3913 = vrcp.f32 %v1879_v23 }
0x1f46   :  { %v3914_v24 = vpop.eup %3913 }
0x1f47   :  { %v1883_v28 = vmul.f32 %v3914_v24, %v1687_v2 }
0x1faa   :  { %v1886_v25 = vpop.permute.xlu1 %1885 }
0x1fab   :  { %v1888_v26 = vmul.f32 %v3914_v24, %v1886_v25 }
0x1fad   :  { %1890 = vrot.lane.b32.xlu0 %v1888_v26, %s4343_s3 }
0x201f   :  { %v1891_v29 = vpop.permute.xlu0 %1890 }
0x2020   :  { %v1893_v30 = vadd.f32 %v1891_v29, %v1883_v28 }
0x2022   :  { %3915 = vtanh.f32 %v1893_v30 }
0x202c   :  { %v3916_v31 = vpop.eup %3915 }
0x202d   :  { %1896 = vrot.lane.b32.xlu1 %v3916_v31, %s4342_s29 }
0x209f   :  { %v1897_v32 = vpop.permute.xlu1 %1896 }
0x20a0   :  { %v1899_v33 = vmul.f32 %v3914_v24, %v1897_v32 }
0x20a2   :  { %1901 = vrot.lane.b32.xlu0 %v1899_v33, %s4343_s3 }
0x2114   :  { %v1902_v34 = vpop.permute.xlu0 %1901 }
0x2115   :  { %3534 = vmatmul.mubr.msk.f32.vlgmr.msra.gmra.mrb[16].mxu1 %vm221_vm1, %v1902_v34  ;;  %3545 = vmatmul.mubr.msk.f32.vlgmr.msra.gmra.mrb[18].mxu0 %vm221_vm1, %v1902_v34 }
0x2116   :  { %3753 = vmatpush3.bf16.msra.mxu1 %v4861_v44  ;;  %3759 = vmatpush3.bf16.msra.mxu0 %v4827_v60 }
0x2117   :  { %3754 = vmatprep.subr.bf16.mxu1 %v4339_v3  ;;  %3760 = vmatprep.subr.bf16.mxu0 %v4339_v3 }
0x2118   :  { %3555 = vmatprep.mubr.msk.f32.mxu1 %vm4340_vm0, %v4341_v6  ;;  %3566 = vmatprep.mubr.msk.f32.mxu0 %vm4340_vm0, %v4341_v6 }
0x211a   :  { %3756 = vmatpush3.bf16.msra.mxu1 %v4864_v46  ;;  %3762 = vmatpush3.bf16.msra.mxu0 %v4839_v20 }
0x211b   :  { %3763 = vmatprep.subr.bf16.mxu1 %v4339_v3  ;;  %3769 = vmatprep.subr.bf16.mxu0 %v4339_v3 }
0x21e8   :  { %v4939_v36 = vpop.f32.mrb[16].mxu1  ;;  %v2076_v37 = vpop.f32.mrb[18].mxu0 }
0x21e9   :  { %v2080_v38 = vadd.f32 %v2076_v37, %v2009_v35  ;;  %v3535_v39 = vpop.f32.mrb[17].mxu1  ;;  %v3546_v10 = vpop.f32.mrb[19].mxu0 }
0x21eb   :  { %v2081_v40 = vadd.f32 %v2080_v38, %v4856_v27 }
0x21ed   :  { %3917 = vtanh.f32 %v2081_v40  ;;  %v3195_v42 = vmul.f32 -1.442695, %v2081_v40 }
0x21ef   :  { %3919 = vpow2.f32 %v3195_v42 }
0x21f7   :  { %v3918_v41 = vpop.eup %3917 }
0x21f8   :  { %2091 = vrot.lane.b32.xlu1 %v3918_v41, %s4342_s29 }
0x21f9   :  { %v3920_v43 = vpop.eup %3919 }
0x21fa   :  { %v2085_v45 = vadd.f32 1.0, %v3920_v43 }
0x21fc   :  { %3921 = vrcp.f32 %v2085_v45 }
0x2206   :  { %v3922_v47 = vpop.eup %3921 }
0x2207   :  { %v2089_v50 = vmul.f32 %v3922_v47, %v1893_v30 }
0x226a   :  { %v2092_v48 = vpop.permute.xlu1 %2091 }
0x226b   :  { %v2094_v49 = vmul.f32 %v3922_v47, %v2092_v48 }
0x226d   :  { %2096 = vrot.lane.b32.xlu0 %v2094_v49, %s4343_s3 }
0x22df   :  { %v2097_v4 = vpop.permute.xlu0 %2096 }
0x22e0   :  { %v2099_v52 = vadd.f32 %v2097_v4, %v2089_v50 }
0x22e2   :  { %3923 = vtanh.f32 %v2099_v52 }
0x22ec   :  { %v3924_v7 = vpop.eup %3923 }
0x22ed   :  { %2102 = vrot.lane.b32.xlu1 %v3924_v7, %s4342_s29 }
0x235f   :  { %v2103_v53 = vpop.permute.xlu1 %2102 }
0x2360   :  { %v2105_v54 = vmul.f32 %v3922_v47, %v2103_v53 }
0x2362   :  { %2107 = vrot.lane.b32.xlu0 %v2105_v54, %s4343_s3 }
0x23d4   :  { %v2108_v55 = vpop.permute.xlu0 %2107 }
0x23d5   :  { %3556 = vmatmul.mubr.msk.f32.vlgmr.msra.gmra.mrb[18].mxu1 %vm221_vm1, %v2108_v55  ;;  %3567 = vmatmul.mubr.msk.f32.vlgmr.msra.gmra.mrb[20].mxu0 %vm221_vm1, %v2108_v55 }
0x23d6   :  { %3765 = vmatpush3.bf16.msra.mxu1 %v4861_v44  ;;  %3771 = vmatpush3.bf16.msra.mxu0 %v4827_v60 }
0x23d7   :  { %3766 = vmatprep.subr.bf16.mxu1 %v4339_v3  ;;  %3772 = vmatprep.subr.bf16.mxu0 %v4339_v3 }
0x23d8   :  { %3577 = vmatprep.mubr.msk.f32.mxu1 %vm4340_vm0, %v4341_v6  ;;  %3588 = vmatprep.mubr.msk.f32.mxu0 %vm4340_vm0, %v4341_v6 }
0x23da   :  { %3768 = vmatpush3.bf16.msra.mxu1 %v4864_v46  ;;  %3774 = vmatpush3.bf16.msra.mxu0 %v4839_v20 }
0x23db   :  { %3775 = vmatprep.subr.bf16.mxu1 %v4339_v3  ;;  %3781 = vmatprep.subr.bf16.mxu0 %v4339_v3 }
0x24a8   :  { %v4964_v57 = vpop.f32.mrb[18].mxu1  ;;  %v2282_v58 = vpop.f32.mrb[20].mxu0 }
0x24a9   :  { %v2286_v59 = vadd.f32 %v2282_v58, %v2215_v56  ;;  %v3557_v61 = vpop.f32.mrb[19].mxu1  ;;  %v3568_v62 = vpop.f32.mrb[21].mxu0 }
0x24ab   :  { %v2287_v63 = vadd.f32 %v2286_v59, %v4856_v27 }
0x24ad   :  { %3925 = vtanh.f32 %v2287_v63  ;;  %v3199_v1 = vmul.f32 -1.442695, %v2287_v63 }
0x24af   :  { %3927 = vpow2.f32 %v3199_v1  ;;  %v2833_v1 = vld [vmem:[%s2832_s4] sm:$0x1] }
0x24b7   :  { %v3926_v0 = vpop.eup %3925 }
0x24b8   :  { %2297 = vrot.lane.b32.xlu1 %v3926_v0, %s4342_s29 }
0x24b9   :  { %v3928_v2 = vpop.eup %3927 }
0x24ba   :  { %v2291_v5 = vadd.f32 1.0, %v3928_v2 }
0x24bc   :  { %3929 = vrcp.f32 %v2291_v5 }
0x24c6   :  { %v3930_v8 = vpop.eup %3929 }
0x24c7   :  { %v2295_v12 = vmul.f32 %v3930_v8, %v2099_v52 }
0x252a   :  { %v2298_v9 = vpop.permute.xlu1 %2297 }
0x252b   :  { %v2300_v11 = vmul.f32 %v3930_v8, %v2298_v9 }
0x252d   :  { %2302 = vrot.lane.b32.xlu0 %v2300_v11, %s4343_s3 }
0x259f   :  { %v2303_v14 = vpop.permute.xlu0 %2302 }
0x25a0   :  { %v2305_v15 = vadd.f32 %v2303_v14, %v2295_v12 }
0x25a2   :  { %3931 = vtanh.f32 %v2305_v15 }
0x25ac   :  { %v3932_v16 = vpop.eup %3931 }
0x25ad   :  { %2308 = vrot.lane.b32.xlu1 %v3932_v16, %s4342_s29 }
0x261f   :  { %v2309_v17 = vpop.permute.xlu1 %2308 }
0x2620   :  { %v2311_v18 = vmul.f32 %v3930_v8, %v2309_v17 }
0x2622   :  { %2313 = vrot.lane.b32.xlu0 %v2311_v18, %s4343_s3 }
0x2694   :  { %v2314_v19 = vpop.permute.xlu0 %2313 }
0x2695   :  { %3578 = vmatmul.mubr.msk.f32.vlgmr.msra.gmra.mrb[20].mxu1 %vm221_vm1, %v2314_v19  ;;  %3589 = vmatmul.mubr.msk.f32.vlgmr.msra.gmra.mrb[22].mxu0 %vm221_vm1, %v2314_v19 }
0x2696   :  { %3777 = vmatpush3.bf16.msra.mxu1 %v4861_v44  ;;  %3783 = vmatpush3.bf16.msra.mxu0 %v4827_v60 }
0x2697   :  { %3778 = vmatprep.subr.bf16.mxu1 %v4339_v3  ;;  %3784 = vmatprep.subr.bf16.mxu0 %v4339_v3 }
0x2698   :  { %3599 = vmatprep.mubr.msk.f32.mxu1 %vm4340_vm0, %v4341_v6  ;;  %3610 = vmatprep.mubr.msk.f32.mxu0 %vm4340_vm0, %v4341_v6 }
0x269a   :  { %3780 = vmatpush3.bf16.msra.mxu1 %v4864_v46  ;;  %3786 = vmatpush3.bf16.msra.mxu0 %v4839_v20 }
0x269b   :  { %3787 = vmatprep.subr.bf16.mxu1 %v4339_v3  ;;  %3793 = vmatprep.subr.bf16.mxu0 %v4339_v3 }
0x2768   :  { %v4989_v22 = vpop.f32.mrb[20].mxu1  ;;  %v2488_v23 = vpop.f32.mrb[22].mxu0 }
0x2769   :  { %v2492_v24 = vadd.f32 %v2488_v23, %v2421_v21  ;;  %v3579_v25 = vpop.f32.mrb[21].mxu1  ;;  %v3590_v26 = vpop.f32.mrb[23].mxu0 }
0x276b   :  { %v2493_v28 = vadd.f32 %v2492_v24, %v4856_v27 }
0x276d   :  { %3933 = vtanh.f32 %v2493_v28  ;;  %v3203_v30 = vmul.f32 -1.442695, %v2493_v28 }
0x276f   :  { %3935 = vpow2.f32 %v3203_v30 }
0x2777   :  { %v3934_v29 = vpop.eup %3933 }
0x2778   :  { %2503 = vrot.lane.b32.xlu1 %v3934_v29, %s4342_s29 }
0x2779   :  { %v3936_v31 = vpop.eup %3935 }
0x277a   :  { %v2497_v32 = vadd.f32 1.0, %v3936_v31 }
0x277c   :  { %3937 = vrcp.f32 %v2497_v32 }
0x2786   :  { %v3938_v33 = vpop.eup %3937 }
0x2787   :  { %v2501_v37 = vmul.f32 %v3938_v33, %v2305_v15 }
0x27ea   :  { %v2504_v34 = vpop.permute.xlu1 %2503 }
0x27eb   :  { %v2506_v35 = vmul.f32 %v3938_v33, %v2504_v34 }
0x27ed   :  { %2508 = vrot.lane.b32.xlu0 %v2506_v35, %s4343_s3 }
0x285f   :  { %v2509_v38 = vpop.permute.xlu0 %2508 }
0x2860   :  { %v2511_v39 = vadd.f32 %v2509_v38, %v2501_v37 }
0x2862   :  { %3939 = vtanh.f32 %v2511_v39 }
0x286c   :  { %v3940_v10 = vpop.eup %3939 }
0x286d   :  { %2514 = vrot.lane.b32.xlu1 %v3940_v10, %s4342_s29 }
0x28df   :  { %v2515_v40 = vpop.permute.xlu1 %2514 }
0x28e0   :  { %v2517_v41 = vmul.f32 %v3938_v33, %v2515_v40 }
0x28e2   :  { %2519 = vrot.lane.b32.xlu0 %v2517_v41, %s4343_s3 }
0x2954   :  { %v2520_v42 = vpop.permute.xlu0 %2519 }
0x2955   :  { %3600 = vmatmul.mubr.msk.f32.vlgmr.msra.gmra.mrb[22].mxu1 %vm221_vm1, %v2520_v42  ;;  %3611 = vmatmul.mubr.msk.f32.vlgmr.msra.gmra.mrb[24].mxu0 %vm221_vm1, %v2520_v42 }
0x2956   :  { %3789 = vmatpush3.bf16.msra.mxu1 %v4861_v44  ;;  %3795 = vmatpush3.bf16.msra.mxu0 %v4827_v60  ;;  %v2627_v60 = vld [vmem:[%s2626_s6] sm:$0x1] }
0x2957   :  { %3790 = vmatprep.subr.bf16.mxu1 %v4339_v3  ;;  %3796 = vmatprep.subr.bf16.mxu0 %v4339_v3 }
0x2958   :  { %3621 = vmatprep.mubr.msk.f32.mxu1 %vm4340_vm0, %v4341_v6  ;;  %3632 = vmatprep.mubr.msk.f32.mxu0 %vm4340_vm0, %v4341_v6 }
0x295a   :  { %3792 = vmatpush3.bf16.msra.mxu1 %v4864_v46  ;;  %3798 = vmatpush3.bf16.msra.mxu0 %v4839_v20 }
0x295b   :  { %3799 = vmatprep.subr.bf16.mxu1 %v4339_v3 }
0x2a28   :  { %v5013_v43 = vpop.f32.mrb[22].mxu1  ;;  %v2694_v45 = vpop.f32.mrb[24].mxu0 }
0x2a29   :  { %v2698_v47 = vadd.f32 %v2694_v45, %v2627_v60  ;;  %v3601_v48 = vpop.f32.mrb[23].mxu1  ;;  %v3612_v49 = vpop.f32.mrb[25].mxu0 }
0x2a2b   :  { %v2699_v50 = vadd.f32 %v2698_v47, %v4856_v27 }
0x2a2d   :  { %3941 = vtanh.f32 %v2699_v50  ;;  %v3207_v20 = vmul.f32 -1.442695, %v2699_v50 }
0x2a2f   :  { %3943 = vpow2.f32 %v3207_v20 }
0x2a37   :  { %v3942_v4 = vpop.eup %3941 }
0x2a38   :  { %2709 = vrot.lane.b32.xlu1 %v3942_v4, %s4342_s29 }
0x2a39   :  { %v3944_v52 = vpop.eup %3943 }
0x2a3a   :  { %v2703_v7 = vadd.f32 1.0, %v3944_v52 }
0x2a3c   :  { %3945 = vrcp.f32 %v2703_v7 }
0x2a46   :  { %v3946_v53 = vpop.eup %3945 }
0x2a47   :  { %v2707_v56 = vmul.f32 %v3946_v53, %v2511_v39 }
0x2aaa   :  { %v2710_v54 = vpop.permute.xlu1 %2709 }
0x2aab   :  { %v2712_v55 = vmul.f32 %v3946_v53, %v2710_v54 }
0x2aad   :  { %2714 = vrot.lane.b32.xlu0 %v2712_v55, %s4343_s3 }
0x2b1f   :  { %v2715_v58 = vpop.permute.xlu0 %2714 }
0x2b20   :  { %v2717_v59 = vadd.f32 %v2715_v58, %v2707_v56 }
0x2b22   :  { %3947 = vtanh.f32 %v2717_v59 }
0x2b2c   :  { %v3948_v61 = vpop.eup %3947 }
0x2b2d   :  { %2720 = vrot.lane.b32.xlu1 %v3948_v61, %s4342_s29 }
0x2b9f   :  { %v2721_v62 = vpop.permute.xlu1 %2720 }
0x2ba0   :  { %v2723_v63 = vmul.f32 %v3946_v53, %v2721_v62 }
0x2ba2   :  { %2725 = vrot.lane.b32.xlu0 %v2723_v63, %s4343_s3 }
0x2c14   :  { %v2726_v0 = vpop.permute.xlu0 %2725 }
0x2c15   :  { %3622 = vmatmul.mubr.msk.f32.vlgmr.msra.gmra.mrb[24].mxu1 %vm221_vm1, %v2726_v0  ;;  %3633 = vmatmul.mubr.msk.f32.vlgmr.msra.gmra.mrb[26].mxu0 %vm221_vm1, %v2726_v0 }
0x2c16   :  { %3801 = vmatpush3.bf16.msra.mxu1 %v4861_v44  ;;  %3643 = vmatprep.mubr.msk.f32.mxu1 %vm4340_vm0, %v4341_v6 }
0x2c17   :  { %3802 = vmatprep.subr.bf16.mxu1 %v4339_v3 }
0x2c1a   :  { %3804 = vmatpush3.bf16.msra.mxu1 %v4864_v46 }
0x2ce8   :  { %v2795_v2 = vpop.f32.mrb[24].mxu1  ;;  %v2900_v5 = vpop.f32.mrb[26].mxu0 }
0x2ce9   :  { %v2904_v8 = vadd.f32 %v2900_v5, %v2833_v1  ;;  %v3623_v9 = vpop.f32.mrb[25].mxu1  ;;  %v3634_v11 = vpop.f32.mrb[27].mxu0 }
0x2ceb   :  { %v2905_v12 = vadd.f32 %v2904_v8, %v4856_v27  ;;  %v5035_v27 = vld [vmem:[#allocation16] sm:$0x1] }
0x2cec   :  { %v1766_v23 = vadd.f32 %v4914_v13, %v5035_v27  ;;  %v5041_v24 = vadd.f32 %v4964_v57, %v5035_v27  ;;  %v5046_v26 = vadd.f32 %v5013_v43, %v5035_v27  ;;  %v1972_v57 = vadd.f32 %v4939_v36, %v5035_v27 }
0x2ced   :  { %3949 = vtanh.f32 %v2905_v12  ;;  %v3211_v6 = vmul.f32 -1.442695, %v2905_v12  ;;  %v1559_v31 = vadd.f32 %v4889_v51, %v5035_v27  ;;  %v2384_v33 = vadd.f32 %v4989_v22, %v5035_v27 }
0x2cee   :  { %v1769_v25 = vsel %vm1562_vm5, %v1766_v23, -inf  ;;  %v2181_v28 = vsel %vm1562_vm5, %v5041_v24, -inf  ;;  %v2593_v29 = vsel %vm1562_vm5, %v5046_v26, -inf  ;;  %v1975_v32 = vsel %vm1562_vm5, %v1972_v57, -inf }
0x2cef   :  { %3951 = vpow2.f32 %v3211_v6  ;;  %v1563_v34 = vsel %vm1562_vm5, %v1559_v31, -inf  ;;  %v2796_v35 = vadd.f32 %v2795_v2, %v5035_v27  ;;  %v2387_v37 = vsel %vm1562_vm5, %v2384_v33, -inf }
0x2cf1   :  { %v2799_v38 = vsel %vm1562_vm5, %v2796_v35, -inf }
0x2cf7   :  { %v3950_v44 = vpop.eup %3949 }
0x2cf8   :  { %2915 = vrot.lane.b32.xlu1 %v3950_v44, %s4342_s29 }
0x2cf9   :  { %v3952_v3 = vpop.eup %3951 }
0x2cfa   :  { %v2909_v46 = vadd.f32 1.0, %v3952_v3 }
0x2cfc   :  { %3953 = vrcp.f32 %v2909_v46 }
0x2d06   :  { %v3954_v14 = vpop.eup %3953 }
0x2d07   :  { %v2913_v17 = vmul.f32 %v3954_v14, %v2717_v59 }
0x2d6a   :  { %v2916_v15 = vpop.permute.xlu1 %2915 }
0x2d6b   :  { %v2918_v16 = vmul.f32 %v3954_v14, %v2916_v15 }
0x2d6d   :  { %2920 = vrot.lane.b32.xlu0 %v2918_v16, %s4343_s3 }
0x2ddf   :  { %v2921_v18 = vpop.permute.xlu0 %2920 }
0x2de0   :  { %v2923_v19 = vadd.f32 %v2921_v18, %v2913_v17 }
0x2de2   :  { %3955 = vtanh.f32 %v2923_v19 }
0x2dec   :  { %v3956_v21 = vpop.eup %3955 }
0x2ded   :  { %2926 = vrot.lane.b32.xlu1 %v3956_v21, %s4342_s29  ;;  %s3106_s29 = sshll.u32 %s4344_s8, 4  ;;  %s3107_s29 = int_to_ptr.vmem [resolvable:$true] %s3106_s29 }
0x2dee   :  { %s4241_s9 = scalar_lea.vmem %s3107_s29, 16  ;;  %s4245_s12 = scalar_lea.vmem %s3107_s29, 32 }
0x2def   :  { %p4242_p7 = scmp.ne.s32.totalorder %s3107_s29, %s4241_s9  ;;  %p4246_p8 = scmp.lt.s32.totalorder %s3107_s29, %s3107_s29 }
0x2df0   :  { %p4247_p9 = scmp.lt.s32.totalorder %s4245_s12, %s4241_s9 }
0x2df2   :  { %p4248_p10 = por %p4247_p9, %p4246_p8 }
0x2df4   :  { %p4249_p11 = pnand %p4248_p10, %p4242_p7 }
0x2e11   :  { %1770 = vmax.xlane.f32.xlu1 %v1769_v25 }
0x2e15   :  { %2182 = vmax.xlane.f32.xlu1 %v2181_v28 }
0x2e19   :  { %2594 = vmax.xlane.f32.xlu1 %v2593_v29 }
0x2e5f   :  { %v2927_v13 = vpop.permute.xlu1 %2926 }
0x2e60   :  { %v2929_v30 = vmul.f32 %v3954_v14, %v2927_v13 }
0x2e62   :  { %2931 = vrot.lane.b32.xlu0 %v2929_v30, %s4343_s3  ;;  %s4345_s3 = smov [#allocation22]  }
0x2e63   :  { %s3096_s30 = sshll.u32 %s4345_s3, 4  ;;  %s3097_s30 = int_to_ptr.vmem [resolvable:$true] %s3096_s30 }
0x2e81   :  { %1976 = vmax.xlane.f32.xlu0 %v1975_v32 }
0x2e85   :  { %1564 = vmax.xlane.f32.xlu0 %v1563_v34 }
0x2e89   :  { %2388 = vmax.xlane.f32.xlu0 %v2387_v37 }
0x2e8d   :  { %2800 = vmax.xlane.f32.xlu0 %v2799_v38 }
0x2e9e   :  { %v1771_v36 = vpop.xlane.xlu1 %1770 }
0x2e9f   :  { %v1772_v39 = vsub.f32 %v1766_v23, %v1771_v36 }
0x2ea1   :  { %v1773_v51 = vmul.f32 1.442695, %v1772_v39 }
0x2ea2   :  { %v2183_v63 = vpop.xlane.xlu1 %2182 }
0x2ea3   :  { %3957 = vpow2.f32 %v1773_v51  ;;  %v5076_v1 = vsub.f32 %v5041_v24, %v2183_v63 }
0x2ea5   :  { %v2185_v8 = vmul.f32 1.442695, %v5076_v1 }
0x2ea6   :  { %v2595_v5 = vpop.xlane.xlu1 %2594 }
0x2ea7   :  { %v5081_v9 = vsub.f32 %v5046_v26, %v2595_v5 }
0x2ea9   :  { %v2597_v11 = vmul.f32 1.442695, %v5081_v9 }
0x2ead   :  { %v3958_v10 = vpop.eup %3957 }
0x2eae   :  { %v1775_v40 = vsel %vm1562_vm5, %v3958_v10, 0.0 }
0x2eaf   :  { %1776 = vadd.xlane.f32.xlu0 %v1775_v40 }
0x2ed4   :  { %v2932_v22 = vpop.permute.xlu0 %2931 }
0x2ed5   :  { %3644 = vmatmul.mubr.msk.f32.vlgmr.msra.gmra.mrb[26].mxu1 %vm221_vm1, %v2932_v22 }
0x2f0e   :  { %v1977_v41 = vpop.xlane.xlu0 %1976 }
0x2f0f   :  { %v5073_v0 = vsub.f32 %v1972_v57, %v1977_v41 }
0x2f11   :  { %v1979_v2 = vmul.f32 1.442695, %v5073_v0 }
0x2f12   :  { %v1565_v42 = vpop.xlane.xlu0 %1564 }
0x2f13   :  { %v1566_v60 = vsub.f32 %v1559_v31, %v1565_v42 }
0x2f15   :  { %v1567_v43 = vmul.f32 1.442695, %v1566_v60 }
0x2f16   :  { %v2389_v45 = vpop.xlane.xlu0 %2388 }
0x2f17   :  { %3959 = vpow2.f32 %v1567_v43  ;;  %v2390_v47 = vsub.f32 %v2384_v33, %v2389_v45 }
0x2f19   :  { %v2391_v48 = vmul.f32 1.442695, %v2390_v47 }
0x2f1a   :  { %v2801_v49 = vpop.xlane.xlu0 %2800 }
0x2f1b   :  { %3961 = vpow2.f32 %v2391_v48  ;;  %v2802_v50 = vsub.f32 %v2796_v35, %v2801_v49 }
0x2f1d   :  { %v2803_v4 = vmul.f32 1.442695, %v2802_v50 }
0x2f1f   :  { %3963 = vpow2.f32 %v2803_v4 }
0x2f21   :  { %v3960_v20 = vpop.eup %3959 }
0x2f22   :  { %v1569_v52 = vsel %vm1562_vm5, %v3960_v20, 0.0 }
0x2f23   :  { %1570 = vadd.xlane.f32.xlu0 %v1569_v52 }
0x2f25   :  { %v3962_v7 = vpop.eup %3961 }
0x2f26   :  { %v2393_v53 = vsel %vm1562_vm5, %v3962_v7, 0.0 }
0x2f27   :  { %2394 = vadd.xlane.f32.xlu0 %v2393_v53 }
0x2f29   :  { %v3964_v54 = vpop.eup %3963 }
0x2f2a   :  { %v2805_v55 = vsel %vm1562_vm5, %v3964_v54, 0.0 }
0x2f2b   :  { %2806 = vadd.xlane.f32.xlu0 %v2805_v55 }
0x2f3c   :  { %v1777_v56 = vpop.xlane.xlu0 %1776 }
0x2f3d   :  { %3965 = vlog2.f32 %v1777_v56 }
0x2f3e   :  { %3967 = vpow2.f32 %v1979_v2 }
0x2f3f   :  { %3969 = vpow2.f32 %v2185_v8 }
0x2f40   :  { %3971 = vpow2.f32 %v2597_v11 }
0x2f47   :  { %v3966_v58 = vpop.eup %3965 }
0x2f48   :  { %v1779_v59 = vmul.f32 0.6931472, %v3966_v58  ;;  %v3968_v46 = vpop.eup %3967 }
0x2f49   :  { %v1981_v14 = vsel %vm1562_vm5, %v3968_v46, 0.0  ;;  %v3970_v15 = vpop.eup %3969 }
0x2f4a   :  { %v5069_v61 = vsub.f32 %v1772_v39, %v1779_v59  ;;  %v2187_v17 = vsel %vm1562_vm5, %v3970_v15, 0.0  ;;  %v3972_v18 = vpop.eup %3971  ;;  %v1385_v39 = vlaneseq }
0x2f4b   :  { %v2599_v21 = vsel %vm1562_vm5, %v3972_v18, 0.0 }
0x2f4c   :  { %v1781_v62 = vsel %vm1562_vm5, %v5069_v61, -inf  ;;  %v5104_v41 = vand.u32 127, %v1385_v39  ;;  %v3038_v5 = vrot.slane %v5069_v61, 7 }
0x2f4d   :  { %1782 = vmax.xlane.f32.xlu0 %v1781_v62 }
0x2fa8   :  { %v3001_v12 = vpop.f32.mrb[26].mxu1 }
0x2fa9   :  { %v3002_v44 = vadd.f32 %v3001_v12, %v5035_v27  ;;  %v3645_v6 = vpop.f32.mrb[27].mxu1 }
0x2fab   :  { %v3005_v3 = vsel %vm1562_vm5, %v3002_v44, -inf }
0x2fac   :  { %3006 = vmax.xlane.f32.xlu1 %v3005_v3 }
0x2fb0   :  { %1982 = vadd.xlane.f32.xlu1 %v1981_v14  ;;  %v1571_v16 = vpop.xlane.xlu0 %1570 }
0x2fb1   :  { %3973 = vlog2.f32 %v1571_v16 }
0x2fb4   :  { %v2395_v19 = vpop.xlane.xlu0 %2394  ;;  %2188 = vadd.xlane.f32.xlu1 %v2187_v17 }
0x2fb5   :  { %3975 = vlog2.f32 %v2395_v19 }
0x2fb8   :  { %v2807_v27 = vpop.xlane.xlu0 %2806  ;;  %2600 = vadd.xlane.f32.xlu1 %v2599_v21 }
0x2fb9   :  { %3977 = vlog2.f32 %v2807_v27 }
0x2fbb   :  { %v3974_v23 = vpop.eup %3973 }
0x2fbc   :  { %v1573_v24 = vmul.f32 0.6931472, %v3974_v23 }
0x2fbe   :  { %v5089_v25 = vsub.f32 %v1566_v60, %v1573_v24 }
0x2fbf   :  { %v3976_v26 = vpop.eup %3975 }
0x2fc0   :  { %v2397_v28 = vmul.f32 0.6931472, %v3976_v26  ;;  %v1575_v29 = vsel %vm1562_vm5, %v5089_v25, -inf }
0x2fc1   :  { %1576 = vmax.xlane.f32.xlu0 %v1575_v29 }
0x2fc2   :  { %v5093_v13 = vsub.f32 %v2390_v47, %v2397_v28 }
0x2fc3   :  { %v3978_v30 = vpop.eup %3977 }
0x2fc4   :  { %v2809_v57 = vmul.f32 0.6931472, %v3978_v30  ;;  %v2399_v31 = vsel %vm1562_vm5, %v5093_v13, -inf  ;;  %v3047_v46 = vrot.slane %v5093_v13, 4 }
0x2fc5   :  { %2400 = vmax.xlane.f32.xlu0 %v2399_v31 }
0x2fc6   :  { %v5097_v32 = vsub.f32 %v2802_v50, %v2809_v57 }
0x2fc8   :  { %v2811_v33 = vsel %vm1562_vm5, %v5097_v32, -inf  ;;  %v3053_v23 = vrot.slane %v5097_v32, 2 }
0x2fc9   :  { %2812 = vmax.xlane.f32.xlu0 %v2811_v33 }
0x2fda   :  { %v1783_v10 = vpop.xlane.xlu0 %1782 }
0x2fdb   :  { %vm1784_vm6 = vcmp.eq.f32.partialorder %v5069_v61, %v1783_v10 }
0x2fdc   :  { %v1785_v47 = vsel %vm1784_vm6, %v5104_v41, 128 }
0x2fdd   :  { %v5114_v52 = vsel %vm1562_vm5, %v1785_v47, 2147483647 }
0x2fde   :  { %v1788_v62 = vshra.s32 %v5114_v52, 16 }
0x3039   :  { %v3007_v34 = vpop.xlane.xlu1 %3006 }
0x303a   :  { %v5101_v35 = vsub.f32 %v3002_v44, %v3007_v34  ;;  %v3058_v44 = vsel %vm1562_vm5, %v5089_v25, %v3038_v5 }
0x303c   :  { %v3009_v37 = vmul.f32 1.442695, %v5101_v35 }
0x303d   :  { %v1983_v38 = vpop.xlane.xlu1 %1982 }
0x303e   :  { %3979 = vpow2.f32 %v3009_v37 }
0x303f   :  { %3981 = vlog2.f32 %v1983_v38 }
0x3041   :  { %v2189_v36 = vpop.xlane.xlu1 %2188 }
0x3042   :  { %3983 = vlog2.f32 %v2189_v36 }
0x3045   :  { %v2601_v51 = vpop.xlane.xlu1 %2600 }
0x3046   :  { %3985 = vlog2.f32 %v2601_v51 }
0x3048   :  { %v3980_v40 = vpop.eup %3979 }
0x3049   :  { %v3982_v22 = vpop.eup %3981  ;;  %v3011_v42 = vsel %vm1562_vm5, %v3980_v40, 0.0 }
0x304a   :  { %v1985_v60 = vmul.f32 0.6931472, %v3982_v22  ;;  %3012 = vadd.xlane.f32.xlu1 %v3011_v42  ;;  %v1787_v22 = vand.u32 65535, %v5114_v52 }
0x304c   :  { %v3984_v43 = vpop.eup %3983  ;;  %v1986_v45 = vsub.f32 %v5073_v0, %v1985_v60  ;;  %v5128_v0 = vcvt.s32.f32 %v1788_v62 }
0x304d   :  { %v2191_v48 = vmul.f32 0.6931472, %v3984_v43 }
0x304e   :  { %v1577_v49 = vpop.xlane.xlu0 %1576  ;;  %v1987_v50 = vsel %vm1562_vm5, %v1986_v45, -inf  ;;  %v3041_v8 = vrot.slane %v1986_v45, 6 }
0x304f   :  { %vm1578_vm7 = vcmp.eq.f32.partialorder %v5089_v25, %v1577_v49  ;;  %1988 = vmax.xlane.f32.xlu1 %v1987_v50  ;;  %v2192_v4 = vsub.f32 %v5076_v1, %v2191_v48  ;;  %v1789_v48 = vcvt.s32.f32 %v1787_v22 }
0x3050   :  { %v3986_v20 = vpop.eup %3985  ;;  %v1579_v7 = vsel %vm1578_vm7, %v5104_v41, 128  ;;  %v3060_v16 = vsel %vm3059_vm10, %v3058_v44, %v3041_v8 }
0x3051   :  { %v2603_v53 = vmul.f32 0.6931472, %v3986_v20  ;;  %v5118_v54 = vsel %vm1562_vm5, %v1579_v7, 2147483647  ;;  %v2193_v55 = vsel %vm1562_vm5, %v2192_v4, -inf  ;;  %v3044_v11 = vrot.slane %v2192_v4, 5 }
0x3052   :  { %v1582_v56 = vshra.s32 %v5118_v54, 16  ;;  %v2401_v2 = vpop.xlane.xlu0 %2400  ;;  %v1581_v30 = vand.u32 65535, %v5118_v54 }
0x3053   :  { %2194 = vmax.xlane.f32.xlu1 %v2193_v55  ;;  %v2604_v58 = vsub.f32 %v5081_v9, %v2603_v53  ;;  %vm2402_vm8 = vcmp.eq.f32.partialorder %v5093_v13, %v2401_v2  ;;  %v3062_v18 = vsel %vm3061_vm11, %v3060_v16, %v3044_v11 }
0x3054   :  { %v5123_v59 = vcvt.s32.f32 %v1582_v56  ;;  %v2403_v61 = vsel %vm2402_vm8, %v5104_v41, 128  ;;  %v3064_v57 = vsel %vm3063_vm13, %v3062_v18, %v3047_v46  ;;  %v1583_v40 = vcvt.s32.f32 %v1581_v30 }
0x3055   :  { %v2605_v63 = vsel %vm1562_vm5, %v2604_v58, -inf  ;;  %v3050_v17 = vrot.slane %v2604_v58, 3  ;;  %v5147_v24 = vsel %vm1562_vm5, %v2403_v61, 2147483647 }
0x3056   :  { %1585 = vmin.xlane.f32.xlu0 %v5123_v59  ;;  %v2813_v6 = vpop.xlane.xlu0 %2812  ;;  %v2406_v34 = vshra.s32 %v5147_v24, 16  ;;  %v2405_v62 = vand.u32 65535, %v5147_v24 }
0x3057   :  { %2606 = vmax.xlane.f32.xlu1 %v2605_v63  ;;  %vm2814_vm0 = vcmp.eq.f32.partialorder %v5097_v32, %v2813_v6  ;;  %v3066_v33 = vsel %vm3065_vm14, %v3064_v57, %v3050_v17 }
0x3058   :  { %v2815_v10 = vsel %vm2814_vm0, %v5104_v41, 128  ;;  %v3068_v32 = vsel %vm3067_vm15, %v3066_v33, %v3053_v23  ;;  %v2408_v43 = vcvt.s32.f32 %v2406_v34 }
0x305a   :  { %1791 = vmin.xlane.f32.xlu0 %v5128_v0 }
0x30d7   :  { %v3013_v1 = vpop.xlane.xlu1 %3012 }
0x30d8   :  { %3987 = vlog2.f32 %v3013_v1 }
0x30dc   :  { %v1989_v9 = vpop.xlane.xlu1 %1988 }
0x30dd   :  { %vm1990_vm9 = vcmp.eq.f32.partialorder %v1986_v45, %v1989_v9  ;;  %v2816_v45 = vsel %vm1562_vm5, %v2815_v10, 2147483647  ;;  %v2407_v9 = vcvt.s32.f32 %v2405_v62 }
0x30de   :  { %v1991_v12 = vsel %vm1990_vm9, %v5104_v41, 128  ;;  %v2818_v49 = vshra.s32 %v2816_v45, 16  ;;  %v2817_v44 = vand.u32 65535, %v2816_v45 }
0x30df   :  { %v5137_v3 = vsel %vm1562_vm5, %v1991_v12, 2147483647 }
0x30e0   :  { %v2195_v14 = vpop.xlane.xlu1 %2194  ;;  %v1994_v15 = vshra.s32 %v5137_v3, 16  ;;  %v2820_v20 = vcvt.s32.f32 %v2818_v49  ;;  %v1993_v52 = vand.u32 65535, %v5137_v3  ;;  %v2819_v61 = vcvt.s32.f32 %v2817_v44 }
0x30e1   :  { %vm2196_vm12 = vcmp.eq.f32.partialorder %v2192_v4, %v2195_v14 }
0x30e2   :  { %v3988_v19 = vpop.eup %3987  ;;  %v2197_v21 = vsel %vm2196_vm12, %v5104_v41, 128  ;;  %v1996_v27 = vcvt.s32.f32 %v1994_v15  ;;  %v1995_v53 = vcvt.s32.f32 %v1993_v52 }
0x30e3   :  { %v3015_v25 = vmul.f32 0.6931472, %v3988_v19  ;;  %v2198_v26 = vsel %vm1562_vm5, %v2197_v21, 2147483647  ;;  %v5150_v28 = vpop.xlane.xlu0 %1585 }
0x30e4   :  { %1997 = vmin.xlane.f32.xlu0 %v1996_v27  ;;  %v2607_v29 = vpop.xlane.xlu1 %2606  ;;  %v2200_v13 = vshra.s32 %v2198_v26, 16  ;;  %vm1587_vm3 = vcmp.eq.f32.partialorder %v5123_v59, %v5150_v28  ;;  %v2199_v54 = vand.u32 65535, %v2198_v26 }
0x30e5   :  { %vm2608_vm1 = vcmp.eq.f32.partialorder %v2604_v58, %v2607_v29  ;;  %v3016_v31 = vsub.f32 %v5101_v35, %v3015_v25  ;;  %v1588_v47 = vsel %vm1587_vm3, %v1583_v40, inf }
0x30e6   :  { %v2609_v37 = vsel %vm2608_vm1, %v5104_v41, 128  ;;  %v2202_v38 = vcvt.s32.f32 %v2200_v13  ;;  %v2201_v59 = vcvt.s32.f32 %v2199_v54 }
0x30e7   :  { %v2610_v36 = vsel %vm1562_vm5, %v2609_v37, 2147483647  ;;  %v3017_v39 = vsel %vm1562_vm5, %v3016_v31, -inf  ;;  %v3056_v51 = vrot.slane %v3016_v31, 1  ;;  %v1792_v35 = vpop.xlane.xlu0 %1791 }
0x30e8   :  { %2203 = vmin.xlane.f32.xlu0 %v2202_v38  ;;  %3018 = vmax.xlane.f32.xlu1 %v3017_v39  ;;  %v2612_v60 = vshra.s32 %v2610_v36, 16  ;;  %vm1793_vm4 = vcmp.eq.f32.partialorder %v5128_v0, %v1792_v35  ;;  %v2611_v2 = vand.u32 65535, %v2610_v36  ;;  %v1798_v17 = vcvt.f32.s32 %v1792_v35 }
0x30e9   :  { %v3070_v42 = vsel %vm3069_vm2, %v3068_v32, %v3056_v51  ;;  %v1794_v4 = vsel %vm1793_vm4, %v1789_v48, inf }
0x30ea   :  { %3071 = vst [vmem:[#allocation22] sm:$0xff] %v3070_v42  ;;  %v2614_v50 = vcvt.s32.f32 %v2612_v60  ;;  %v2613_v3 = vcvt.s32.f32 %v2611_v2  ;;  %v1799_v19 = vshll.u32 %v1798_v17, 16 }
0x30ec   :  { %2409 = vmin.xlane.f32.xlu0 %v2408_v43  ;;  %1589 = vmin.xlane.f32.xlu1 %v1588_v47 }
0x30f0   :  { %2615 = vmin.xlane.f32.xlu0 %v2614_v50  ;;  %1795 = vmin.xlane.f32.xlu1 %v1794_v4 }
0x30f4   :  { %2821 = vmin.xlane.f32.xlu0 %v2820_v20 }
0x3171   :  { %v1998_v7 = vpop.xlane.xlu0 %1997 }
0x3172   :  { %vm1999_vm6 = vcmp.eq.f32.partialorder %v1996_v27, %v1998_v7  ;;  %v2004_v21 = vcvt.f32.s32 %v1998_v7  ;;  %v1592_v27 = vcvt.f32.s32 %v5150_v28 }
0x3173   :  { %v2000_v55 = vsel %vm1999_vm6, %v1995_v53, inf }
0x3174   :  { %2001 = vmin.xlane.f32.xlu1 %v2000_v55  ;;  %v2005_v26 = vshll.u32 %v2004_v21, 16  ;;  %v1593_v30 = vshll.u32 %v1592_v27, 16 }
0x3175   :  { %v2204_v56 = vpop.xlane.xlu0 %2203  ;;  %v3019_v58 = vpop.xlane.xlu1 %3018 }
0x3176   :  { %vm3020_vm7 = vcmp.eq.f32.partialorder %v3016_v31, %v3019_v58  ;;  %vm2205_vm8 = vcmp.eq.f32.partialorder %v2202_v38, %v2204_v56  ;;  %v2210_v29 = vcvt.f32.s32 %v2204_v56 }
0x3177   :  { %v3021_v63 = vsel %vm3020_vm7, %v5104_v41, 128  ;;  %v2206_v0 = vsel %vm2205_vm8, %v2201_v59, inf }
0x3178   :  { %v3022_v1 = vsel %vm1562_vm5, %v3021_v63, 2147483647  ;;  %2207 = vmin.xlane.f32.xlu1 %v2206_v0  ;;  %v2211_v38 = vshll.u32 %v2210_v29, 16 }
0x3179   :  { %v3024_v5 = vshra.s32 %v3022_v1, 16  ;;  %v2410_v8 = vpop.xlane.xlu0 %2409  ;;  %v1590_v15 = vpop.xlane.xlu1 %1589  ;;  %v3023_v33 = vand.u32 65535, %v3022_v1 }
0x317a   :  { %vm2411_vm9 = vcmp.eq.f32.partialorder %v2408_v43, %v2410_v8  ;;  %v1591_v24 = vcvt.f32.s32 %v1590_v15  ;;  %v2416_v36 = vcvt.f32.s32 %v2410_v8 }
0x317b   :  { %v2412_v11 = vsel %vm2411_vm9, %v2407_v9, inf  ;;  %v3026_v12 = vcvt.s32.f32 %v3024_v5  ;;  %v3025_v40 = vcvt.s32.f32 %v3023_v33 }
0x317c   :  { %2413 = vmin.xlane.f32.xlu1 %v2412_v11  ;;  %v1594_v34 = vadd.s32 %v1593_v30, %v1591_v24  ;;  %v2417_v22 = vshll.u32 %v2416_v36, 16 }
0x317d   :  { %v2616_v6 = vpop.xlane.xlu0 %2615  ;;  %3027 = vmin.xlane.f32.xlu0 %v3026_v12  ;;  %v1796_v16 = vpop.xlane.xlu1 %1795 }
0x317e   :  { %vm2617_vm12 = vcmp.eq.f32.partialorder %v2614_v50, %v2616_v6  ;;  %v1797_v18 = vcvt.f32.s32 %v1796_v16  ;;  %v2622_v42 = vcvt.f32.s32 %v2616_v6 }
0x317f   :  { %v2618_v46 = vsel %vm2617_vm12, %v2613_v3, inf }
0x3180   :  { %2619 = vmin.xlane.f32.xlu1 %v2618_v46  ;;  %v1800_v23 = vadd.s32 %v1799_v19, %v1797_v18  ;;  %v2623_v4 = vshll.u32 %v2622_v42, 16 }
0x3181   :  { %v5173_v41 = vpop.xlane.xlu0 %2821 }
0x3182   :  { %vm2823_vm0 = vcmp.eq.f32.partialorder %v2820_v20, %v5173_v41  ;;  %v3072_v57 = vrot.slane %v1800_v23, 7 }
0x3183   :  { %v2824_v14 = vsel %vm2823_vm0, %v2819_v61, inf }
0x3184   :  { %2825 = vmin.xlane.f32.xlu1 %v2824_v14  ;;  %v3079_v10 = vsel %vm1562_vm5, %v1594_v34, %v3072_v57 }
0x3201   :  { %v2002_v25 = vpop.xlane.xlu1 %2001 }
0x3202   :  { %v2003_v13 = vcvt.f32.s32 %v2002_v25 }
0x3204   :  { %v2006_v31 = vadd.s32 %v2005_v26, %v2003_v13 }
0x3205   :  { %v2208_v37 = vpop.xlane.xlu1 %2207 }
0x3206   :  { %v3073_v39 = vrot.slane %v2006_v31, 6  ;;  %v2209_v51 = vcvt.f32.s32 %v2208_v37 }
0x3208   :  { %v3080_v28 = vsel %vm3059_vm10, %v3079_v10, %v3073_v39  ;;  %v2212_v32 = vadd.s32 %v2211_v38, %v2209_v51 }
0x3209   :  { %v2414_v35 = vpop.xlane.xlu1 %2413 }
0x320a   :  { %v3074_v60 = vrot.slane %v2212_v32, 5  ;;  %v2415_v43 = vcvt.f32.s32 %v2414_v35  ;;  %v5179_v45 = vpop.xlane.xlu0 %3027 }
0x320b   :  { %vm3029_vm1 = vcmp.eq.f32.partialorder %v3026_v12, %v5179_v45 }
0x320c   :  { %v3081_v47 = vsel %vm3061_vm11, %v3080_v28, %v3074_v60  ;;  %v2418_v48 = vadd.s32 %v2417_v22, %v2415_v43  ;;  %v3030_v49 = vsel %vm3029_vm1, %v3025_v40, inf }
0x320d   :  { %v2620_v50 = vpop.xlane.xlu1 %2619  ;;  %3031 = vmin.xlane.f32.xlu1 %v3030_v49 }
0x320e   :  { %v3075_v20 = vrot.slane %v2418_v48, 4  ;;  %v2621_v52 = vcvt.f32.s32 %v2620_v50 }
0x3210   :  { %v3082_v7 = vsel %vm3063_vm13, %v3081_v47, %v3075_v20  ;;  %v2624_v53 = vadd.s32 %v2623_v4, %v2621_v52 }
0x3212   :  { %v3076_v54 = vrot.slane %v2624_v53, 3 }
0x3214   :  { %v5185_v55 = vsel %vm3065_vm14, %v3082_v7, %v3076_v54 }
0x3215   :  { %4252 = shalt.err (!%p4249_p11)
}
0x3216   :  { %s4253_s15 = scalar_lea.hbm %s5253_s22, 16 }
0x3217   :  { %p4254_p12 = scmp.ne.s32.totalorder %s5253_s22, %s4253_s15  ;;  %p4257_p13 = scmp.lt.u32.totalorder %s4253_s15, %s5253_s22 }
0x3219   :  { %p4259_p0 = pnand %p4257_p13, %p4254_p12 }
0x321b   :  { %4262 = shalt.err (!%p4259_p0)
}
0x321c   :  { %3109 = dma.vmem_to_hbm [thread:$0]  %s3107_s29, 16, %s5253_s22, [#allocation24]  }
0x321d   :  { %s4263_s10 = scalar_lea.vmem %s3097_s30, 128  ;;  %p4268_p2 = scmp.lt.s32.totalorder %s3097_s30, %s3097_s30 }
0x321e   :  { %p4264_p1 = scmp.ne.s32.totalorder %s3097_s30, %s4263_s10  ;;  %p4269_p3 = scmp.lt.s32.totalorder %s4263_s10, %s4263_s10 }
0x3220   :  { %p4270_p4 = por %p4269_p3, %p4268_p2 }
0x3222   :  { %p4271_p5 = pnand %p4270_p4, %p4264_p1 }
0x3224   :  { %4274 = shalt.err (!%p4271_p5)
}
0x3225   :  { %s4275_s18 = scalar_lea.hbm %s5252_s21, 128 }
0x3226   :  { %p4276_p6 = scmp.ne.s32.totalorder %s5252_s21, %s4275_s18  ;;  %p4279_p7 = scmp.lt.u32.totalorder %s4275_s18, %s5252_s21 }
0x3228   :  { %p4281_p8 = pnand %p4279_p7, %p4276_p6 }
0x322a   :  { %4284 = shalt.err (!%p4281_p8)
}
0x322b   :  { %3099 = dma.vmem_to_hbm [thread:$0]  %s3097_s30, 128, %s5252_s21, [#allocation4]  }
0x322c   :  { %s4346_s5 = smov [#allocation25]  }
0x322d   :  { %s3116_s7 = sshll.u32 %s4346_s5, 4  ;;  %s3117_s7 = int_to_ptr.vmem [resolvable:$true] %s3116_s7 }
0x322e   :  { %s4285_s4 = scalar_lea.vmem %s3117_s7, 16  ;;  %s4289_s8 = scalar_lea.vmem %s3117_s7, 32 }
0x322f   :  { %p4286_p9 = scmp.ne.s32.totalorder %s3117_s7, %s4285_s4  ;;  %p4290_p10 = scmp.lt.s32.totalorder %s3117_s7, %s3117_s7 }
0x3230   :  { %p4291_p11 = scmp.lt.s32.totalorder %s4289_s8, %s4285_s4 }
0x3232   :  { %p4292_p12 = por %p4291_p11, %p4290_p10 }
0x3234   :  { %p4293_p13 = pnand %p4292_p12, %p4286_p9 }
0x3236   :  { %4296 = shalt.err (!%p4293_p13)
}
0x3237   :  { %s4297_s9 = scalar_lea.hbm %s5254_s23, 16 }
0x3238   :  { %p4298_p0 = scmp.ne.s32.totalorder %s5254_s23, %s4297_s9  ;;  %p4301_p1 = scmp.lt.u32.totalorder %s4297_s9, %s5254_s23 }
0x323a   :  { %p4303_p2 = pnand %p4301_p1, %p4298_p0 }
0x323c   :  { %4306 = shalt.err (!%p4303_p2)
}
0x323d   :  { %3119 = dma.vmem_to_hbm [thread:$0]  %s3117_s7, 16, %s5254_s23, [#allocation24]   ;;  %v2826_v56 = vpop.xlane.xlu1 %2825  ;;  %v2828_v58 = vcvt.f32.s32 %v5173_v41  ;;  %v3034_v63 = vcvt.f32.s32 %v5179_v45  ;;  %vm3086_vm5 = vcmask 7168  }
0x323e   :  { %v2827_v59 = vcvt.f32.s32 %v2826_v56 }
0x323f   :  { %v2829_v62 = vshll.u32 %v2828_v58, 16  ;;  %v3035_v2 = vshll.u32 %v3034_v63, 16 }
0x3241   :  { %v2830_v0 = vadd.s32 %v2829_v62, %v2827_v59 }
0x3243   :  { %v3077_v8 = vrot.slane %v2830_v0, 2 }
0x3245   :  { %v3084_v12 = vsel %vm3067_vm15, %v5185_v55, %v3077_v8 }
0x329a   :  { %v3032_v1 = vpop.xlane.xlu1 %3031 }
0x329b   :  { %v3033_v5 = vcvt.f32.s32 %v3032_v1 }
0x329d   :  { %v3036_v9 = vadd.s32 %v3035_v2, %v3033_v5 }
0x329f   :  { %v3078_v11 = vrot.slane %v3036_v9, 1 }
0x32a1   :  { %v3085_v44 = vsel %vm3069_vm2, %v3084_v12, %v3078_v11 }
0x32a2   :  { %3087 = vst.msk [vmem:[%s5251_s20] sm:$0xff] %vm3086_vm5, %v3085_v44 }
0x32a3   :  { %4321 = dma.done.wait [#allocation4], 128  }
0x32a4   :  { %4322 = vsyncadd [#allocation4], 4294967168 }
0x32a5   :  { %4323 = dma.done.wait [#allocation24], 32  }
0x32a6   :  { %4324 = vsyncadd [#allocation24], 4294967264 }
0x32a7   :  { %3131 = vsyncpa [#allocation3], 1 }
0x32a8   :  { %3132 = vsyncpa [#allocation8], 1 }
0x32a9   :  { %3133 = vsyncpa [#allocation11], 1 }
0x32aa   :  { %3134 = vsyncpa [#allocation14], 1 }
0x32ab   :  { %3135 = vsyncpa [#allocation17], 1 }
0x32ac   :  { %3136 = vsyncpa [#allocation20], 1 }
0x32ad   :  { %3137 = vsyncpa [#allocation4], 1 }
0x32ae   :  { %3138 = vsyncpa [#allocation24], 1 }
0x32af   :  { %3139 = vsyncpa [#allocation5], 1 }

</bundles_post_ra>
